<compile_context>
chip_gen: v7x
topology: tpu7x:2x2x1
jax: 0.10.0
libtpu: 0.0.40
codegen_flags: <defaults>
</compile_context>

<pallas_src>
import jax
import jax.numpy as jnp
from jax.experimental import pallas as pl
from jax.experimental.pallas import tpu as pltpu

FEAT = 512
EPS = 1e-5
NUM_HIDDEN = 4


# ----------------------------------------------------------------------------
# Kernel
# ----------------------------------------------------------------------------
def domain_classifier_kernel(x_ref, w_hbm, gb_ref, w5_ref, b5_ref, out_ref,
                             wbuf, sem):
    # x_ref : (B, 512)       f32   input activations (VMEM)
    # w_hbm : (4, 512, 512)  bf16  hidden weights, (in, out) layout, in HBM
    # gb_ref: (8, 512)       f32   rows 0..3 = gamma_1..4, rows 4..7 = beta_1..4
    # w5_ref: (1, 512)       bf16  final Linear weight (PyTorch (out, in) layout)
    # b5_ref: (1, 1)         f32   final Linear bias
    # wbuf  : (2, 512, 512)  bf16  VMEM double buffer for streamed weights
    # sem   : (2,)           DMA semaphores, one per buffer slot

    # Prime: start streaming layer 0's weights into slot 0.
    pltpu.make_async_copy(w_hbm.at[0], wbuf.at[0], sem.at[0]).start()

    x = x_ref[...]                                              # (B, 512) f32
    inv_b = jnp.float32(1.0 / x.shape[0])

    for i in range(NUM_HIDDEN):                                 # statically unrolled
        slot = i & 1
        # Prefetch the NEXT layer's weights before blocking on the current ones,
        # so the 512 KiB DMA overlaps this layer's matmul + BN + ReLU.
        if i + 1 < NUM_HIDDEN:
            pltpu.make_async_copy(
                w_hbm.at[i + 1], wbuf.at[1 - slot], sem.at[1 - slot]).start()
        # Wait for this layer's weights to land.
        pltpu.make_async_copy(w_hbm.at[i], wbuf.at[slot], sem.at[slot]).wait()

        # Linear (bias omitted: exactly cancelled by training-mode BN mean
        # subtraction). bf16 operands, f32 accumulation on the MXU.
        z = jnp.dot(x.astype(jnp.bfloat16), wbuf[slot],
                    preferred_element_type=jnp.float32)          # (B, 512) f32

        # BatchNorm1d, training mode: two INDEPENDENT cross-sublane reductions
        # (sum, sum-of-squares) instead of the serial mean -> center -> var
        # chain. Stats stay in f32; var clamped at 0 against E[z^2]-mean^2
        # cancellation.
        s = jnp.sum(z, axis=0, keepdims=True)                    # (1, 512)
        sq = jnp.sum(z * z, axis=0, keepdims=True)               # (1, 512)
        mean = s * inv_b
        var = jnp.maximum(sq * inv_b - mean * mean, 0.0)
        scale = jax.lax.rsqrt(var + EPS) * gb_ref[pl.ds(i, 1), :]        # gamma folded
        x = jnp.maximum((z - mean) * scale + gb_ref[pl.ds(4 + i, 1), :], 0.0)  # +beta, ReLU

    # Final Linear(512, 1): lane-dense multiply + row reduce (VPU/XLU) instead
    # of a lane-sparse (512, 1) MXU matmul.
    w5 = w5_ref[...].astype(jnp.float32)                         # (1, 512)
    y = jnp.sum(x * w5, axis=-1, keepdims=True) + b5_ref[...]    # (B, 1)
    out_ref[...] = y.astype(out_ref.dtype)


# ----------------------------------------------------------------------------
# Wrapper
# ----------------------------------------------------------------------------
@jax.jit
def domain_classifier_forward(h, packed):
    B = h.shape[0]
    return pl.pallas_call(
        domain_classifier_kernel,
        out_shape=jax.ShapeDtypeStruct((B, 1), jnp.float32),
        in_specs=[
            pl.BlockSpec(memory_space=pltpu.MemorySpace.VMEM),   # h
            pl.BlockSpec(memory_space=pl.ANY),                   # w (HBM, streamed)
            pl.BlockSpec(memory_space=pltpu.MemorySpace.VMEM),   # gamma/beta
            pl.BlockSpec(memory_space=pltpu.MemorySpace.VMEM),   # w5
            pl.BlockSpec(memory_space=pltpu.MemorySpace.VMEM),   # b5
        ],
        out_specs=pl.BlockSpec(memory_space=pltpu.MemorySpace.VMEM),
        scratch_shapes=[
            pltpu.VMEM((2, FEAT, FEAT), jnp.bfloat16),           # weight double buffer
            pltpu.SemaphoreType.DMA((2,)),
        ],
        compiler_params=pltpu.CompilerParams(vmem_limit_bytes=16 << 20),
    )(h, packed["w"], packed["gb"], packed["w5"], packed["b5"])


# ----------------------------------------------------------------------------
# Parameters
# ----------------------------------------------------------------------------
def init_params(key):
    """PyTorch-layout params: Linear weights (out, in), uniform +/- 1/sqrt(fan_in);
    BatchNorm1d gamma=1, beta=0."""
    params = {}
    bound = 1.0 / jnp.sqrt(jnp.float32(FEAT))
    keys = jax.random.split(key, 10)
    for i in range(4):
        params[f"w{i + 1}"] = jax.random.uniform(
            keys[2 * i], (FEAT, FEAT), jnp.float32, -bound, bound)
        params[f"b{i + 1}"] = jax.random.uniform(
            keys[2 * i + 1], (FEAT,), jnp.float32, -bound, bound)
        params[f"g{i + 1}"] = jnp.ones((FEAT,), jnp.float32)
        params[f"be{i + 1}"] = jnp.zeros((FEAT,), jnp.float32)
    params["w5"] = jax.random.uniform(keys[8], (1, FEAT), jnp.float32, -bound, bound)
    params["b5"] = jax.random.uniform(keys[9], (1,), jnp.float32, -bound, bound)
    return params


def pack_params(params):
    """One-time layout/dtype conversion to the kernel format (call ONCE, outside
    the per-step jitted forward)."""
    w = jnp.stack([params[f"w{i}"].T for i in range(1, 5)]).astype(jnp.bfloat16)
    gb = jnp.concatenate(
        [jnp.stack([params[f"g{i}"] for i in range(1, 5)]),
         jnp.stack([params[f"be{i}"] for i in range(1, 5)])], axis=0).astype(jnp.float32)
    w5 = params["w5"].astype(jnp.bfloat16)                 # (1, 512) already lane-dense
    b5 = params["b5"].reshape(1, 1).astype(jnp.float32)
    # b1..b4 intentionally dropped: exactly cancelled by training-mode BN.
    # NOTE: if eval-mode BN (running stats) is ever used, the hidden biases
    # must be restored.
    return {"w": w, "gb": gb, "w5": w5, "b5": b5}


# ----------------------------------------------------------------------------
# References
# ----------------------------------------------------------------------------
def reference_forward(h, params):
    """Pure-JAX f32 reference of the PyTorch module (training-mode BatchNorm,
    hidden biases included as in the spec)."""
    x = h
    for i in range(4):
        x = x @ params[f"w{i + 1}"].T + params[f"b{i + 1}"]
        mean = jnp.mean(x, axis=0, keepdims=True)
        var = jnp.mean((x - mean) ** 2, axis=0, keepdims=True)
        x = (x - mean) / jnp.sqrt(var + EPS)
        x = x * params[f"g{i + 1}"] + params[f"be{i + 1}"]
        x = jnp.maximum(x, 0.0)
    return x @ params["w5"].T + params["b5"]


def reference_forward_bf16(h, packed):
    """Pure-JAX mirror of the exact kernel arithmetic (bf16 matmul operands,
    f32 accumulation, sum/sum-of-squares BN stats, biases folded away)."""
    x = h
    B = h.shape[0]
    inv_b = jnp.float32(1.0 / B)
    for i in range(4):
        z = jnp.dot(x.astype(jnp.bfloat16), packed["w"][i],
                    preferred_element_type=jnp.float32)
        s = jnp.sum(z, axis=0, keepdims=True)
        sq = jnp.sum(z * z, axis=0, keepdims=True)
        mean = s * inv_b
        var = jnp.maximum(sq * inv_b - mean * mean, 0.0)
        scale = jax.lax.rsqrt(var + EPS) * packed["gb"][i:i + 1]
        x = jnp.maximum((z - mean) * scale + packed["gb"][4 + i:5 + i], 0.0)
    w5 = packed["w5"].astype(jnp.float32)
    return jnp.sum(x * w5, axis=-1, keepdims=True) + packed["b5"]


# ----------------------------------------------------------------------------
if __name__ == "__main__":
    key = jax.random.PRNGKey(0)
    k_param, k_x = jax.random.split(key)

    B = 8
    h = jax.random.normal(k_x, (B, FEAT), jnp.float32)
    params = init_params(k_param)
    packed = pack_params(params)          # one-time conversion, outside the jit

    y = jax.block_until_ready(domain_classifier_forward(h, packed))
    assert y.shape == (B, 1), y.shape

    # 1) Exact-arithmetic check against a pure-JAX mirror of the kernel math.
    y_bf16 = reference_forward_bf16(h, packed)
    assert jnp.allclose(y, y_bf16, atol=5e-3, rtol=5e-3), (
        float(jnp.max(jnp.abs(y - y_bf16))))

    # 2) Fidelity to the f32 PyTorch module (loose: kernel weights are bf16).
    y_ref = reference_forward(h, params)
    assert jnp.allclose(y, y_ref, atol=1e-1, rtol=1e-1), (
        float(jnp.max(jnp.abs(y - y_ref))))

    print("KERNEL_OK")
</pallas_src>

<mosaic_0001>
module attributes {stable_mosaic.version = 11 : i64} {
  func.func @domain_classifier_kernel(%arg0: memref<8x512xf32, #tpu.memory_space<vmem>>, %arg1: memref<4x512x512xbf16, #tpu.memory_space<any>>, %arg2: memref<8x512xf32, #tpu.memory_space<vmem>>, %arg3: memref<1x512xbf16, #tpu.memory_space<vmem>>, %arg4: memref<1x1xf32, #tpu.memory_space<vmem>>, %arg5: memref<8x1xf32, #tpu.memory_space<vmem>>, %arg6: memref<2x512x512xbf16, #tpu.memory_space<vmem>>, %arg7: memref<2x!tpu.dma_semaphore, #tpu.memory_space<semaphore_mem>>) attributes {dimension_semantics = [], scalar_prefetch = 0 : i64, scratch_operands = 2 : i64, tpu.core_type = #tpu.core_type<tc>} {
    %c0_i32 = arith.constant 0 : i32
    %c0_i32_0 = arith.constant 0 : i32
    %c0_i32_1 = arith.constant 0 : i32
    %c0_i32_2 = arith.constant 0 : i32
    %c0_i32_3 = arith.constant 0 : i32
    %0 = tpu.memref_slice %arg1[%c0_i32, %c0_i32_2, %c0_i32_3] : memref<4x512x512xbf16, #tpu.memory_space<any>> -> memref<1x512x512xbf16, #tpu.memory_space<any>>
    %1 = tpu.memref_squeeze %0 : memref<1x512x512xbf16, #tpu.memory_space<any>> -> memref<512x512xbf16, #tpu.memory_space<any>>
    %c0_i32_4 = arith.constant 0 : i32
    %c0_i32_5 = arith.constant 0 : i32
    %2 = tpu.memref_slice %arg6[%c0_i32_0, %c0_i32_4, %c0_i32_5] : memref<2x512x512xbf16, #tpu.memory_space<vmem>> -> memref<1x512x512xbf16, #tpu.memory_space<vmem>>
    %3 = tpu.memref_squeeze %2 : memref<1x512x512xbf16, #tpu.memory_space<vmem>> -> memref<512x512xbf16, #tpu.memory_space<vmem>>
    %4 = tpu.memref_slice %arg7[%c0_i32_1] : memref<2x!tpu.dma_semaphore, #tpu.memory_space<semaphore_mem>> -> memref<1x!tpu.dma_semaphore, #tpu.memory_space<semaphore_mem>>
    %5 = tpu.memref_squeeze %4 : memref<1x!tpu.dma_semaphore, #tpu.memory_space<semaphore_mem>> -> memref<!tpu.dma_semaphore, #tpu.memory_space<semaphore_mem>>
    tpu.enqueue_dma source(%1 : memref<512x512xbf16, #tpu.memory_space<any>>) target(%3 : memref<512x512xbf16, #tpu.memory_space<vmem>>) target_semaphore(%5 : memref<!tpu.dma_semaphore, #tpu.memory_space<semaphore_mem>>)
    %c0 = arith.constant 0 : index
    %c0_6 = arith.constant 0 : index
    %6 = vector.load %arg0[%c0, %c0_6] : memref<8x512xf32, #tpu.memory_space<vmem>>, vector<8x512xf32>
    %c1_i32 = arith.constant 1 : i32
    %c1_i32_7 = arith.constant 1 : i32
    %c1_i32_8 = arith.constant 1 : i32
    %c0_i32_9 = arith.constant 0 : i32
    %c0_i32_10 = arith.constant 0 : i32
    %7 = tpu.memref_slice %arg1[%c1_i32, %c0_i32_9, %c0_i32_10] : memref<4x512x512xbf16, #tpu.memory_space<any>> -> memref<1x512x512xbf16, #tpu.memory_space<any>>
    %8 = tpu.memref_squeeze %7 : memref<1x512x512xbf16, #tpu.memory_space<any>> -> memref<512x512xbf16, #tpu.memory_space<any>>
    %c0_i32_11 = arith.constant 0 : i32
    %c0_i32_12 = arith.constant 0 : i32
    %9 = tpu.memref_slice %arg6[%c1_i32_7, %c0_i32_11, %c0_i32_12] : memref<2x512x512xbf16, #tpu.memory_space<vmem>> -> memref<1x512x512xbf16, #tpu.memory_space<vmem>>
    %10 = tpu.memref_squeeze %9 : memref<1x512x512xbf16, #tpu.memory_space<vmem>> -> memref<512x512xbf16, #tpu.memory_space<vmem>>
    %11 = tpu.memref_slice %arg7[%c1_i32_8] : memref<2x!tpu.dma_semaphore, #tpu.memory_space<semaphore_mem>> -> memref<1x!tpu.dma_semaphore, #tpu.memory_space<semaphore_mem>>
    %12 = tpu.memref_squeeze %11 : memref<1x!tpu.dma_semaphore, #tpu.memory_space<semaphore_mem>> -> memref<!tpu.dma_semaphore, #tpu.memory_space<semaphore_mem>>
    tpu.enqueue_dma source(%8 : memref<512x512xbf16, #tpu.memory_space<any>>) target(%10 : memref<512x512xbf16, #tpu.memory_space<vmem>>) target_semaphore(%12 : memref<!tpu.dma_semaphore, #tpu.memory_space<semaphore_mem>>)
    %c0_i32_13 = arith.constant 0 : i32
    %c0_i32_14 = arith.constant 0 : i32
    %c0_i32_15 = arith.constant 0 : i32
    %c0_i32_16 = arith.constant 0 : i32
    %c0_i32_17 = arith.constant 0 : i32
    %13 = tpu.memref_slice %arg1[%c0_i32_13, %c0_i32_16, %c0_i32_17] : memref<4x512x512xbf16, #tpu.memory_space<any>> -> memref<1x512x512xbf16, #tpu.memory_space<any>>
    %14 = tpu.memref_squeeze %13 : memref<1x512x512xbf16, #tpu.memory_space<any>> -> memref<512x512xbf16, #tpu.memory_space<any>>
    %c0_i32_18 = arith.constant 0 : i32
    %c0_i32_19 = arith.constant 0 : i32
    %15 = tpu.memref_slice %arg6[%c0_i32_14, %c0_i32_18, %c0_i32_19] : memref<2x512x512xbf16, #tpu.memory_space<vmem>> -> memref<1x512x512xbf16, #tpu.memory_space<vmem>>
    %16 = tpu.memref_squeeze %15 : memref<1x512x512xbf16, #tpu.memory_space<vmem>> -> memref<512x512xbf16, #tpu.memory_space<vmem>>
    %17 = tpu.memref_slice %arg7[%c0_i32_15] : memref<2x!tpu.dma_semaphore, #tpu.memory_space<semaphore_mem>> -> memref<1x!tpu.dma_semaphore, #tpu.memory_space<semaphore_mem>>
    %18 = tpu.memref_squeeze %17 : memref<1x!tpu.dma_semaphore, #tpu.memory_space<semaphore_mem>> -> memref<!tpu.dma_semaphore, #tpu.memory_space<semaphore_mem>>
    tpu.wait_dma2 semaphore(%18 : memref<!tpu.dma_semaphore, #tpu.memory_space<semaphore_mem>>) src(%14 : memref<512x512xbf16, #tpu.memory_space<any>>) dst(%16 : memref<512x512xbf16, #tpu.memory_space<vmem>>)
    %19 = arith.truncf %6 : vector<8x512xf32> to vector<8x512xbf16>
    %c0_20 = arith.constant 0 : index
    %c0_21 = arith.constant 0 : index
    %c0_22 = arith.constant 0 : index
    %20 = vector.load %arg6[%c0_20, %c0_21, %c0_22] : memref<2x512x512xbf16, #tpu.memory_space<vmem>>, vector<1x512x512xbf16>
    %21 = vector.shape_cast %20 : vector<1x512x512xbf16> to vector<512x512xbf16>
    %cst = arith.constant dense<0.000000e+00> : vector<8x512xf32>
    %22 = tpu.matmul %19, %21, %cst {dimension_numbers = #tpu.dot_dimension_numbers<[1], [0], [0], [1], [0, 0, 1, 1], [], []>} : vector<8x512xbf16>, vector<512x512xbf16>, vector<8x512xf32> -> vector<8x512xf32>
    %cst_23 = arith.constant dense<0.000000e+00> : vector<512xf32>
    %23 = vector.multi_reduction <add>, %22, %cst_23 [0] : vector<8x512xf32> to vector<512xf32>
    %24 = vector.shape_cast %23 : vector<512xf32> to vector<1x512xf32>
    %25 = arith.mulf %22, %22 : vector<8x512xf32>
    %cst_24 = arith.constant dense<0.000000e+00> : vector<512xf32>
    %26 = vector.multi_reduction <add>, %25, %cst_24 [0] : vector<8x512xf32> to vector<512xf32>
    %27 = vector.shape_cast %26 : vector<512xf32> to vector<1x512xf32>
    %cst_25 = arith.constant 1.250000e-01 : f32
    %28 = vector.broadcast %cst_25 : f32 to vector<1x512xf32>
    %29 = arith.mulf %24, %28 : vector<1x512xf32>
    %cst_26 = arith.constant 1.250000e-01 : f32
    %30 = vector.broadcast %cst_26 : f32 to vector<1x512xf32>
    %31 = arith.mulf %27, %30 : vector<1x512xf32>
    %32 = arith.mulf %29, %29 : vector<1x512xf32>
    %33 = arith.subf %31, %32 : vector<1x512xf32>
    %cst_27 = arith.constant 0.000000e+00 : f32
    %34 = vector.broadcast %cst_27 : f32 to vector<1x512xf32>
    %35 = arith.maximumf %33, %34 : vector<1x512xf32>
    %cst_28 = arith.constant 9.99999974E-6 : f32
    %36 = vector.broadcast %cst_28 : f32 to vector<1x512xf32>
    %37 = arith.addf %35, %36 : vector<1x512xf32>
    %38 = math.rsqrt %37 : vector<1x512xf32>
    %c0_29 = arith.constant 0 : index
    %c0_30 = arith.constant 0 : index
    %39 = vector.load %arg2[%c0_29, %c0_30] : memref<8x512xf32, #tpu.memory_space<vmem>>, vector<1x512xf32>
    %40 = arith.mulf %38, %39 : vector<1x512xf32>
    %41 = vector.broadcast %29 : vector<1x512xf32> to vector<8x512xf32>
    %42 = arith.subf %22, %41 : vector<8x512xf32>
    %43 = vector.broadcast %40 : vector<1x512xf32> to vector<8x512xf32>
    %44 = arith.mulf %42, %43 : vector<8x512xf32>
    %c4 = arith.constant 4 : index
    %c0_31 = arith.constant 0 : index
    %45 = vector.load %arg2[%c4, %c0_31] : memref<8x512xf32, #tpu.memory_space<vmem>>, vector<1x512xf32>
    %46 = vector.broadcast %45 : vector<1x512xf32> to vector<8x512xf32>
    %47 = arith.addf %44, %46 : vector<8x512xf32>
    %cst_32 = arith.constant 0.000000e+00 : f32
    %48 = vector.broadcast %cst_32 : f32 to vector<8x512xf32>
    %49 = arith.maximumf %47, %48 : vector<8x512xf32>
    %c2_i32 = arith.constant 2 : i32
    %c0_i32_33 = arith.constant 0 : i32
    %c0_i32_34 = arith.constant 0 : i32
    %c0_i32_35 = arith.constant 0 : i32
    %c0_i32_36 = arith.constant 0 : i32
    %50 = tpu.memref_slice %arg1[%c2_i32, %c0_i32_35, %c0_i32_36] : memref<4x512x512xbf16, #tpu.memory_space<any>> -> memref<1x512x512xbf16, #tpu.memory_space<any>>
    %51 = tpu.memref_squeeze %50 : memref<1x512x512xbf16, #tpu.memory_space<any>> -> memref<512x512xbf16, #tpu.memory_space<any>>
    %c0_i32_37 = arith.constant 0 : i32
    %c0_i32_38 = arith.constant 0 : i32
    %52 = tpu.memref_slice %arg6[%c0_i32_33, %c0_i32_37, %c0_i32_38] : memref<2x512x512xbf16, #tpu.memory_space<vmem>> -> memref<1x512x512xbf16, #tpu.memory_space<vmem>>
    %53 = tpu.memref_squeeze %52 : memref<1x512x512xbf16, #tpu.memory_space<vmem>> -> memref<512x512xbf16, #tpu.memory_space<vmem>>
    %54 = tpu.memref_slice %arg7[%c0_i32_34] : memref<2x!tpu.dma_semaphore, #tpu.memory_space<semaphore_mem>> -> memref<1x!tpu.dma_semaphore, #tpu.memory_space<semaphore_mem>>
    %55 = tpu.memref_squeeze %54 : memref<1x!tpu.dma_semaphore, #tpu.memory_space<semaphore_mem>> -> memref<!tpu.dma_semaphore, #tpu.memory_space<semaphore_mem>>
    tpu.enqueue_dma source(%51 : memref<512x512xbf16, #tpu.memory_space<any>>) target(%53 : memref<512x512xbf16, #tpu.memory_space<vmem>>) target_semaphore(%55 : memref<!tpu.dma_semaphore, #tpu.memory_space<semaphore_mem>>)
    %c1_i32_39 = arith.constant 1 : i32
    %c1_i32_40 = arith.constant 1 : i32
    %c1_i32_41 = arith.constant 1 : i32
    %c0_i32_42 = arith.constant 0 : i32
    %c0_i32_43 = arith.constant 0 : i32
    %56 = tpu.memref_slice %arg1[%c1_i32_39, %c0_i32_42, %c0_i32_43] : memref<4x512x512xbf16, #tpu.memory_space<any>> -> memref<1x512x512xbf16, #tpu.memory_space<any>>
    %57 = tpu.memref_squeeze %56 : memref<1x512x512xbf16, #tpu.memory_space<any>> -> memref<512x512xbf16, #tpu.memory_space<any>>
    %c0_i32_44 = arith.constant 0 : i32
    %c0_i32_45 = arith.constant 0 : i32
    %58 = tpu.memref_slice %arg6[%c1_i32_40, %c0_i32_44, %c0_i32_45] : memref<2x512x512xbf16, #tpu.memory_space<vmem>> -> memref<1x512x512xbf16, #tpu.memory_space<vmem>>
    %59 = tpu.memref_squeeze %58 : memref<1x512x512xbf16, #tpu.memory_space<vmem>> -> memref<512x512xbf16, #tpu.memory_space<vmem>>
    %60 = tpu.memref_slice %arg7[%c1_i32_41] : memref<2x!tpu.dma_semaphore, #tpu.memory_space<semaphore_mem>> -> memref<1x!tpu.dma_semaphore, #tpu.memory_space<semaphore_mem>>
    %61 = tpu.memref_squeeze %60 : memref<1x!tpu.dma_semaphore, #tpu.memory_space<semaphore_mem>> -> memref<!tpu.dma_semaphore, #tpu.memory_space<semaphore_mem>>
    tpu.wait_dma2 semaphore(%61 : memref<!tpu.dma_semaphore, #tpu.memory_space<semaphore_mem>>) src(%57 : memref<512x512xbf16, #tpu.memory_space<any>>) dst(%59 : memref<512x512xbf16, #tpu.memory_space<vmem>>)
    %62 = arith.truncf %49 : vector<8x512xf32> to vector<8x512xbf16>
    %c1 = arith.constant 1 : index
    %c0_46 = arith.constant 0 : index
    %c0_47 = arith.constant 0 : index
    %63 = vector.load %arg6[%c1, %c0_46, %c0_47] : memref<2x512x512xbf16, #tpu.memory_space<vmem>>, vector<1x512x512xbf16>
    %64 = vector.shape_cast %63 : vector<1x512x512xbf16> to vector<512x512xbf16>
    %cst_48 = arith.constant dense<0.000000e+00> : vector<8x512xf32>
    %65 = tpu.matmul %62, %64, %cst_48 {dimension_numbers = #tpu.dot_dimension_numbers<[1], [0], [0], [1], [0, 0, 1, 1], [], []>} : vector<8x512xbf16>, vector<512x512xbf16>, vector<8x512xf32> -> vector<8x512xf32>
    %cst_49 = arith.constant dense<0.000000e+00> : vector<512xf32>
    %66 = vector.multi_reduction <add>, %65, %cst_49 [0] : vector<8x512xf32> to vector<512xf32>
    %67 = vector.shape_cast %66 : vector<512xf32> to vector<1x512xf32>
    %68 = arith.mulf %65, %65 : vector<8x512xf32>
    %cst_50 = arith.constant dense<0.000000e+00> : vector<512xf32>
    %69 = vector.multi_reduction <add>, %68, %cst_50 [0] : vector<8x512xf32> to vector<512xf32>
    %70 = vector.shape_cast %69 : vector<512xf32> to vector<1x512xf32>
    %cst_51 = arith.constant 1.250000e-01 : f32
    %71 = vector.broadcast %cst_51 : f32 to vector<1x512xf32>
    %72 = arith.mulf %67, %71 : vector<1x512xf32>
    %cst_52 = arith.constant 1.250000e-01 : f32
    %73 = vector.broadcast %cst_52 : f32 to vector<1x512xf32>
    %74 = arith.mulf %70, %73 : vector<1x512xf32>
    %75 = arith.mulf %72, %72 : vector<1x512xf32>
    %76 = arith.subf %74, %75 : vector<1x512xf32>
    %cst_53 = arith.constant 0.000000e+00 : f32
    %77 = vector.broadcast %cst_53 : f32 to vector<1x512xf32>
    %78 = arith.maximumf %76, %77 : vector<1x512xf32>
    %cst_54 = arith.constant 9.99999974E-6 : f32
    %79 = vector.broadcast %cst_54 : f32 to vector<1x512xf32>
    %80 = arith.addf %78, %79 : vector<1x512xf32>
    %81 = math.rsqrt %80 : vector<1x512xf32>
    %c1_55 = arith.constant 1 : index
    %c0_56 = arith.constant 0 : index
    %82 = vector.load %arg2[%c1_55, %c0_56] : memref<8x512xf32, #tpu.memory_space<vmem>>, vector<1x512xf32>
    %83 = arith.mulf %81, %82 : vector<1x512xf32>
    %84 = vector.broadcast %72 : vector<1x512xf32> to vector<8x512xf32>
    %85 = arith.subf %65, %84 : vector<8x512xf32>
    %86 = vector.broadcast %83 : vector<1x512xf32> to vector<8x512xf32>
    %87 = arith.mulf %85, %86 : vector<8x512xf32>
    %c5 = arith.constant 5 : index
    %c0_57 = arith.constant 0 : index
    %88 = vector.load %arg2[%c5, %c0_57] : memref<8x512xf32, #tpu.memory_space<vmem>>, vector<1x512xf32>
    %89 = vector.broadcast %88 : vector<1x512xf32> to vector<8x512xf32>
    %90 = arith.addf %87, %89 : vector<8x512xf32>
    %cst_58 = arith.constant 0.000000e+00 : f32
    %91 = vector.broadcast %cst_58 : f32 to vector<8x512xf32>
    %92 = arith.maximumf %90, %91 : vector<8x512xf32>
    %c3_i32 = arith.constant 3 : i32
    %c1_i32_59 = arith.constant 1 : i32
    %c1_i32_60 = arith.constant 1 : i32
    %c0_i32_61 = arith.constant 0 : i32
    %c0_i32_62 = arith.constant 0 : i32
    %93 = tpu.memref_slice %arg1[%c3_i32, %c0_i32_61, %c0_i32_62] : memref<4x512x512xbf16, #tpu.memory_space<any>> -> memref<1x512x512xbf16, #tpu.memory_space<any>>
    %94 = tpu.memref_squeeze %93 : memref<1x512x512xbf16, #tpu.memory_space<any>> -> memref<512x512xbf16, #tpu.memory_space<any>>
    %c0_i32_63 = arith.constant 0 : i32
    %c0_i32_64 = arith.constant 0 : i32
    %95 = tpu.memref_slice %arg6[%c1_i32_59, %c0_i32_63, %c0_i32_64] : memref<2x512x512xbf16, #tpu.memory_space<vmem>> -> memref<1x512x512xbf16, #tpu.memory_space<vmem>>
    %96 = tpu.memref_squeeze %95 : memref<1x512x512xbf16, #tpu.memory_space<vmem>> -> memref<512x512xbf16, #tpu.memory_space<vmem>>
    %97 = tpu.memref_slice %arg7[%c1_i32_60] : memref<2x!tpu.dma_semaphore, #tpu.memory_space<semaphore_mem>> -> memref<1x!tpu.dma_semaphore, #tpu.memory_space<semaphore_mem>>
    %98 = tpu.memref_squeeze %97 : memref<1x!tpu.dma_semaphore, #tpu.memory_space<semaphore_mem>> -> memref<!tpu.dma_semaphore, #tpu.memory_space<semaphore_mem>>
    tpu.enqueue_dma source(%94 : memref<512x512xbf16, #tpu.memory_space<any>>) target(%96 : memref<512x512xbf16, #tpu.memory_space<vmem>>) target_semaphore(%98 : memref<!tpu.dma_semaphore, #tpu.memory_space<semaphore_mem>>)
    %c2_i32_65 = arith.constant 2 : i32
    %c0_i32_66 = arith.constant 0 : i32
    %c0_i32_67 = arith.constant 0 : i32
    %c0_i32_68 = arith.constant 0 : i32
    %c0_i32_69 = arith.constant 0 : i32
    %99 = tpu.memref_slice %arg1[%c2_i32_65, %c0_i32_68, %c0_i32_69] : memref<4x512x512xbf16, #tpu.memory_space<any>> -> memref<1x512x512xbf16, #tpu.memory_space<any>>
    %100 = tpu.memref_squeeze %99 : memref<1x512x512xbf16, #tpu.memory_space<any>> -> memref<512x512xbf16, #tpu.memory_space<any>>
    %c0_i32_70 = arith.constant 0 : i32
    %c0_i32_71 = arith.constant 0 : i32
    %101 = tpu.memref_slice %arg6[%c0_i32_66, %c0_i32_70, %c0_i32_71] : memref<2x512x512xbf16, #tpu.memory_space<vmem>> -> memref<1x512x512xbf16, #tpu.memory_space<vmem>>
    %102 = tpu.memref_squeeze %101 : memref<1x512x512xbf16, #tpu.memory_space<vmem>> -> memref<512x512xbf16, #tpu.memory_space<vmem>>
    %103 = tpu.memref_slice %arg7[%c0_i32_67] : memref<2x!tpu.dma_semaphore, #tpu.memory_space<semaphore_mem>> -> memref<1x!tpu.dma_semaphore, #tpu.memory_space<semaphore_mem>>
    %104 = tpu.memref_squeeze %103 : memref<1x!tpu.dma_semaphore, #tpu.memory_space<semaphore_mem>> -> memref<!tpu.dma_semaphore, #tpu.memory_space<semaphore_mem>>
    tpu.wait_dma2 semaphore(%104 : memref<!tpu.dma_semaphore, #tpu.memory_space<semaphore_mem>>) src(%100 : memref<512x512xbf16, #tpu.memory_space<any>>) dst(%102 : memref<512x512xbf16, #tpu.memory_space<vmem>>)
    %105 = arith.truncf %92 : vector<8x512xf32> to vector<8x512xbf16>
    %c0_72 = arith.constant 0 : index
    %c0_73 = arith.constant 0 : index
    %c0_74 = arith.constant 0 : index
    %106 = vector.load %arg6[%c0_72, %c0_73, %c0_74] : memref<2x512x512xbf16, #tpu.memory_space<vmem>>, vector<1x512x512xbf16>
    %107 = vector.shape_cast %106 : vector<1x512x512xbf16> to vector<512x512xbf16>
    %cst_75 = arith.constant dense<0.000000e+00> : vector<8x512xf32>
    %108 = tpu.matmul %105, %107, %cst_75 {dimension_numbers = #tpu.dot_dimension_numbers<[1], [0], [0], [1], [0, 0, 1, 1], [], []>} : vector<8x512xbf16>, vector<512x512xbf16>, vector<8x512xf32> -> vector<8x512xf32>
    %cst_76 = arith.constant dense<0.000000e+00> : vector<512xf32>
    %109 = vector.multi_reduction <add>, %108, %cst_76 [0] : vector<8x512xf32> to vector<512xf32>
    %110 = vector.shape_cast %109 : vector<512xf32> to vector<1x512xf32>
    %111 = arith.mulf %108, %108 : vector<8x512xf32>
    %cst_77 = arith.constant dense<0.000000e+00> : vector<512xf32>
    %112 = vector.multi_reduction <add>, %111, %cst_77 [0] : vector<8x512xf32> to vector<512xf32>
    %113 = vector.shape_cast %112 : vector<512xf32> to vector<1x512xf32>
    %cst_78 = arith.constant 1.250000e-01 : f32
    %114 = vector.broadcast %cst_78 : f32 to vector<1x512xf32>
    %115 = arith.mulf %110, %114 : vector<1x512xf32>
    %cst_79 = arith.constant 1.250000e-01 : f32
    %116 = vector.broadcast %cst_79 : f32 to vector<1x512xf32>
    %117 = arith.mulf %113, %116 : vector<1x512xf32>
    %118 = arith.mulf %115, %115 : vector<1x512xf32>
    %119 = arith.subf %117, %118 : vector<1x512xf32>
    %cst_80 = arith.constant 0.000000e+00 : f32
    %120 = vector.broadcast %cst_80 : f32 to vector<1x512xf32>
    %121 = arith.maximumf %119, %120 : vector<1x512xf32>
    %cst_81 = arith.constant 9.99999974E-6 : f32
    %122 = vector.broadcast %cst_81 : f32 to vector<1x512xf32>
    %123 = arith.addf %121, %122 : vector<1x512xf32>
    %124 = math.rsqrt %123 : vector<1x512xf32>
    %c2 = arith.constant 2 : index
    %c0_82 = arith.constant 0 : index
    %125 = vector.load %arg2[%c2, %c0_82] : memref<8x512xf32, #tpu.memory_space<vmem>>, vector<1x512xf32>
    %126 = arith.mulf %124, %125 : vector<1x512xf32>
    %127 = vector.broadcast %115 : vector<1x512xf32> to vector<8x512xf32>
    %128 = arith.subf %108, %127 : vector<8x512xf32>
    %129 = vector.broadcast %126 : vector<1x512xf32> to vector<8x512xf32>
    %130 = arith.mulf %128, %129 : vector<8x512xf32>
    %c6 = arith.constant 6 : index
    %c0_83 = arith.constant 0 : index
    %131 = vector.load %arg2[%c6, %c0_83] : memref<8x512xf32, #tpu.memory_space<vmem>>, vector<1x512xf32>
    %132 = vector.broadcast %131 : vector<1x512xf32> to vector<8x512xf32>
    %133 = arith.addf %130, %132 : vector<8x512xf32>
    %cst_84 = arith.constant 0.000000e+00 : f32
    %134 = vector.broadcast %cst_84 : f32 to vector<8x512xf32>
    %135 = arith.maximumf %133, %134 : vector<8x512xf32>
    %c3_i32_85 = arith.constant 3 : i32
    %c1_i32_86 = arith.constant 1 : i32
    %c1_i32_87 = arith.constant 1 : i32
    %c0_i32_88 = arith.constant 0 : i32
    %c0_i32_89 = arith.constant 0 : i32
    %136 = tpu.memref_slice %arg1[%c3_i32_85, %c0_i32_88, %c0_i32_89] : memref<4x512x512xbf16, #tpu.memory_space<any>> -> memref<1x512x512xbf16, #tpu.memory_space<any>>
    %137 = tpu.memref_squeeze %136 : memref<1x512x512xbf16, #tpu.memory_space<any>> -> memref<512x512xbf16, #tpu.memory_space<any>>
    %c0_i32_90 = arith.constant 0 : i32
    %c0_i32_91 = arith.constant 0 : i32
    %138 = tpu.memref_slice %arg6[%c1_i32_86, %c0_i32_90, %c0_i32_91] : memref<2x512x512xbf16, #tpu.memory_space<vmem>> -> memref<1x512x512xbf16, #tpu.memory_space<vmem>>
    %139 = tpu.memref_squeeze %138 : memref<1x512x512xbf16, #tpu.memory_space<vmem>> -> memref<512x512xbf16, #tpu.memory_space<vmem>>
    %140 = tpu.memref_slice %arg7[%c1_i32_87] : memref<2x!tpu.dma_semaphore, #tpu.memory_space<semaphore_mem>> -> memref<1x!tpu.dma_semaphore, #tpu.memory_space<semaphore_mem>>
    %141 = tpu.memref_squeeze %140 : memref<1x!tpu.dma_semaphore, #tpu.memory_space<semaphore_mem>> -> memref<!tpu.dma_semaphore, #tpu.memory_space<semaphore_mem>>
    tpu.wait_dma2 semaphore(%141 : memref<!tpu.dma_semaphore, #tpu.memory_space<semaphore_mem>>) src(%137 : memref<512x512xbf16, #tpu.memory_space<any>>) dst(%139 : memref<512x512xbf16, #tpu.memory_space<vmem>>)
    %142 = arith.truncf %135 : vector<8x512xf32> to vector<8x512xbf16>
    %c1_92 = arith.constant 1 : index
    %c0_93 = arith.constant 0 : index
    %c0_94 = arith.constant 0 : index
    %143 = vector.load %arg6[%c1_92, %c0_93, %c0_94] : memref<2x512x512xbf16, #tpu.memory_space<vmem>>, vector<1x512x512xbf16>
    %144 = vector.shape_cast %143 : vector<1x512x512xbf16> to vector<512x512xbf16>
    %cst_95 = arith.constant dense<0.000000e+00> : vector<8x512xf32>
    %145 = tpu.matmul %142, %144, %cst_95 {dimension_numbers = #tpu.dot_dimension_numbers<[1], [0], [0], [1], [0, 0, 1, 1], [], []>} : vector<8x512xbf16>, vector<512x512xbf16>, vector<8x512xf32> -> vector<8x512xf32>
    %cst_96 = arith.constant dense<0.000000e+00> : vector<512xf32>
    %146 = vector.multi_reduction <add>, %145, %cst_96 [0] : vector<8x512xf32> to vector<512xf32>
    %147 = vector.shape_cast %146 : vector<512xf32> to vector<1x512xf32>
    %148 = arith.mulf %145, %145 : vector<8x512xf32>
    %cst_97 = arith.constant dense<0.000000e+00> : vector<512xf32>
    %149 = vector.multi_reduction <add>, %148, %cst_97 [0] : vector<8x512xf32> to vector<512xf32>
    %150 = vector.shape_cast %149 : vector<512xf32> to vector<1x512xf32>
    %cst_98 = arith.constant 1.250000e-01 : f32
    %151 = vector.broadcast %cst_98 : f32 to vector<1x512xf32>
    %152 = arith.mulf %147, %151 : vector<1x512xf32>
    %cst_99 = arith.constant 1.250000e-01 : f32
    %153 = vector.broadcast %cst_99 : f32 to vector<1x512xf32>
    %154 = arith.mulf %150, %153 : vector<1x512xf32>
    %155 = arith.mulf %152, %152 : vector<1x512xf32>
    %156 = arith.subf %154, %155 : vector<1x512xf32>
    %cst_100 = arith.constant 0.000000e+00 : f32
    %157 = vector.broadcast %cst_100 : f32 to vector<1x512xf32>
    %158 = arith.maximumf %156, %157 : vector<1x512xf32>
    %cst_101 = arith.constant 9.99999974E-6 : f32
    %159 = vector.broadcast %cst_101 : f32 to vector<1x512xf32>
    %160 = arith.addf %158, %159 : vector<1x512xf32>
    %161 = math.rsqrt %160 : vector<1x512xf32>
    %c3 = arith.constant 3 : index
    %c0_102 = arith.constant 0 : index
    %162 = vector.load %arg2[%c3, %c0_102] : memref<8x512xf32, #tpu.memory_space<vmem>>, vector<1x512xf32>
    %163 = arith.mulf %161, %162 : vector<1x512xf32>
    %164 = vector.broadcast %152 : vector<1x512xf32> to vector<8x512xf32>
    %165 = arith.subf %145, %164 : vector<8x512xf32>
    %166 = vector.broadcast %163 : vector<1x512xf32> to vector<8x512xf32>
    %167 = arith.mulf %165, %166 : vector<8x512xf32>
    %c7 = arith.constant 7 : index
    %c0_103 = arith.constant 0 : index
    %168 = vector.load %arg2[%c7, %c0_103] : memref<8x512xf32, #tpu.memory_space<vmem>>, vector<1x512xf32>
    %169 = vector.broadcast %168 : vector<1x512xf32> to vector<8x512xf32>
    %170 = arith.addf %167, %169 : vector<8x512xf32>
    %cst_104 = arith.constant 0.000000e+00 : f32
    %171 = vector.broadcast %cst_104 : f32 to vector<8x512xf32>
    %172 = arith.maximumf %170, %171 : vector<8x512xf32>
    %c0_105 = arith.constant 0 : index
    %c0_106 = arith.constant 0 : index
    %173 = vector.load %arg3[%c0_105, %c0_106] : memref<1x512xbf16, #tpu.memory_space<vmem>>, vector<1x512xbf16>
    %174 = arith.extf %173 : vector<1x512xbf16> to vector<1x512xf32>
    %175 = vector.broadcast %174 : vector<1x512xf32> to vector<8x512xf32>
    %176 = arith.mulf %172, %175 : vector<8x512xf32>
    %cst_107 = arith.constant dense<0.000000e+00> : vector<8xf32>
    %177 = vector.multi_reduction <add>, %176, %cst_107 [1] : vector<8x512xf32> to vector<8xf32>
    %178 = vector.shape_cast %177 : vector<8xf32> to vector<8x1xf32>
    %c0_108 = arith.constant 0 : index
    %c0_109 = arith.constant 0 : index
    %179 = vector.load %arg4[%c0_108, %c0_109] : memref<1x1xf32, #tpu.memory_space<vmem>>, vector<1x1xf32>
    %180 = vector.broadcast %179 : vector<1x1xf32> to vector<8x1xf32>
    %181 = arith.addf %178, %180 : vector<8x1xf32>
    %c0_110 = arith.constant 0 : index
    %c0_111 = arith.constant 0 : index
    %182 = vector.load %arg5[%c0_110, %c0_111] : memref<8x1xf32, #tpu.memory_space<vmem>>, vector<8x1xf32>
    tpu.vector_store %arg5[%c0_110, %c0_111], %181 {strides = array<i32>} : memref<8x1xf32, #tpu.memory_space<vmem>>, vector<8x1xf32>,
    return
  }
}

</mosaic_0001>

<bundles_post_ra>
// kernel: domain_classifier_forward.1
= control target key start
LH: loop header
LB: loop body
LE: loop exit
PB: predicated region body
PF: predicated region fallthrough
CT: control target
= control target key end

     0   :  { %s2727_s0 = inlined_call_operand.hbm [shape: f32[8,512], index: 0, kind: input, shape index: {}]   ;;  %s2728_s1 = inlined_call_operand.hbm [shape: bf16[4,512,512], index: 1, kind: input, shape index: {}]   ;;  %s2729_s2 = inlined_call_operand.hbm [shape: f32[8,512], index: 2, kind: input, shape index: {}]   ;;  %s2730_s3 = inlined_call_operand.hbm [shape: bf16[1,512], index: 3, kind: input, shape index: {}]   ;;  %s2731_s4 = inlined_call_operand.<no memory space> [shape: f32[1,1], index: 4, kind: input, shape index: {}]   ;;  %s2732_s5 = inlined_call_operand.vmem [shape: f32[8,1], index: 5, kind: output, shape index: {}]  }
   0x1   :  { %v10_v0 = vstv %s2731_s4 }
   0x2   :  { %11 = vst [vmem:[#allocation4] sm:$0x1] %v10_v0 }
   0x3   :  { %12 = vsyncpa [#allocation6], 0 }
   0x4   :  { %13 = vsyncpa [#allocation8], 0  ;;  %s2289_s20 = smov [#allocation7]   ;;  %s2290_s22 = smov [#allocation5]  }
   0x5   :  { %s30_s21 = sshll.u32 %s2289_s20, 4  ;;  %s20_s23 = sshll.u32 %s2290_s22, 4  ;;  %s31_s21 = int_to_ptr.vmem [resolvable:$true] %s30_s21  ;;  %s21_s23 = int_to_ptr.vmem [resolvable:$true] %s20_s23 }
   0x6   :  { %s2211_s26 = scalar_lea.hbm %s2729_s2, 512 }
   0x7   :  { %p2212_p0 = scmp.ne.s32.totalorder %s2729_s2, %s2211_s26  ;;  %p2215_p1 = scmp.lt.u32.totalorder %s2211_s26, %s2729_s2 }
   0x9   :  { %p2217_p2 = pnand %p2215_p1, %p2212_p0 }
   0xb   :  { %2220 = shalt.err (!%p2217_p2)
}
   0xc   :  { %s2221_s4 = scalar_lea.vmem %s31_s21, 512  ;;  %p2226_p4 = scmp.lt.s32.totalorder %s31_s21, %s31_s21 }
   0xd   :  { %p2222_p3 = scmp.ne.s32.totalorder %s31_s21, %s2221_s4  ;;  %p2227_p5 = scmp.lt.s32.totalorder %s2221_s4, %s2221_s4 }
   0xf   :  { %p2228_p6 = por %p2227_p5, %p2226_p4 }
  0x11   :  { %p2229_p7 = pnand %p2228_p6, %p2222_p3 }
  0x13   :  { %2232 = shalt.err (!%p2229_p7)
}
  0x14   :  { %33 = dma.hbm_to_vmem [thread:$0]  %s2729_s2, 512, %s31_s21, [#allocation8]  }
  0x15   :  { %s2233_s10 = scalar_lea.hbm %s2727_s0, 512 }
  0x16   :  { %p2234_p8 = scmp.ne.s32.totalorder %s2727_s0, %s2233_s10  ;;  %p2237_p9 = scmp.lt.u32.totalorder %s2233_s10, %s2727_s0 }
  0x18   :  { %p2239_p10 = pnand %p2237_p9, %p2234_p8 }
  0x1a   :  { %2242 = shalt.err (!%p2239_p10)
}
  0x1b   :  { %s2243_s15 = scalar_lea.vmem %s21_s23, 512  ;;  %p2248_p12 = scmp.lt.s32.totalorder %s21_s23, %s21_s23 }
  0x1c   :  { %p2244_p11 = scmp.ne.s32.totalorder %s21_s23, %s2243_s15  ;;  %p2249_p13 = scmp.lt.s32.totalorder %s2243_s15, %s2243_s15 }
  0x1e   :  { %p2250_p0 = por %p2249_p13, %p2248_p12 }
  0x20   :  { %p2251_p1 = pnand %p2250_p0, %p2244_p11 }
  0x22   :  { %2254 = shalt.err (!%p2251_p1)
}
  0x23   :  { %23 = dma.hbm_to_vmem [thread:$0]  %s2727_s0, 512, %s21_s23, [#allocation6]  }
  0x24   :  { %s2291_s17 = smov [#allocation9]   ;;  %s2255_s21 = scalar_lea.hbm %s2730_s3, 64 }
  0x25   :  { %s40_s18 = sshll.u32 %s2291_s17, 4  ;;  %p2256_p2 = scmp.ne.s32.totalorder %s2730_s3, %s2255_s21  ;;  %s41_s18 = int_to_ptr.vmem [resolvable:$true] %s40_s18 }
  0x26   :  { %p2259_p3 = scmp.lt.u32.totalorder %s2255_s21, %s2730_s3 }
  0x28   :  { %p2261_p4 = pnand %p2259_p3, %p2256_p2 }
  0x2a   :  { %2264 = shalt.err (!%p2261_p4)
}
  0x2b   :  { %s2265_s27 = scalar_lea.vmem %s41_s18, 64  ;;  %p2270_p6 = scmp.lt.s32.totalorder %s41_s18, %s41_s18 }
  0x2c   :  { %p2266_p5 = scmp.ne.s32.totalorder %s41_s18, %s2265_s27  ;;  %p2271_p7 = scmp.lt.s32.totalorder %s2265_s27, %s2265_s27 }
  0x2e   :  { %p2272_p8 = por %p2271_p7, %p2270_p6 }
  0x30   :  { %p2273_p9 = pnand %p2272_p8, %p2266_p5 }
  0x32   :  { %2276 = shalt.err (!%p2273_p9)
}
  0x33   :  { %43 = dma.hbm_to_vmem [thread:$0]  %s2730_s3, 64, %s41_s18, [#allocation8]  }
  0x34   :  { %2277 = dma.done.wait [#allocation6], 512  }
  0x35   :  { %2278 = vsyncadd [#allocation6], 4294966784 }
  0x36   :  { %2279 = dma.done.wait [#allocation8], 576  }
  0x37   :  { %2280 = vsyncadd [#allocation8], 4294966720  ;;  %s59_s28 = sld [smem:[#allocation0]]   ;;  %s2292_s29 = smov 512  }
  0x38   :  { %71 = sst [smem:[#allocation11]] %s2292_s29  ;;  %s2293_s30 = smov 4  }
  0x39   :  { %73 = sst [smem:[#allocation11 + $0x1]] %s2292_s29  ;;  %s2294_s4 = smov 64  }
  0x3a   :  { %75 = sst [smem:[#allocation11 + $0x2]] %s2293_s30  ;;  %s2295_s6 = smov 128  }
  0x3b   :  { %77 = sst [smem:[#allocation11 + $0x3]] %s2294_s4  ;;  %s2296_s3 = smov 2  }
  0x3c   :  { %79 = sst [smem:[#allocation11 + $0x4]] %s2295_s6  ;;  %s2297_s8 = smov 256  }
  0x3d   :  { %81 = sst [smem:[#allocation11 + $0x5]] %s2296_s3  ;;  %s2119_s7 = sshll.u32 %s59_s28, 26 }
  0x3e   :  { %83 = sst [smem:[#allocation11 + $0x6]] %s2297_s8  ;;  %s2382_s9 = sadd.s32 134217728, %s2119_s7 }
  0x3f   :  { %85 = sst [smem:[#allocation11 + $0x7]] %s2294_s4  ;;  %s2298_s10 = smov [#allocation2]  }
  0x40   :  { %87 = sst [smem:[#allocation11 + $0x8]] %s2293_s30  ;;  %s2386_s11 = sshll.u32 %s2298_s10, 4  ;;  %s68_s11 = int_to_ptr.vmem [resolvable:$true] %s2386_s11 }
  0x41   :  { %s2299_s12 = smov [#allocation3]   ;;  %s2300_s13 = smov [#allocation10]  }
  0x42   :  { %89 = dma.general %s2728_s1, 16384, %s68_s11, %s2299_s12, %s2300_s13, [#allocation11], %s2382_s9, 0  }
  0x43   :  { %112 = sst [smem:[#allocation13]] %s2292_s29  ;;  %s2301_s2 = smov [#allocation2 + $0x400]   ;;  %v2409_v1 = vld [vmem:[#allocation5] sm:$0xff]  ;;  %v91_v2 = vld [vmem:[#allocation5 + $0x8] sm:$0xff]  ;;  %v2411_v3 = vld [vmem:[#allocation5 + $0x10] sm:$0xff] }
  0x44   :  { %114 = sst [smem:[#allocation13 + $0x1]] %s2292_s29  ;;  %s2398_s16 = sshll.u32 %s2301_s2, 4  ;;  %v2414_v4 = vld [vmem:[#allocation5 + $0x18] sm:$0xff]  ;;  %s109_s16 = int_to_ptr.vmem [resolvable:$true] %s2398_s16 }
  0x45   :  { %116 = sst [smem:[#allocation13 + $0x2]] %s2293_s30  ;;  %s94_s19 = scalar_lea.hbm %s2728_s1, 16384 }
  0x46   :  { %118 = sst [smem:[#allocation13 + $0x3]] %s2294_s4  ;;  %s2302_s20 = smov [#allocation3 + $0x1]  }
  0x47   :  { %120 = sst [smem:[#allocation13 + $0x4]] %s2295_s6  ;;  %s2303_s21 = smov [#allocation12]  }
  0x48   :  { %122 = sst [smem:[#allocation13 + $0x5]] %s2296_s3 }
  0x49   :  { %124 = sst [smem:[#allocation13 + $0x6]] %s2297_s8 }
  0x4a   :  { %126 = sst [smem:[#allocation13 + $0x7]] %s2294_s4 }
  0x4b   :  { %128 = sst [smem:[#allocation13 + $0x8]] %s2293_s30 }
  0x4c   :  { %130 = dma.general %s94_s19, 16384, %s109_s16, %s2302_s20, %s2303_s21, [#allocation13], %s2382_s9, 0  }
  0x4d   :  { %2281 = dma.done.wait [#allocation3], 16384 }
  0x4e   :  { %2282 = vsyncadd [#allocation3], 4294950912  ;;  %v136_v5 = vpack.c.bf16 %v91_v2, %v91_v2  ;;  %608 = sst [smem:[#allocation15]] %s2292_s29  ;;  %v140_v6 = vld [vmem:[#allocation2 + $0x8] sm:$0xff]  ;;  %v142_v7 = vld [vmem:[#allocation2 + $0x18] sm:$0xff]  ;;  %s592_s25 = scalar_lea.hbm %s2728_s1, 32768 }
  0x4f   :  { %610 = sst [smem:[#allocation15 + $0x1]] %s2292_s29  ;;  %v139_v8 = vld [vmem:[#allocation2] sm:$0xff]  ;;  %267 = vmatprep.subr.bf16.mxu0 %v140_v6  ;;  %349 = vmatprep.subr.bf16.mxu1 %v142_v7  ;;  %v141_v9 = vld [vmem:[#allocation2 + $0x10] sm:$0xff]  ;;  %v144_v10 = vld [vmem:[#allocation2 + $0x28] sm:$0xff]  ;;  %s2304_s26 = smov [#allocation14]  }
  0x50   :  { %299 = vmatprep.mubr.bf16.mxu0 %v136_v5  ;;  %381 = vmatprep.mubr.bf16.mxu1 %v136_v5  ;;  %612 = sst [smem:[#allocation15 + $0x2]] %s2293_s30  ;;  %v146_v11 = vld [vmem:[#allocation2 + $0x38] sm:$0xff]  ;;  %v143_v12 = vld [vmem:[#allocation2 + $0x20] sm:$0xff]  ;;  %v145_v13 = vld [vmem:[#allocation2 + $0x30] sm:$0xff] }
  0x51   :  { %614 = sst [smem:[#allocation15 + $0x3]] %s2294_s4  ;;  %268 = vmatpush1.bf16.msra.mxu0 %v139_v8  ;;  %350 = vmatpush1.bf16.msra.mxu1 %v141_v9  ;;  %v148_v14 = vld [vmem:[#allocation2 + $0x48] sm:$0xff]  ;;  %v150_v15 = vld [vmem:[#allocation2 + $0x58] sm:$0xff]  ;;  %v147_v16 = vld [vmem:[#allocation2 + $0x40] sm:$0xff] }
  0x52   :  { %616 = sst [smem:[#allocation15 + $0x4]] %s2295_s6  ;;  %269 = vmatprep.subr.bf16.mxu0 %v144_v10  ;;  %351 = vmatprep.subr.bf16.mxu1 %v146_v11  ;;  %v149_v17 = vld [vmem:[#allocation2 + $0x50] sm:$0xff]  ;;  %v152_v18 = vld [vmem:[#allocation2 + $0x68] sm:$0xff]  ;;  %v154_v19 = vld [vmem:[#allocation2 + $0x78] sm:$0xff]  ;;  %v135_v11 = vpack.c.bf16 %v2409_v1, %v2409_v1 }
  0x53   :  { %618 = sst [smem:[#allocation15 + $0x5]] %s2296_s3  ;;  %v151_v20 = vld [vmem:[#allocation2 + $0x60] sm:$0xff]  ;;  %v153_v21 = vld [vmem:[#allocation2 + $0x70] sm:$0xff]  ;;  %v156_v22 = vld [vmem:[#allocation2 + $0x88] sm:$0xff] }
  0x54   :  { %620 = sst [smem:[#allocation15 + $0x6]] %s2297_s8  ;;  %v158_v23 = vld [vmem:[#allocation2 + $0x98] sm:$0xff]  ;;  %v155_v24 = vld [vmem:[#allocation2 + $0x80] sm:$0xff]  ;;  %v157_v25 = vld [vmem:[#allocation2 + $0x90] sm:$0xff] }
  0x55   :  { %622 = sst [smem:[#allocation15 + $0x7]] %s2294_s4  ;;  %270 = vmatpush1.bf16.msra.mxu0 %v143_v12  ;;  %352 = vmatpush1.bf16.msra.mxu1 %v145_v13  ;;  %v160_v26 = vld [vmem:[#allocation2 + $0xa8] sm:$0xff]  ;;  %v162_v27 = vld [vmem:[#allocation2 + $0xb8] sm:$0xff]  ;;  %v159_v28 = vld [vmem:[#allocation2 + $0xa0] sm:$0xff] }
  0x56   :  { %624 = sst [smem:[#allocation15 + $0x8]] %s2293_s30  ;;  %271 = vmatprep.subr.bf16.mxu0 %v148_v14  ;;  %353 = vmatprep.subr.bf16.mxu1 %v150_v15  ;;  %v161_v29 = vld [vmem:[#allocation2 + $0xb0] sm:$0xff]  ;;  %v164_v30 = vld [vmem:[#allocation2 + $0xc8] sm:$0xff]  ;;  %v166_v31 = vld [vmem:[#allocation2 + $0xd8] sm:$0xff] }
  0x57   :  { %v163_v32 = vld [vmem:[#allocation2 + $0xc0] sm:$0xff]  ;;  %v165_v33 = vld [vmem:[#allocation2 + $0xd0] sm:$0xff]  ;;  %v168_v34 = vld [vmem:[#allocation2 + $0xe8] sm:$0xff] }
  0x58   :  { %v170_v35 = vld [vmem:[#allocation2 + $0xf8] sm:$0xff]  ;;  %v167_v36 = vld [vmem:[#allocation2 + $0xe0] sm:$0xff]  ;;  %v169_v37 = vld [vmem:[#allocation2 + $0xf0] sm:$0xff] }
  0x59   :  { %272 = vmatpush1.bf16.msra.mxu0 %v147_v16  ;;  %354 = vmatpush1.bf16.msra.mxu1 %v149_v17  ;;  %v172_v38 = vld [vmem:[#allocation2 + $0x108] sm:$0xff]  ;;  %v174_v39 = vld [vmem:[#allocation2 + $0x118] sm:$0xff]  ;;  %v171_v40 = vld [vmem:[#allocation2 + $0x100] sm:$0xff]  ;;  %v138_v16 = vpack.c.bf16 %v2414_v4, %v2414_v4 }
  0x5a   :  { %273 = vmatprep.subr.bf16.mxu0 %v152_v18  ;;  %355 = vmatprep.subr.bf16.mxu1 %v154_v19  ;;  %v173_v41 = vld [vmem:[#allocation2 + $0x110] sm:$0xff]  ;;  %v176_v42 = vld [vmem:[#allocation2 + $0x128] sm:$0xff]  ;;  %v178_v43 = vld [vmem:[#allocation2 + $0x138] sm:$0xff] }
  0x5b   :  { %v175_v44 = vld [vmem:[#allocation2 + $0x120] sm:$0xff]  ;;  %v177_v45 = vld [vmem:[#allocation2 + $0x130] sm:$0xff]  ;;  %v180_v46 = vld [vmem:[#allocation2 + $0x148] sm:$0xff] }
  0x5c   :  { %v182_v47 = vld [vmem:[#allocation2 + $0x158] sm:$0xff]  ;;  %v179_v48 = vld [vmem:[#allocation2 + $0x140] sm:$0xff]  ;;  %v181_v49 = vld [vmem:[#allocation2 + $0x150] sm:$0xff] }
  0x5d   :  { %274 = vmatpush1.bf16.msra.mxu0 %v151_v20  ;;  %356 = vmatpush1.bf16.msra.mxu1 %v153_v21  ;;  %v184_v50 = vld [vmem:[#allocation2 + $0x168] sm:$0xff]  ;;  %v186_v51 = vld [vmem:[#allocation2 + $0x178] sm:$0xff]  ;;  %v183_v52 = vld [vmem:[#allocation2 + $0x160] sm:$0xff] }
  0x5e   :  { %275 = vmatprep.subr.bf16.mxu0 %v156_v22  ;;  %357 = vmatprep.subr.bf16.mxu1 %v158_v23  ;;  %v185_v53 = vld [vmem:[#allocation2 + $0x170] sm:$0xff]  ;;  %v188_v54 = vld [vmem:[#allocation2 + $0x188] sm:$0xff]  ;;  %v190_v55 = vld [vmem:[#allocation2 + $0x198] sm:$0xff] }
  0x5f   :  { %v187_v56 = vld [vmem:[#allocation2 + $0x180] sm:$0xff]  ;;  %v189_v57 = vld [vmem:[#allocation2 + $0x190] sm:$0xff]  ;;  %v192_v58 = vld [vmem:[#allocation2 + $0x1a8] sm:$0xff] }
  0x60   :  { %v194_v59 = vld [vmem:[#allocation2 + $0x1b8] sm:$0xff]  ;;  %v191_v60 = vld [vmem:[#allocation2 + $0x1a0] sm:$0xff]  ;;  %v193_v61 = vld [vmem:[#allocation2 + $0x1b0] sm:$0xff] }
  0x61   :  { %276 = vmatpush1.bf16.msra.mxu0 %v155_v24  ;;  %358 = vmatpush1.bf16.msra.mxu1 %v157_v25  ;;  %v196_v62 = vld [vmem:[#allocation2 + $0x1c8] sm:$0xff]  ;;  %v198_v63 = vld [vmem:[#allocation2 + $0x1d8] sm:$0xff]  ;;  %v195_v0 = vld [vmem:[#allocation2 + $0x1c0] sm:$0xff] }
  0x62   :  { %277 = vmatprep.subr.bf16.mxu0 %v160_v26  ;;  %359 = vmatprep.subr.bf16.mxu1 %v162_v27  ;;  %v197_v2 = vld [vmem:[#allocation2 + $0x1d0] sm:$0xff]  ;;  %v200_v5 = vld [vmem:[#allocation2 + $0x1e8] sm:$0xff]  ;;  %v202_v6 = vld [vmem:[#allocation2 + $0x1f8] sm:$0xff] }
  0x63   :  { %v199_v7 = vld [vmem:[#allocation2 + $0x1e0] sm:$0xff]  ;;  %v201_v8 = vld [vmem:[#allocation2 + $0x1f0] sm:$0xff]  ;;  %v204_v9 = vld [vmem:[#allocation2 + $0x208] sm:$0xff] }
  0x64   :  { %v206_v10 = vld [vmem:[#allocation2 + $0x218] sm:$0xff]  ;;  %v203_v12 = vld [vmem:[#allocation2 + $0x200] sm:$0xff]  ;;  %v205_v13 = vld [vmem:[#allocation2 + $0x210] sm:$0xff] }
  0x65   :  { %278 = vmatpush1.bf16.msra.mxu0 %v159_v28  ;;  %360 = vmatpush1.bf16.msra.mxu1 %v161_v29  ;;  %v208_v14 = vld [vmem:[#allocation2 + $0x228] sm:$0xff]  ;;  %v210_v15 = vld [vmem:[#allocation2 + $0x238] sm:$0xff]  ;;  %v207_v17 = vld [vmem:[#allocation2 + $0x220] sm:$0xff] }
  0x66   :  { %279 = vmatprep.subr.bf16.mxu0 %v164_v30  ;;  %361 = vmatprep.subr.bf16.mxu1 %v166_v31  ;;  %v209_v18 = vld [vmem:[#allocation2 + $0x230] sm:$0xff]  ;;  %v212_v1 = vld [vmem:[#allocation2 + $0x248] sm:$0xff]  ;;  %v214_v19 = vld [vmem:[#allocation2 + $0x258] sm:$0xff] }
  0x67   :  { %v211_v20 = vld [vmem:[#allocation2 + $0x240] sm:$0xff]  ;;  %v213_v21 = vld [vmem:[#allocation2 + $0x250] sm:$0xff]  ;;  %v216_v22 = vld [vmem:[#allocation2 + $0x268] sm:$0xff] }
  0x68   :  { %v218_v4 = vld [vmem:[#allocation2 + $0x278] sm:$0xff]  ;;  %v215_v23 = vld [vmem:[#allocation2 + $0x260] sm:$0xff]  ;;  %v217_v24 = vld [vmem:[#allocation2 + $0x270] sm:$0xff] }
  0x69   :  { %280 = vmatpush1.bf16.msra.mxu0 %v163_v32  ;;  %362 = vmatpush1.bf16.msra.mxu1 %v165_v33  ;;  %v220_v25 = vld [vmem:[#allocation2 + $0x288] sm:$0xff]  ;;  %v222_v26 = vld [vmem:[#allocation2 + $0x298] sm:$0xff]  ;;  %v219_v27 = vld [vmem:[#allocation2 + $0x280] sm:$0xff] }
  0x6a   :  { %281 = vmatprep.subr.bf16.mxu0 %v168_v34  ;;  %363 = vmatprep.subr.bf16.mxu1 %v170_v35  ;;  %v221_v28 = vld [vmem:[#allocation2 + $0x290] sm:$0xff]  ;;  %v224_v29 = vld [vmem:[#allocation2 + $0x2a8] sm:$0xff]  ;;  %v226_v30 = vld [vmem:[#allocation2 + $0x2b8] sm:$0xff] }
  0x6b   :  { %v223_v31 = vld [vmem:[#allocation2 + $0x2a0] sm:$0xff]  ;;  %v225_v32 = vld [vmem:[#allocation2 + $0x2b0] sm:$0xff]  ;;  %v228_v33 = vld [vmem:[#allocation2 + $0x2c8] sm:$0xff] }
  0x6c   :  { %v230_v34 = vld [vmem:[#allocation2 + $0x2d8] sm:$0xff]  ;;  %v227_v35 = vld [vmem:[#allocation2 + $0x2c0] sm:$0xff] }
  0x6d   :  { %282 = vmatpush1.bf16.msra.mxu0 %v167_v36  ;;  %364 = vmatpush1.bf16.msra.mxu1 %v169_v37  ;;  %v229_v36 = vld [vmem:[#allocation2 + $0x2d0] sm:$0xff]  ;;  %v232_v37 = vld [vmem:[#allocation2 + $0x2e8] sm:$0xff] }
  0x6e   :  { %283 = vmatprep.subr.bf16.mxu0 %v172_v38  ;;  %365 = vmatprep.subr.bf16.mxu1 %v174_v39  ;;  %v234_v38 = vld [vmem:[#allocation2 + $0x2f8] sm:$0xff]  ;;  %v231_v39 = vld [vmem:[#allocation2 + $0x2e0] sm:$0xff] }
  0x71   :  { %284 = vmatpush1.bf16.msra.mxu0 %v171_v40  ;;  %366 = vmatpush1.bf16.msra.mxu1 %v173_v41  ;;  %v233_v40 = vld [vmem:[#allocation2 + $0x2f0] sm:$0xff]  ;;  %v236_v41 = vld [vmem:[#allocation2 + $0x308] sm:$0xff] }
  0x72   :  { %285 = vmatprep.subr.bf16.mxu0 %v176_v42  ;;  %367 = vmatprep.subr.bf16.mxu1 %v178_v43  ;;  %v238_v42 = vld [vmem:[#allocation2 + $0x318] sm:$0xff]  ;;  %v235_v43 = vld [vmem:[#allocation2 + $0x300] sm:$0xff] }
  0x75   :  { %286 = vmatpush1.bf16.msra.mxu0 %v175_v44  ;;  %368 = vmatpush1.bf16.msra.mxu1 %v177_v45  ;;  %v237_v44 = vld [vmem:[#allocation2 + $0x310] sm:$0xff]  ;;  %v240_v45 = vld [vmem:[#allocation2 + $0x328] sm:$0xff] }
  0x76   :  { %287 = vmatprep.subr.bf16.mxu0 %v180_v46  ;;  %369 = vmatprep.subr.bf16.mxu1 %v182_v47  ;;  %v242_v46 = vld [vmem:[#allocation2 + $0x338] sm:$0xff]  ;;  %v239_v47 = vld [vmem:[#allocation2 + $0x320] sm:$0xff] }
  0x79   :  { %288 = vmatpush1.bf16.msra.mxu0 %v179_v48  ;;  %370 = vmatpush1.bf16.msra.mxu1 %v181_v49  ;;  %v241_v48 = vld [vmem:[#allocation2 + $0x330] sm:$0xff]  ;;  %v244_v49 = vld [vmem:[#allocation2 + $0x348] sm:$0xff] }
  0x7a   :  { %289 = vmatprep.subr.bf16.mxu0 %v184_v50  ;;  %371 = vmatprep.subr.bf16.mxu1 %v186_v51  ;;  %v246_v50 = vld [vmem:[#allocation2 + $0x358] sm:$0xff]  ;;  %v243_v51 = vld [vmem:[#allocation2 + $0x340] sm:$0xff] }
  0x7d   :  { %290 = vmatpush1.bf16.msra.mxu0 %v183_v52  ;;  %372 = vmatpush1.bf16.msra.mxu1 %v185_v53  ;;  %v245_v52 = vld [vmem:[#allocation2 + $0x350] sm:$0xff]  ;;  %v248_v53 = vld [vmem:[#allocation2 + $0x368] sm:$0xff] }
  0x7e   :  { %291 = vmatprep.subr.bf16.mxu0 %v188_v54  ;;  %373 = vmatprep.subr.bf16.mxu1 %v190_v55  ;;  %v250_v54 = vld [vmem:[#allocation2 + $0x378] sm:$0xff]  ;;  %v247_v55 = vld [vmem:[#allocation2 + $0x360] sm:$0xff] }
  0x81   :  { %292 = vmatpush1.bf16.msra.mxu0 %v187_v56  ;;  %374 = vmatpush1.bf16.msra.mxu1 %v189_v57  ;;  %v249_v56 = vld [vmem:[#allocation2 + $0x370] sm:$0xff]  ;;  %v252_v57 = vld [vmem:[#allocation2 + $0x388] sm:$0xff] }
  0x82   :  { %293 = vmatprep.subr.bf16.mxu0 %v192_v58  ;;  %375 = vmatprep.subr.bf16.mxu1 %v194_v59  ;;  %v254_v58 = vld [vmem:[#allocation2 + $0x398] sm:$0xff]  ;;  %v251_v59 = vld [vmem:[#allocation2 + $0x380] sm:$0xff] }
  0x85   :  { %294 = vmatpush1.bf16.msra.mxu0 %v191_v60  ;;  %376 = vmatpush1.bf16.msra.mxu1 %v193_v61  ;;  %v253_v60 = vld [vmem:[#allocation2 + $0x390] sm:$0xff]  ;;  %v256_v61 = vld [vmem:[#allocation2 + $0x3a8] sm:$0xff] }
  0x86   :  { %295 = vmatprep.subr.bf16.mxu0 %v196_v62  ;;  %377 = vmatprep.subr.bf16.mxu1 %v198_v63  ;;  %v258_v62 = vld [vmem:[#allocation2 + $0x3b8] sm:$0xff]  ;;  %v255_v63 = vld [vmem:[#allocation2 + $0x3a0] sm:$0xff] }
  0x89   :  { %296 = vmatpush1.bf16.msra.mxu0 %v195_v0  ;;  %378 = vmatpush1.bf16.msra.mxu1 %v197_v2  ;;  %v257_v0 = vld [vmem:[#allocation2 + $0x3b0] sm:$0xff]  ;;  %v260_v2 = vld [vmem:[#allocation2 + $0x3c8] sm:$0xff] }
  0x8a   :  { %297 = vmatprep.subr.bf16.mxu0 %v200_v5  ;;  %379 = vmatprep.subr.bf16.mxu1 %v202_v6  ;;  %v262_v5 = vld [vmem:[#allocation2 + $0x3d8] sm:$0xff]  ;;  %v259_v6 = vld [vmem:[#allocation2 + $0x3c0] sm:$0xff] }
  0x8d   :  { %298 = vmatpush1.bf16.msra.mxu0 %v199_v7  ;;  %380 = vmatpush1.bf16.msra.mxu1 %v201_v8  ;;  %v261_v7 = vld [vmem:[#allocation2 + $0x3d0] sm:$0xff]  ;;  %v264_v8 = vld [vmem:[#allocation2 + $0x3e8] sm:$0xff] }
  0x8e   :  { %308 = vmatprep.subr.bf16.mxu0 %v204_v9  ;;  %390 = vmatprep.subr.bf16.mxu1 %v206_v10  ;;  %v266_v9 = vld [vmem:[#allocation2 + $0x3f8] sm:$0xff]  ;;  %v263_v10 = vld [vmem:[#allocation2 + $0x3e0] sm:$0xff] }
  0x90   :  { %300 = vmatmul.mubr.bf16.vlgmr.msra.gmra.mrb[0].mxu0 %v135_v11  ;;  %382 = vmatmul.mubr.bf16.vlgmr.msra.gmra.mrb[0].mxu1 %v135_v11  ;;  %v265_v11 = vld [vmem:[#allocation2 + $0x3f0] sm:$0xff] }
  0x91   :  { %309 = vmatpush1.bf16.msra.mxu0 %v203_v12  ;;  %391 = vmatpush1.bf16.msra.mxu1 %v205_v13  ;;  %v137_v12 = vpack.c.bf16 %v2411_v3, %v2411_v3  ;;  %v2436_v13 = vld [vmem:[#allocation7] ss:$8 sm:$0xf] }
  0x92   :  { %310 = vmatprep.subr.bf16.mxu0 %v208_v14  ;;  %392 = vmatprep.subr.bf16.mxu1 %v210_v15  ;;  %v2438_v14 = vld [vmem:[#allocation7 + $0x4] ss:$8 sm:$0xf] }
  0x93   :  { %340 = vmatprep.mubr.bf16.mxu0 %v138_v16  ;;  %422 = vmatprep.mubr.bf16.mxu1 %v138_v16  ;;  %626 = dma.general %s592_s25, 16384, %s68_s11, %s2299_s12, %s2304_s26, [#allocation15], %s2382_s9, 0  }
  0x95   :  { %311 = vmatpush1.bf16.msra.mxu0 %v207_v17  ;;  %393 = vmatpush1.bf16.msra.mxu1 %v209_v18 }
  0x96   :  { %312 = vmatprep.subr.bf16.mxu0 %v212_v1  ;;  %394 = vmatprep.subr.bf16.mxu1 %v214_v19 }
  0x99   :  { %313 = vmatpush1.bf16.msra.mxu0 %v211_v20  ;;  %395 = vmatpush1.bf16.msra.mxu1 %v213_v21 }
  0x9a   :  { %314 = vmatprep.subr.bf16.mxu0 %v216_v22  ;;  %396 = vmatprep.subr.bf16.mxu1 %v218_v4 }
  0x9d   :  { %315 = vmatpush1.bf16.msra.mxu0 %v215_v23  ;;  %397 = vmatpush1.bf16.msra.mxu1 %v217_v24 }
  0x9e   :  { %316 = vmatprep.subr.bf16.mxu0 %v220_v25  ;;  %398 = vmatprep.subr.bf16.mxu1 %v222_v26 }
  0xa1   :  { %317 = vmatpush1.bf16.msra.mxu0 %v219_v27  ;;  %399 = vmatpush1.bf16.msra.mxu1 %v221_v28 }
  0xa2   :  { %318 = vmatprep.subr.bf16.mxu0 %v224_v29  ;;  %400 = vmatprep.subr.bf16.mxu1 %v226_v30 }
  0xa5   :  { %319 = vmatpush1.bf16.msra.mxu0 %v223_v31  ;;  %401 = vmatpush1.bf16.msra.mxu1 %v225_v32 }
  0xa6   :  { %320 = vmatprep.subr.bf16.mxu0 %v228_v33  ;;  %402 = vmatprep.subr.bf16.mxu1 %v230_v34 }
  0xa9   :  { %321 = vmatpush1.bf16.msra.mxu0 %v227_v35  ;;  %403 = vmatpush1.bf16.msra.mxu1 %v229_v36 }
  0xaa   :  { %322 = vmatprep.subr.bf16.mxu0 %v232_v37  ;;  %404 = vmatprep.subr.bf16.mxu1 %v234_v38 }
  0xad   :  { %323 = vmatpush1.bf16.msra.mxu0 %v231_v39  ;;  %405 = vmatpush1.bf16.msra.mxu1 %v233_v40 }
  0xae   :  { %324 = vmatprep.subr.bf16.mxu0 %v236_v41  ;;  %406 = vmatprep.subr.bf16.mxu1 %v238_v42 }
  0xb1   :  { %325 = vmatpush1.bf16.msra.mxu0 %v235_v43  ;;  %407 = vmatpush1.bf16.msra.mxu1 %v237_v44 }
  0xb2   :  { %326 = vmatprep.subr.bf16.mxu0 %v240_v45  ;;  %408 = vmatprep.subr.bf16.mxu1 %v242_v46 }
  0xb5   :  { %327 = vmatpush1.bf16.msra.mxu0 %v239_v47  ;;  %409 = vmatpush1.bf16.msra.mxu1 %v241_v48 }
  0xb6   :  { %328 = vmatprep.subr.bf16.mxu0 %v244_v49  ;;  %410 = vmatprep.subr.bf16.mxu1 %v246_v50 }
  0xb9   :  { %329 = vmatpush1.bf16.msra.mxu0 %v243_v51  ;;  %411 = vmatpush1.bf16.msra.mxu1 %v245_v52 }
  0xba   :  { %330 = vmatprep.subr.bf16.mxu0 %v248_v53  ;;  %412 = vmatprep.subr.bf16.mxu1 %v250_v54 }
  0xbd   :  { %331 = vmatpush1.bf16.msra.mxu0 %v247_v55  ;;  %413 = vmatpush1.bf16.msra.mxu1 %v249_v56 }
  0xbe   :  { %332 = vmatprep.subr.bf16.mxu0 %v252_v57  ;;  %414 = vmatprep.subr.bf16.mxu1 %v254_v58 }
  0xc1   :  { %333 = vmatpush1.bf16.msra.mxu0 %v251_v59  ;;  %415 = vmatpush1.bf16.msra.mxu1 %v253_v60 }
  0xc2   :  { %334 = vmatprep.subr.bf16.mxu0 %v256_v61  ;;  %416 = vmatprep.subr.bf16.mxu1 %v258_v62 }
  0xc5   :  { %335 = vmatpush1.bf16.msra.mxu0 %v255_v63  ;;  %417 = vmatpush1.bf16.msra.mxu1 %v257_v0 }
  0xc6   :  { %336 = vmatprep.subr.bf16.mxu0 %v260_v2  ;;  %418 = vmatprep.subr.bf16.mxu1 %v262_v5 }
  0xc9   :  { %337 = vmatpush1.bf16.msra.mxu0 %v259_v6  ;;  %419 = vmatpush1.bf16.msra.mxu1 %v261_v7 }
  0xca   :  { %338 = vmatprep.subr.bf16.mxu0 %v264_v8  ;;  %420 = vmatprep.subr.bf16.mxu1 %v266_v9 }
  0xcd   :  { %339 = vmatpush1.bf16.msra.mxu0 %v263_v10  ;;  %421 = vmatpush1.bf16.msra.mxu1 %v265_v11 }
  0xd0   :  { %341 = vmatmul.mubr.bf16.vlgmr.msra.gmra.mrb[0].mxu0 %v137_v12  ;;  %423 = vmatmul.mubr.bf16.vlgmr.msra.gmra.mrb[0].mxu1 %v137_v12 }
 0x1a3   :  { %v2447_v15 = vpop.f32.mrb[0].mxu0  ;;  %v2449_v16 = vpop.f32.mrb[0].mxu1 }
 0x1a4   :  { %v431_v3 = vrot.slane %v2447_v15, 4  ;;  %v455_v17 = vmul.f32 %v2447_v15, %v2447_v15  ;;  %v443_v18 = vrot.slane %v2449_v16, 4  ;;  %v457_v1 = vmul.f32 %v2449_v16, %v2449_v16  ;;  %v2457_v19 = vpop.f32.mrb[1].mxu0  ;;  %v2459_v20 = vpop.f32.mrb[1].mxu1 }
 0x1a5   :  { %v437_v21 = vrot.slane %v2457_v19, 4  ;;  %v456_v22 = vmul.f32 %v2457_v19, %v2457_v19  ;;  %v449_v4 = vrot.slane %v2459_v20, 4  ;;  %v458_v23 = vmul.f32 %v2459_v20, %v2459_v20  ;;  %v346_v24 = vpop.f32.mrb[2].mxu0  ;;  %v428_v25 = vpop.f32.mrb[2].mxu1 }
 0x1a6   :  { %v432_v26 = vadd.f32 %v431_v3, %v2447_v15  ;;  %v459_v27 = vrot.slane %v455_v17, 4  ;;  %v444_v28 = vadd.f32 %v443_v18, %v2449_v16  ;;  %v471_v29 = vrot.slane %v457_v1, 4  ;;  %v347_v30 = vpop.f32.mrb[3].mxu0  ;;  %v429_v31 = vpop.f32.mrb[3].mxu1 }
 0x1a7   :  { %v438_v32 = vadd.f32 %v437_v21, %v2457_v19  ;;  %v465_v33 = vrot.slane %v456_v22, 4  ;;  %v450_v34 = vadd.f32 %v449_v4, %v2459_v20  ;;  %v477_v35 = vrot.slane %v458_v23, 4 }
 0x1a8   :  { %v433_v36 = vrot.slane %v432_v26, 2  ;;  %v460_v37 = vadd.f32 %v459_v27, %v455_v17  ;;  %v445_v38 = vrot.slane %v444_v28, 2  ;;  %v472_v39 = vadd.f32 %v471_v29, %v457_v1 }
 0x1a9   :  { %v439_v40 = vrot.slane %v438_v32, 2  ;;  %v466_v41 = vadd.f32 %v465_v33, %v456_v22  ;;  %v451_v42 = vrot.slane %v450_v34, 2  ;;  %v478_v43 = vadd.f32 %v477_v35, %v458_v23 }
 0x1aa   :  { %v434_v44 = vadd.f32 %v433_v36, %v432_v26  ;;  %v461_v45 = vrot.slane %v460_v37, 2  ;;  %v446_v46 = vadd.f32 %v445_v38, %v444_v28  ;;  %v473_v47 = vrot.slane %v472_v39, 2 }
 0x1ab   :  { %v440_v48 = vadd.f32 %v439_v40, %v438_v32  ;;  %v467_v49 = vrot.slane %v466_v41, 2  ;;  %v452_v50 = vadd.f32 %v451_v42, %v450_v34  ;;  %v479_v51 = vrot.slane %v478_v43, 2 }
 0x1ac   :  { %v435_v52 = vrot.slane %v434_v44, 1  ;;  %v462_v53 = vadd.f32 %v461_v45, %v460_v37  ;;  %v447_v54 = vrot.slane %v446_v46, 1  ;;  %v474_v55 = vadd.f32 %v473_v47, %v472_v39 }
 0x1ad   :  { %v441_v56 = vrot.slane %v440_v48, 1  ;;  %v468_v57 = vadd.f32 %v467_v49, %v466_v41  ;;  %v453_v58 = vrot.slane %v452_v50, 1  ;;  %v480_v59 = vadd.f32 %v479_v51, %v478_v43 }
 0x1ae   :  { %v436_v60 = vadd.f32 %v435_v52, %v434_v44  ;;  %v463_v61 = vrot.slane %v462_v53, 1  ;;  %v448_v62 = vadd.f32 %v447_v54, %v446_v46  ;;  %v475_v63 = vrot.slane %v474_v55, 1 }
 0x1af   :  { %v442_v0 = vadd.f32 %v441_v56, %v440_v48  ;;  %v469_v2 = vrot.slane %v468_v57, 1  ;;  %v454_v5 = vadd.f32 %v453_v58, %v452_v50  ;;  %v481_v6 = vrot.slane %v480_v59, 1 }
 0x1b0   :  { %v464_v7 = vadd.f32 %v463_v61, %v462_v53  ;;  %v483_v8 = vmul.f32 0.125, %v436_v60  ;;  %v476_v9 = vadd.f32 %v475_v63, %v474_v55  ;;  %v485_v10 = vmul.f32 0.125, %v448_v62 }
 0x1b1   :  { %v470_v11 = vadd.f32 %v469_v2, %v468_v57  ;;  %v484_v12 = vmul.f32 0.125, %v442_v0  ;;  %v482_v3 = vadd.f32 %v481_v6, %v480_v59  ;;  %v486_v17 = vmul.f32 0.125, %v454_v5 }
 0x1b2   :  { %v487_v18 = vmul.f32 0.125, %v464_v7  ;;  %v491_v1 = vmul.f32 %v483_v8, %v483_v8  ;;  %v489_v21 = vmul.f32 0.125, %v476_v9  ;;  %v493_v22 = vmul.f32 %v485_v10, %v485_v10 }
 0x1b3   :  { %v488_v4 = vmul.f32 0.125, %v470_v11  ;;  %v492_v23 = vmul.f32 %v484_v12, %v484_v12  ;;  %v490_v25 = vmul.f32 0.125, %v482_v3  ;;  %v494_v26 = vmul.f32 %v486_v17, %v486_v17 }
 0x1b4   :  { %v495_v24 = vsub.f32 %v487_v18, %v491_v1  ;;  %v513_v27 = vlaneseq  ;;  %v497_v28 = vsub.f32 %v489_v21, %v493_v22  ;;  %v537_v54 = vsub.f32 %v2447_v15, %v483_v8 }
 0x1b5   :  { %v496_v29 = vsub.f32 %v488_v4, %v492_v23  ;;  %v498_v31 = vsub.f32 %v490_v25, %v494_v26  ;;  %v539_v58 = vsub.f32 %v2449_v16, %v485_v10  ;;  %v538_v62 = vsub.f32 %v2457_v19, %v484_v12 }
 0x1b6   :  { %v499_v30 = vmax.f32 %v495_v24, 0.0  ;;  %v501_v32 = vmax.f32 %v497_v28, 0.0  ;;  %v2471_v36 = vshrl.u32 %v513_v27, 7  ;;  %v540_v2 = vsub.f32 %v2459_v20, %v486_v17 }
 0x1b7   :  { %v500_v33 = vmax.f32 %v496_v29, 0.0  ;;  %v502_v35 = vmax.f32 %v498_v31, 0.0 }
 0x1b8   :  { %v503_v34 = vadd.f32 1e-05, %v499_v30  ;;  %v505_v37 = vadd.f32 1e-05, %v501_v32  ;;  %v2474_v40 = vsub.s32 0, %v2471_v36  ;;  %v2477_v41 = vsub.s32 2, %v2471_v36 }
 0x1b9   :  { %v504_v38 = vadd.f32 1e-05, %v500_v33  ;;  %v506_v39 = vadd.f32 1e-05, %v502_v35  ;;  %v2480_v42 = vsub.s32 1, %v2471_v36  ;;  %v2483_v43 = vsub.s32 3, %v2471_v36 }
 0x1ba   :  { %2179 = vrsqrt.f32 %v503_v34  ;;  %v516_v44 = vrot.slane %v2436_v13, %v2474_v40  ;;  %v524_v45 = vrot.slane %v2436_v13, %v2477_v41  ;;  %v567_v56 = vrot.slane %v2438_v14, %v2474_v40 }
 0x1bb   :  { %2181 = vrsqrt.f32 %v505_v37  ;;  %v520_v46 = vrot.slane %v2436_v13, %v2480_v42  ;;  %v528_v48 = vrot.slane %v2436_v13, %v2483_v43  ;;  %v575_v13 = vrot.slane %v2438_v14, %v2477_v41 }
 0x1bc   :  { %2183 = vrsqrt.f32 %v504_v38  ;;  %v571_v15 = vrot.slane %v2438_v14, %v2480_v42  ;;  %v579_v16 = vrot.slane %v2438_v14, %v2483_v43 }
 0x1bd   :  { %2185 = vrsqrt.f32 %v506_v39 }
 0x1c4   :  { %v2180_v47 = vpop.eup %2179 }
 0x1c5   :  { %v2182_v49 = vpop.eup %2181  ;;  %v533_v50 = vmul.f32 %v2180_v47, %v516_v44 }
 0x1c6   :  { %v2184_v51 = vpop.eup %2183  ;;  %v535_v52 = vmul.f32 %v2182_v49, %v524_v45 }
 0x1c7   :  { %v2186_v53 = vpop.eup %2185  ;;  %v544_v55 = vrot.slane %v533_v50, %v2474_v40  ;;  %v534_v57 = vmul.f32 %v2184_v51, %v520_v46 }
 0x1c8   :  { %v552_v59 = vrot.slane %v535_v52, %v2474_v40  ;;  %v536_v60 = vmul.f32 %v2186_v53, %v528_v48 }
 0x1c9   :  { %v557_v61 = vmul.f32 %v544_v55, %v537_v54  ;;  %v548_v63 = vrot.slane %v534_v57, %v2474_v40 }
 0x1ca   :  { %v559_v0 = vmul.f32 %v552_v59, %v539_v58  ;;  %v556_v5 = vrot.slane %v536_v60, %v2474_v40 }
 0x1cb   :  { %v2509_v6 = vadd.f32 %v567_v56, %v557_v61  ;;  %v558_v7 = vmul.f32 %v548_v63, %v538_v62 }
 0x1cc   :  { %v2511_v8 = vadd.f32 %v575_v13, %v559_v0  ;;  %v560_v9 = vmul.f32 %v556_v5, %v540_v2 }
 0x1cd   :  { %v588_v19 = vmax.f32 %v2509_v6, 0.0  ;;  %v585_v10 = vadd.f32 %v571_v15, %v558_v7 }
 0x1ce   :  { %v590_v11 = vmax.f32 %v2511_v8, 0.0  ;;  %v2515_v12 = vadd.f32 %v579_v16, %v560_v9 }
 0x1cf   :  { %v589_v3 = vmax.f32 %v585_v10, 0.0 }
 0x1d0   :  { %v591_v20 = vmax.f32 %v2515_v12, 0.0 }
 0x1d1   :  { %2283 = dma.done.wait [#allocation3 + $0x1], 16384 }
 0x1d2   :  { %2284 = vsyncadd [#allocation3 + $0x1], 4294950912  ;;  %v630_v17 = vpack.c.bf16 %v589_v3, %v589_v3  ;;  %1103 = sst [smem:[#allocation17]] %s2292_s29  ;;  %v634_v14 = vld [vmem:[#allocation2 + $0x408] sm:$0xff]  ;;  %v636_v18 = vld [vmem:[#allocation2 + $0x418] sm:$0xff]  ;;  %s1087_s23 = scalar_lea.hbm %s2728_s1, 49152 }
 0x1d3   :  { %1105 = sst [smem:[#allocation17 + $0x1]] %s2292_s29  ;;  %v633_v1 = vld [vmem:[#allocation2 + $0x400] sm:$0xff]  ;;  %761 = vmatprep.subr.bf16.mxu0 %v634_v14  ;;  %843 = vmatprep.subr.bf16.mxu1 %v636_v18  ;;  %v635_v21 = vld [vmem:[#allocation2 + $0x410] sm:$0xff]  ;;  %v638_v22 = vld [vmem:[#allocation2 + $0x428] sm:$0xff]  ;;  %s2305_s28 = smov [#allocation16]  }
 0x1d4   :  { %793 = vmatprep.mubr.bf16.mxu0 %v630_v17  ;;  %875 = vmatprep.mubr.bf16.mxu1 %v630_v17  ;;  %1107 = sst [smem:[#allocation17 + $0x2]] %s2293_s30  ;;  %v640_v4 = vld [vmem:[#allocation2 + $0x438] sm:$0xff]  ;;  %v637_v23 = vld [vmem:[#allocation2 + $0x420] sm:$0xff]  ;;  %v639_v24 = vld [vmem:[#allocation2 + $0x430] sm:$0xff] }
 0x1d5   :  { %1109 = sst [smem:[#allocation17 + $0x3]] %s2294_s4  ;;  %762 = vmatpush1.bf16.msra.mxu0 %v633_v1  ;;  %844 = vmatpush1.bf16.msra.mxu1 %v635_v21  ;;  %v642_v25 = vld [vmem:[#allocation2 + $0x448] sm:$0xff]  ;;  %v644_v26 = vld [vmem:[#allocation2 + $0x458] sm:$0xff]  ;;  %v641_v27 = vld [vmem:[#allocation2 + $0x440] sm:$0xff] }
 0x1d6   :  { %1111 = sst [smem:[#allocation17 + $0x4]] %s2295_s6  ;;  %763 = vmatprep.subr.bf16.mxu0 %v638_v22  ;;  %845 = vmatprep.subr.bf16.mxu1 %v640_v4  ;;  %v643_v28 = vld [vmem:[#allocation2 + $0x450] sm:$0xff]  ;;  %v646_v29 = vld [vmem:[#allocation2 + $0x468] sm:$0xff]  ;;  %v648_v30 = vld [vmem:[#allocation2 + $0x478] sm:$0xff] }
 0x1d7   :  { %1113 = sst [smem:[#allocation17 + $0x5]] %s2296_s3  ;;  %v645_v31 = vld [vmem:[#allocation2 + $0x460] sm:$0xff]  ;;  %v647_v32 = vld [vmem:[#allocation2 + $0x470] sm:$0xff]  ;;  %v650_v33 = vld [vmem:[#allocation2 + $0x488] sm:$0xff] }
 0x1d8   :  { %1115 = sst [smem:[#allocation17 + $0x6]] %s2297_s8  ;;  %v652_v34 = vld [vmem:[#allocation2 + $0x498] sm:$0xff]  ;;  %v649_v35 = vld [vmem:[#allocation2 + $0x480] sm:$0xff]  ;;  %v651_v37 = vld [vmem:[#allocation2 + $0x490] sm:$0xff] }
 0x1d9   :  { %1117 = sst [smem:[#allocation17 + $0x7]] %s2294_s4  ;;  %764 = vmatpush1.bf16.msra.mxu0 %v637_v23  ;;  %846 = vmatpush1.bf16.msra.mxu1 %v639_v24  ;;  %v654_v38 = vld [vmem:[#allocation2 + $0x4a8] sm:$0xff]  ;;  %v656_v39 = vld [vmem:[#allocation2 + $0x4b8] sm:$0xff]  ;;  %v653_v44 = vld [vmem:[#allocation2 + $0x4a0] sm:$0xff] }
 0x1da   :  { %1119 = sst [smem:[#allocation17 + $0x8]] %s2293_s30  ;;  %765 = vmatprep.subr.bf16.mxu0 %v642_v25  ;;  %847 = vmatprep.subr.bf16.mxu1 %v644_v26  ;;  %v655_v45 = vld [vmem:[#allocation2 + $0x4b0] sm:$0xff]  ;;  %v658_v46 = vld [vmem:[#allocation2 + $0x4c8] sm:$0xff]  ;;  %v660_v47 = vld [vmem:[#allocation2 + $0x4d8] sm:$0xff] }
 0x1db   :  { %v657_v48 = vld [vmem:[#allocation2 + $0x4c0] sm:$0xff]  ;;  %v659_v49 = vld [vmem:[#allocation2 + $0x4d0] sm:$0xff]  ;;  %v662_v50 = vld [vmem:[#allocation2 + $0x4e8] sm:$0xff] }
 0x1dc   :  { %v664_v51 = vld [vmem:[#allocation2 + $0x4f8] sm:$0xff]  ;;  %v661_v52 = vld [vmem:[#allocation2 + $0x4e0] sm:$0xff]  ;;  %v663_v53 = vld [vmem:[#allocation2 + $0x4f0] sm:$0xff] }
 0x1dd   :  { %766 = vmatpush1.bf16.msra.mxu0 %v641_v27  ;;  %848 = vmatpush1.bf16.msra.mxu1 %v643_v28  ;;  %v666_v54 = vld [vmem:[#allocation2 + $0x508] sm:$0xff]  ;;  %v668_v55 = vld [vmem:[#allocation2 + $0x518] sm:$0xff]  ;;  %v665_v56 = vld [vmem:[#allocation2 + $0x500] sm:$0xff] }
 0x1de   :  { %767 = vmatprep.subr.bf16.mxu0 %v646_v29  ;;  %849 = vmatprep.subr.bf16.mxu1 %v648_v30  ;;  %v667_v57 = vld [vmem:[#allocation2 + $0x510] sm:$0xff]  ;;  %v670_v58 = vld [vmem:[#allocation2 + $0x528] sm:$0xff]  ;;  %v672_v59 = vld [vmem:[#allocation2 + $0x538] sm:$0xff]  ;;  %v629_v30 = vpack.c.bf16 %v588_v19, %v588_v19 }
 0x1df   :  { %v669_v13 = vld [vmem:[#allocation2 + $0x520] sm:$0xff]  ;;  %v671_v60 = vld [vmem:[#allocation2 + $0x530] sm:$0xff]  ;;  %v674_v61 = vld [vmem:[#allocation2 + $0x548] sm:$0xff] }
 0x1e0   :  { %v676_v62 = vld [vmem:[#allocation2 + $0x558] sm:$0xff]  ;;  %v673_v63 = vld [vmem:[#allocation2 + $0x540] sm:$0xff]  ;;  %v675_v15 = vld [vmem:[#allocation2 + $0x550] sm:$0xff] }
 0x1e1   :  { %768 = vmatpush1.bf16.msra.mxu0 %v645_v31  ;;  %850 = vmatpush1.bf16.msra.mxu1 %v647_v32  ;;  %v678_v0 = vld [vmem:[#allocation2 + $0x568] sm:$0xff]  ;;  %v680_v2 = vld [vmem:[#allocation2 + $0x578] sm:$0xff]  ;;  %v677_v5 = vld [vmem:[#allocation2 + $0x560] sm:$0xff] }
 0x1e2   :  { %769 = vmatprep.subr.bf16.mxu0 %v650_v33  ;;  %851 = vmatprep.subr.bf16.mxu1 %v652_v34  ;;  %v679_v16 = vld [vmem:[#allocation2 + $0x570] sm:$0xff]  ;;  %v682_v7 = vld [vmem:[#allocation2 + $0x588] sm:$0xff]  ;;  %v684_v9 = vld [vmem:[#allocation2 + $0x598] sm:$0xff] }
 0x1e3   :  { %v681_v10 = vld [vmem:[#allocation2 + $0x580] sm:$0xff]  ;;  %v683_v3 = vld [vmem:[#allocation2 + $0x590] sm:$0xff]  ;;  %v686_v17 = vld [vmem:[#allocation2 + $0x5a8] sm:$0xff] }
 0x1e4   :  { %v688_v14 = vld [vmem:[#allocation2 + $0x5b8] sm:$0xff]  ;;  %v685_v18 = vld [vmem:[#allocation2 + $0x5a0] sm:$0xff]  ;;  %v687_v1 = vld [vmem:[#allocation2 + $0x5b0] sm:$0xff] }
 0x1e5   :  { %770 = vmatpush1.bf16.msra.mxu0 %v649_v35  ;;  %852 = vmatpush1.bf16.msra.mxu1 %v651_v37  ;;  %v690_v21 = vld [vmem:[#allocation2 + $0x5c8] sm:$0xff]  ;;  %v692_v22 = vld [vmem:[#allocation2 + $0x5d8] sm:$0xff]  ;;  %v689_v4 = vld [vmem:[#allocation2 + $0x5c0] sm:$0xff]  ;;  %v632_v35 = vpack.c.bf16 %v591_v20, %v591_v20 }
 0x1e6   :  { %771 = vmatprep.subr.bf16.mxu0 %v654_v38  ;;  %853 = vmatprep.subr.bf16.mxu1 %v656_v39  ;;  %v691_v23 = vld [vmem:[#allocation2 + $0x5d0] sm:$0xff]  ;;  %v694_v24 = vld [vmem:[#allocation2 + $0x5e8] sm:$0xff]  ;;  %v696_v25 = vld [vmem:[#allocation2 + $0x5f8] sm:$0xff] }
 0x1e7   :  { %v693_v26 = vld [vmem:[#allocation2 + $0x5e0] sm:$0xff]  ;;  %v695_v27 = vld [vmem:[#allocation2 + $0x5f0] sm:$0xff]  ;;  %v698_v28 = vld [vmem:[#allocation2 + $0x608] sm:$0xff] }
 0x1e8   :  { %v700_v29 = vld [vmem:[#allocation2 + $0x618] sm:$0xff]  ;;  %v697_v31 = vld [vmem:[#allocation2 + $0x600] sm:$0xff]  ;;  %v699_v32 = vld [vmem:[#allocation2 + $0x610] sm:$0xff] }
 0x1e9   :  { %772 = vmatpush1.bf16.msra.mxu0 %v653_v44  ;;  %854 = vmatpush1.bf16.msra.mxu1 %v655_v45  ;;  %v702_v33 = vld [vmem:[#allocation2 + $0x628] sm:$0xff]  ;;  %v704_v34 = vld [vmem:[#allocation2 + $0x638] sm:$0xff]  ;;  %v701_v6 = vld [vmem:[#allocation2 + $0x620] sm:$0xff] }
 0x1ea   :  { %773 = vmatprep.subr.bf16.mxu0 %v658_v46  ;;  %855 = vmatprep.subr.bf16.mxu1 %v660_v47  ;;  %v703_v19 = vld [vmem:[#allocation2 + $0x630] sm:$0xff]  ;;  %v706_v37 = vld [vmem:[#allocation2 + $0x648] sm:$0xff]  ;;  %v708_v38 = vld [vmem:[#allocation2 + $0x658] sm:$0xff] }
 0x1eb   :  { %v705_v39 = vld [vmem:[#allocation2 + $0x640] sm:$0xff]  ;;  %v707_v12 = vld [vmem:[#allocation2 + $0x650] sm:$0xff]  ;;  %v710_v44 = vld [vmem:[#allocation2 + $0x668] sm:$0xff] }
 0x1ec   :  { %v712_v20 = vld [vmem:[#allocation2 + $0x678] sm:$0xff]  ;;  %v709_v45 = vld [vmem:[#allocation2 + $0x660] sm:$0xff]  ;;  %v711_v46 = vld [vmem:[#allocation2 + $0x670] sm:$0xff] }
 0x1ed   :  { %774 = vmatpush1.bf16.msra.mxu0 %v657_v48  ;;  %856 = vmatpush1.bf16.msra.mxu1 %v659_v49  ;;  %v714_v47 = vld [vmem:[#allocation2 + $0x688] sm:$0xff]  ;;  %v716_v48 = vld [vmem:[#allocation2 + $0x698] sm:$0xff]  ;;  %v713_v49 = vld [vmem:[#allocation2 + $0x680] sm:$0xff] }
 0x1ee   :  { %775 = vmatprep.subr.bf16.mxu0 %v662_v50  ;;  %857 = vmatprep.subr.bf16.mxu1 %v664_v51  ;;  %v715_v50 = vld [vmem:[#allocation2 + $0x690] sm:$0xff]  ;;  %v718_v51 = vld [vmem:[#allocation2 + $0x6a8] sm:$0xff] }
 0x1f1   :  { %776 = vmatpush1.bf16.msra.mxu0 %v661_v52  ;;  %858 = vmatpush1.bf16.msra.mxu1 %v663_v53  ;;  %v720_v52 = vld [vmem:[#allocation2 + $0x6b8] sm:$0xff]  ;;  %v717_v53 = vld [vmem:[#allocation2 + $0x6a0] sm:$0xff] }
 0x1f2   :  { %777 = vmatprep.subr.bf16.mxu0 %v666_v54  ;;  %859 = vmatprep.subr.bf16.mxu1 %v668_v55  ;;  %v719_v54 = vld [vmem:[#allocation2 + $0x6b0] sm:$0xff]  ;;  %v722_v55 = vld [vmem:[#allocation2 + $0x6c8] sm:$0xff] }
 0x1f5   :  { %778 = vmatpush1.bf16.msra.mxu0 %v665_v56  ;;  %860 = vmatpush1.bf16.msra.mxu1 %v667_v57  ;;  %v724_v56 = vld [vmem:[#allocation2 + $0x6d8] sm:$0xff]  ;;  %v721_v57 = vld [vmem:[#allocation2 + $0x6c0] sm:$0xff] }
 0x1f6   :  { %779 = vmatprep.subr.bf16.mxu0 %v670_v58  ;;  %861 = vmatprep.subr.bf16.mxu1 %v672_v59  ;;  %v723_v58 = vld [vmem:[#allocation2 + $0x6d0] sm:$0xff]  ;;  %v726_v59 = vld [vmem:[#allocation2 + $0x6e8] sm:$0xff] }
 0x1f9   :  { %780 = vmatpush1.bf16.msra.mxu0 %v669_v13  ;;  %862 = vmatpush1.bf16.msra.mxu1 %v671_v60  ;;  %v728_v13 = vld [vmem:[#allocation2 + $0x6f8] sm:$0xff]  ;;  %v725_v60 = vld [vmem:[#allocation2 + $0x6e0] sm:$0xff] }
 0x1fa   :  { %781 = vmatprep.subr.bf16.mxu0 %v674_v61  ;;  %863 = vmatprep.subr.bf16.mxu1 %v676_v62  ;;  %v727_v61 = vld [vmem:[#allocation2 + $0x6f0] sm:$0xff]  ;;  %v730_v62 = vld [vmem:[#allocation2 + $0x708] sm:$0xff] }
 0x1fd   :  { %782 = vmatpush1.bf16.msra.mxu0 %v673_v63  ;;  %864 = vmatpush1.bf16.msra.mxu1 %v675_v15  ;;  %v732_v63 = vld [vmem:[#allocation2 + $0x718] sm:$0xff]  ;;  %v729_v15 = vld [vmem:[#allocation2 + $0x700] sm:$0xff] }
 0x1fe   :  { %783 = vmatprep.subr.bf16.mxu0 %v678_v0  ;;  %865 = vmatprep.subr.bf16.mxu1 %v680_v2  ;;  %v731_v0 = vld [vmem:[#allocation2 + $0x710] sm:$0xff]  ;;  %v734_v2 = vld [vmem:[#allocation2 + $0x728] sm:$0xff] }
 0x201   :  { %784 = vmatpush1.bf16.msra.mxu0 %v677_v5  ;;  %866 = vmatpush1.bf16.msra.mxu1 %v679_v16  ;;  %v736_v5 = vld [vmem:[#allocation2 + $0x738] sm:$0xff]  ;;  %v733_v16 = vld [vmem:[#allocation2 + $0x720] sm:$0xff] }
 0x202   :  { %785 = vmatprep.subr.bf16.mxu0 %v682_v7  ;;  %867 = vmatprep.subr.bf16.mxu1 %v684_v9  ;;  %v735_v7 = vld [vmem:[#allocation2 + $0x730] sm:$0xff]  ;;  %v738_v9 = vld [vmem:[#allocation2 + $0x748] sm:$0xff] }
 0x205   :  { %786 = vmatpush1.bf16.msra.mxu0 %v681_v10  ;;  %868 = vmatpush1.bf16.msra.mxu1 %v683_v3  ;;  %v740_v10 = vld [vmem:[#allocation2 + $0x758] sm:$0xff]  ;;  %v737_v3 = vld [vmem:[#allocation2 + $0x740] sm:$0xff] }
 0x206   :  { %787 = vmatprep.subr.bf16.mxu0 %v686_v17  ;;  %869 = vmatprep.subr.bf16.mxu1 %v688_v14  ;;  %v739_v17 = vld [vmem:[#allocation2 + $0x750] sm:$0xff]  ;;  %v742_v14 = vld [vmem:[#allocation2 + $0x768] sm:$0xff] }
 0x209   :  { %788 = vmatpush1.bf16.msra.mxu0 %v685_v18  ;;  %870 = vmatpush1.bf16.msra.mxu1 %v687_v1  ;;  %v744_v18 = vld [vmem:[#allocation2 + $0x778] sm:$0xff]  ;;  %v741_v1 = vld [vmem:[#allocation2 + $0x760] sm:$0xff] }
 0x20a   :  { %789 = vmatprep.subr.bf16.mxu0 %v690_v21  ;;  %871 = vmatprep.subr.bf16.mxu1 %v692_v22  ;;  %v743_v21 = vld [vmem:[#allocation2 + $0x770] sm:$0xff]  ;;  %v746_v22 = vld [vmem:[#allocation2 + $0x788] sm:$0xff] }
 0x20d   :  { %790 = vmatpush1.bf16.msra.mxu0 %v689_v4  ;;  %872 = vmatpush1.bf16.msra.mxu1 %v691_v23  ;;  %v748_v4 = vld [vmem:[#allocation2 + $0x798] sm:$0xff]  ;;  %v745_v23 = vld [vmem:[#allocation2 + $0x780] sm:$0xff] }
 0x20e   :  { %791 = vmatprep.subr.bf16.mxu0 %v694_v24  ;;  %873 = vmatprep.subr.bf16.mxu1 %v696_v25  ;;  %v747_v24 = vld [vmem:[#allocation2 + $0x790] sm:$0xff]  ;;  %v750_v25 = vld [vmem:[#allocation2 + $0x7a8] sm:$0xff] }
 0x211   :  { %792 = vmatpush1.bf16.msra.mxu0 %v693_v26  ;;  %874 = vmatpush1.bf16.msra.mxu1 %v695_v27  ;;  %v752_v26 = vld [vmem:[#allocation2 + $0x7b8] sm:$0xff]  ;;  %v749_v27 = vld [vmem:[#allocation2 + $0x7a0] sm:$0xff] }
 0x212   :  { %802 = vmatprep.subr.bf16.mxu0 %v698_v28  ;;  %884 = vmatprep.subr.bf16.mxu1 %v700_v29  ;;  %v751_v28 = vld [vmem:[#allocation2 + $0x7b0] sm:$0xff]  ;;  %v754_v29 = vld [vmem:[#allocation2 + $0x7c8] sm:$0xff] }
 0x214   :  { %794 = vmatmul.mubr.bf16.vlgmr.msra.gmra.mrb[4].mxu0 %v629_v30  ;;  %876 = vmatmul.mubr.bf16.vlgmr.msra.gmra.mrb[4].mxu1 %v629_v30  ;;  %v756_v30 = vld [vmem:[#allocation2 + $0x7d8] sm:$0xff] }
 0x215   :  { %803 = vmatpush1.bf16.msra.mxu0 %v697_v31  ;;  %885 = vmatpush1.bf16.msra.mxu1 %v699_v32  ;;  %v753_v31 = vld [vmem:[#allocation2 + $0x7c0] sm:$0xff]  ;;  %v755_v32 = vld [vmem:[#allocation2 + $0x7d0] sm:$0xff] }
 0x216   :  { %804 = vmatprep.subr.bf16.mxu0 %v702_v33  ;;  %886 = vmatprep.subr.bf16.mxu1 %v704_v34  ;;  %v758_v33 = vld [vmem:[#allocation2 + $0x7e8] sm:$0xff]  ;;  %v760_v34 = vld [vmem:[#allocation2 + $0x7f8] sm:$0xff] }
 0x217   :  { %834 = vmatprep.mubr.bf16.mxu0 %v632_v35  ;;  %916 = vmatprep.mubr.bf16.mxu1 %v632_v35  ;;  %v757_v35 = vld [vmem:[#allocation2 + $0x7e0] sm:$0xff] }
 0x219   :  { %805 = vmatpush1.bf16.msra.mxu0 %v701_v6  ;;  %887 = vmatpush1.bf16.msra.mxu1 %v703_v19  ;;  %v759_v6 = vld [vmem:[#allocation2 + $0x7f0] sm:$0xff]  ;;  %v631_v19 = vpack.c.bf16 %v590_v11, %v590_v11 }
 0x21a   :  { %806 = vmatprep.subr.bf16.mxu0 %v706_v37  ;;  %888 = vmatprep.subr.bf16.mxu1 %v708_v38  ;;  %v2536_v37 = vld [vmem:[#allocation7 + $0x1] ss:$8 sm:$0xf]  ;;  %v2538_v38 = vld [vmem:[#allocation7 + $0x5] ss:$8 sm:$0xf] }
 0x21b   :  { %1121 = dma.general %s1087_s23, 16384, %s109_s16, %s2302_s20, %s2305_s28, [#allocation17], %s2382_s9, 0  }
 0x21d   :  { %807 = vmatpush1.bf16.msra.mxu0 %v705_v39  ;;  %889 = vmatpush1.bf16.msra.mxu1 %v707_v12 }
 0x21e   :  { %808 = vmatprep.subr.bf16.mxu0 %v710_v44  ;;  %890 = vmatprep.subr.bf16.mxu1 %v712_v20 }
 0x221   :  { %809 = vmatpush1.bf16.msra.mxu0 %v709_v45  ;;  %891 = vmatpush1.bf16.msra.mxu1 %v711_v46 }
 0x222   :  { %810 = vmatprep.subr.bf16.mxu0 %v714_v47  ;;  %892 = vmatprep.subr.bf16.mxu1 %v716_v48 }
 0x225   :  { %811 = vmatpush1.bf16.msra.mxu0 %v713_v49  ;;  %893 = vmatpush1.bf16.msra.mxu1 %v715_v50 }
 0x226   :  { %812 = vmatprep.subr.bf16.mxu0 %v718_v51  ;;  %894 = vmatprep.subr.bf16.mxu1 %v720_v52 }
 0x229   :  { %813 = vmatpush1.bf16.msra.mxu0 %v717_v53  ;;  %895 = vmatpush1.bf16.msra.mxu1 %v719_v54 }
 0x22a   :  { %814 = vmatprep.subr.bf16.mxu0 %v722_v55  ;;  %896 = vmatprep.subr.bf16.mxu1 %v724_v56 }
 0x22d   :  { %815 = vmatpush1.bf16.msra.mxu0 %v721_v57  ;;  %897 = vmatpush1.bf16.msra.mxu1 %v723_v58 }
 0x22e   :  { %816 = vmatprep.subr.bf16.mxu0 %v726_v59  ;;  %898 = vmatprep.subr.bf16.mxu1 %v728_v13 }
 0x231   :  { %817 = vmatpush1.bf16.msra.mxu0 %v725_v60  ;;  %899 = vmatpush1.bf16.msra.mxu1 %v727_v61 }
 0x232   :  { %818 = vmatprep.subr.bf16.mxu0 %v730_v62  ;;  %900 = vmatprep.subr.bf16.mxu1 %v732_v63 }
 0x235   :  { %819 = vmatpush1.bf16.msra.mxu0 %v729_v15  ;;  %901 = vmatpush1.bf16.msra.mxu1 %v731_v0 }
 0x236   :  { %820 = vmatprep.subr.bf16.mxu0 %v734_v2  ;;  %902 = vmatprep.subr.bf16.mxu1 %v736_v5 }
 0x239   :  { %821 = vmatpush1.bf16.msra.mxu0 %v733_v16  ;;  %903 = vmatpush1.bf16.msra.mxu1 %v735_v7 }
 0x23a   :  { %822 = vmatprep.subr.bf16.mxu0 %v738_v9  ;;  %904 = vmatprep.subr.bf16.mxu1 %v740_v10 }
 0x23d   :  { %823 = vmatpush1.bf16.msra.mxu0 %v737_v3  ;;  %905 = vmatpush1.bf16.msra.mxu1 %v739_v17 }
 0x23e   :  { %824 = vmatprep.subr.bf16.mxu0 %v742_v14  ;;  %906 = vmatprep.subr.bf16.mxu1 %v744_v18 }
 0x241   :  { %825 = vmatpush1.bf16.msra.mxu0 %v741_v1  ;;  %907 = vmatpush1.bf16.msra.mxu1 %v743_v21 }
 0x242   :  { %826 = vmatprep.subr.bf16.mxu0 %v746_v22  ;;  %908 = vmatprep.subr.bf16.mxu1 %v748_v4 }
 0x245   :  { %827 = vmatpush1.bf16.msra.mxu0 %v745_v23  ;;  %909 = vmatpush1.bf16.msra.mxu1 %v747_v24 }
 0x246   :  { %828 = vmatprep.subr.bf16.mxu0 %v750_v25  ;;  %910 = vmatprep.subr.bf16.mxu1 %v752_v26 }
 0x249   :  { %829 = vmatpush1.bf16.msra.mxu0 %v749_v27  ;;  %911 = vmatpush1.bf16.msra.mxu1 %v751_v28 }
 0x24a   :  { %830 = vmatprep.subr.bf16.mxu0 %v754_v29  ;;  %912 = vmatprep.subr.bf16.mxu1 %v756_v30 }
 0x24d   :  { %831 = vmatpush1.bf16.msra.mxu0 %v753_v31  ;;  %913 = vmatpush1.bf16.msra.mxu1 %v755_v32 }
 0x24e   :  { %832 = vmatprep.subr.bf16.mxu0 %v758_v33  ;;  %914 = vmatprep.subr.bf16.mxu1 %v760_v34 }
 0x251   :  { %833 = vmatpush1.bf16.msra.mxu0 %v757_v35  ;;  %915 = vmatpush1.bf16.msra.mxu1 %v759_v6 }
 0x254   :  { %835 = vmatmul.mubr.bf16.vlgmr.msra.gmra.mrb[4].mxu0 %v631_v19  ;;  %917 = vmatmul.mubr.bf16.vlgmr.msra.gmra.mrb[4].mxu1 %v631_v19 }
 0x327   :  { %v2547_v39 = vpop.f32.mrb[4].mxu0  ;;  %v2549_v8 = vpop.f32.mrb[4].mxu1 }
 0x328   :  { %v925_v11 = vrot.slane %v2547_v39, 4  ;;  %v949_v12 = vmul.f32 %v2547_v39, %v2547_v39  ;;  %v937_v44 = vrot.slane %v2549_v8, 4  ;;  %v951_v20 = vmul.f32 %v2549_v8, %v2549_v8  ;;  %v2557_v45 = vpop.f32.mrb[5].mxu0  ;;  %v2559_v46 = vpop.f32.mrb[5].mxu1 }
 0x329   :  { %v931_v47 = vrot.slane %v2557_v45, 4  ;;  %v950_v48 = vmul.f32 %v2557_v45, %v2557_v45  ;;  %v943_v49 = vrot.slane %v2559_v46, 4  ;;  %v952_v50 = vmul.f32 %v2559_v46, %v2559_v46  ;;  %v840_v51 = vpop.f32.mrb[6].mxu0  ;;  %v922_v52 = vpop.f32.mrb[6].mxu1 }
 0x32a   :  { %v926_v53 = vadd.f32 %v925_v11, %v2547_v39  ;;  %v953_v54 = vrot.slane %v949_v12, 4  ;;  %v938_v55 = vadd.f32 %v937_v44, %v2549_v8  ;;  %v965_v56 = vrot.slane %v951_v20, 4  ;;  %v841_v57 = vpop.f32.mrb[7].mxu0  ;;  %v923_v58 = vpop.f32.mrb[7].mxu1 }
 0x32b   :  { %v932_v59 = vadd.f32 %v931_v47, %v2557_v45  ;;  %v959_v13 = vrot.slane %v950_v48, 4  ;;  %v944_v60 = vadd.f32 %v943_v49, %v2559_v46  ;;  %v971_v61 = vrot.slane %v952_v50, 4 }
 0x32c   :  { %v927_v62 = vrot.slane %v926_v53, 2  ;;  %v954_v63 = vadd.f32 %v953_v54, %v949_v12  ;;  %v939_v15 = vrot.slane %v938_v55, 2  ;;  %v966_v0 = vadd.f32 %v965_v56, %v951_v20 }
 0x32d   :  { %v933_v2 = vrot.slane %v932_v59, 2  ;;  %v960_v5 = vadd.f32 %v959_v13, %v950_v48  ;;  %v945_v16 = vrot.slane %v944_v60, 2  ;;  %v972_v7 = vadd.f32 %v971_v61, %v952_v50 }
 0x32e   :  { %v928_v9 = vadd.f32 %v927_v62, %v926_v53  ;;  %v955_v10 = vrot.slane %v954_v63, 2  ;;  %v940_v3 = vadd.f32 %v939_v15, %v938_v55  ;;  %v967_v17 = vrot.slane %v966_v0, 2 }
 0x32f   :  { %v934_v14 = vadd.f32 %v933_v2, %v932_v59  ;;  %v961_v18 = vrot.slane %v960_v5, 2  ;;  %v946_v1 = vadd.f32 %v945_v16, %v944_v60  ;;  %v973_v21 = vrot.slane %v972_v7, 2 }
 0x330   :  { %v929_v22 = vrot.slane %v928_v9, 1  ;;  %v956_v4 = vadd.f32 %v955_v10, %v954_v63  ;;  %v941_v23 = vrot.slane %v940_v3, 1  ;;  %v968_v24 = vadd.f32 %v967_v17, %v966_v0 }
 0x331   :  { %v935_v25 = vrot.slane %v934_v14, 1  ;;  %v962_v26 = vadd.f32 %v961_v18, %v960_v5  ;;  %v947_v27 = vrot.slane %v946_v1, 1  ;;  %v974_v28 = vadd.f32 %v973_v21, %v972_v7 }
 0x332   :  { %v930_v29 = vadd.f32 %v929_v22, %v928_v9  ;;  %v957_v30 = vrot.slane %v956_v4, 1  ;;  %v942_v31 = vadd.f32 %v941_v23, %v940_v3  ;;  %v969_v32 = vrot.slane %v968_v24, 1 }
 0x333   :  { %v936_v33 = vadd.f32 %v935_v25, %v934_v14  ;;  %v963_v34 = vrot.slane %v962_v26, 1  ;;  %v948_v35 = vadd.f32 %v947_v27, %v946_v1  ;;  %v975_v6 = vrot.slane %v974_v28, 1 }
 0x334   :  { %v958_v19 = vadd.f32 %v957_v30, %v956_v4  ;;  %v977_v11 = vmul.f32 0.125, %v930_v29  ;;  %v970_v12 = vadd.f32 %v969_v32, %v968_v24  ;;  %v979_v44 = vmul.f32 0.125, %v942_v31 }
 0x335   :  { %v964_v20 = vadd.f32 %v963_v34, %v962_v26  ;;  %v978_v47 = vmul.f32 0.125, %v936_v33  ;;  %v976_v48 = vadd.f32 %v975_v6, %v974_v28  ;;  %v980_v49 = vmul.f32 0.125, %v948_v35 }
 0x336   :  { %v981_v50 = vmul.f32 0.125, %v958_v19  ;;  %v985_v51 = vmul.f32 %v977_v11, %v977_v11  ;;  %v983_v52 = vmul.f32 0.125, %v970_v12  ;;  %v987_v53 = vmul.f32 %v979_v44, %v979_v44 }
 0x337   :  { %v982_v54 = vmul.f32 0.125, %v964_v20  ;;  %v986_v55 = vmul.f32 %v978_v47, %v978_v47  ;;  %v984_v57 = vmul.f32 0.125, %v976_v48  ;;  %v988_v58 = vmul.f32 %v980_v49, %v980_v49 }
 0x338   :  { %v989_v56 = vsub.f32 %v981_v50, %v985_v51  ;;  %v991_v59 = vsub.f32 %v983_v52, %v987_v53  ;;  %v1011_v7 = vrot.slane %v2536_v37, %v2474_v40  ;;  %v1019_v9 = vrot.slane %v2536_v37, %v2477_v41 }
 0x339   :  { %v990_v13 = vsub.f32 %v982_v54, %v986_v55  ;;  %v992_v61 = vsub.f32 %v984_v57, %v988_v58  ;;  %v1015_v10 = vrot.slane %v2536_v37, %v2480_v42  ;;  %v1023_v17 = vrot.slane %v2536_v37, %v2483_v43 }
 0x33a   :  { %v993_v60 = vmax.f32 %v989_v56, 0.0  ;;  %v995_v62 = vmax.f32 %v991_v59, 0.0  ;;  %v1032_v4 = vsub.f32 %v2547_v39, %v977_v11  ;;  %v1062_v24 = vrot.slane %v2538_v38, %v2474_v40 }
 0x33b   :  { %v994_v63 = vmax.f32 %v990_v13, 0.0  ;;  %v996_v0 = vmax.f32 %v992_v61, 0.0  ;;  %v1034_v26 = vsub.f32 %v2549_v8, %v979_v44  ;;  %v1070_v37 = vrot.slane %v2538_v38, %v2477_v41 }
 0x33c   :  { %v997_v15 = vadd.f32 1e-05, %v993_v60  ;;  %v999_v2 = vadd.f32 1e-05, %v995_v62  ;;  %v1033_v30 = vsub.f32 %v2557_v45, %v978_v47  ;;  %v1066_v39 = vrot.slane %v2538_v38, %v2480_v42 }
 0x33d   :  { %v998_v5 = vadd.f32 1e-05, %v994_v63  ;;  %v1000_v16 = vadd.f32 1e-05, %v996_v0  ;;  %v1035_v33 = vsub.f32 %v2559_v46, %v980_v49  ;;  %v1074_v8 = vrot.slane %v2538_v38, %v2483_v43 }
 0x33e   :  { %2187 = vrsqrt.f32 %v997_v15 }
 0x33f   :  { %2189 = vrsqrt.f32 %v999_v2 }
 0x340   :  { %2191 = vrsqrt.f32 %v998_v5 }
 0x341   :  { %2193 = vrsqrt.f32 %v1000_v16 }
 0x348   :  { %v2188_v3 = vpop.eup %2187 }
 0x349   :  { %v2190_v14 = vpop.eup %2189  ;;  %v1028_v18 = vmul.f32 %v2188_v3, %v1011_v7 }
 0x34a   :  { %v2192_v1 = vpop.eup %2191  ;;  %v1030_v21 = vmul.f32 %v2190_v14, %v1019_v9 }
 0x34b   :  { %v2194_v22 = vpop.eup %2193  ;;  %v1039_v23 = vrot.slane %v1028_v18, %v2474_v40  ;;  %v1029_v25 = vmul.f32 %v2192_v1, %v1015_v10 }
 0x34c   :  { %v1047_v27 = vrot.slane %v1030_v21, %v2474_v40  ;;  %v1031_v28 = vmul.f32 %v2194_v22, %v1023_v17 }
 0x34d   :  { %v1052_v29 = vmul.f32 %v1039_v23, %v1032_v4  ;;  %v1043_v31 = vrot.slane %v1029_v25, %v2474_v40 }
 0x34e   :  { %v1054_v32 = vmul.f32 %v1047_v27, %v1034_v26  ;;  %v1051_v34 = vrot.slane %v1031_v28, %v2474_v40 }
 0x34f   :  { %v2595_v35 = vadd.f32 %v1062_v24, %v1052_v29  ;;  %v1053_v6 = vmul.f32 %v1043_v31, %v1033_v30 }
 0x350   :  { %v2597_v19 = vadd.f32 %v1070_v37, %v1054_v32  ;;  %v1055_v11 = vmul.f32 %v1051_v34, %v1035_v33 }
 0x351   :  { %v1083_v45 = vmax.f32 %v2595_v35, 0.0  ;;  %v1080_v12 = vadd.f32 %v1066_v39, %v1053_v6 }
 0x352   :  { %v1085_v44 = vmax.f32 %v2597_v19, 0.0  ;;  %v2601_v20 = vadd.f32 %v1074_v8, %v1055_v11 }
 0x353   :  { %v1084_v47 = vmax.f32 %v1080_v12, 0.0 }
 0x354   :  { %v1086_v46 = vmax.f32 %v2601_v20, 0.0 }
 0x355   :  { %2285 = dma.done.wait [#allocation3], 16384 }
 0x356   :  { %2286 = vsyncadd [#allocation3], 4294950912  ;;  %v1125_v48 = vpack.c.bf16 %v1084_v47, %v1084_v47  ;;  %v1129_v38 = vld [vmem:[#allocation2 + $0x8] sm:$0xff]  ;;  %v1131_v49 = vld [vmem:[#allocation2 + $0x18] sm:$0xff] }
 0x357   :  { %v1128_v50 = vld [vmem:[#allocation2] sm:$0xff]  ;;  %1256 = vmatprep.subr.bf16.mxu0 %v1129_v38  ;;  %1338 = vmatprep.subr.bf16.mxu1 %v1131_v49  ;;  %v1130_v51 = vld [vmem:[#allocation2 + $0x10] sm:$0xff]  ;;  %v1133_v52 = vld [vmem:[#allocation2 + $0x28] sm:$0xff] }
 0x358   :  { %1288 = vmatprep.mubr.bf16.mxu0 %v1125_v48  ;;  %1370 = vmatprep.mubr.bf16.mxu1 %v1125_v48  ;;  %v1135_v53 = vld [vmem:[#allocation2 + $0x38] sm:$0xff]  ;;  %v1132_v54 = vld [vmem:[#allocation2 + $0x20] sm:$0xff]  ;;  %v1134_v55 = vld [vmem:[#allocation2 + $0x30] sm:$0xff] }
 0x359   :  { %1257 = vmatpush1.bf16.msra.mxu0 %v1128_v50  ;;  %1339 = vmatpush1.bf16.msra.mxu1 %v1130_v51  ;;  %v1137_v56 = vld [vmem:[#allocation2 + $0x48] sm:$0xff]  ;;  %v1139_v57 = vld [vmem:[#allocation2 + $0x58] sm:$0xff]  ;;  %v1136_v58 = vld [vmem:[#allocation2 + $0x40] sm:$0xff] }
 0x35a   :  { %1258 = vmatprep.subr.bf16.mxu0 %v1133_v52  ;;  %1340 = vmatprep.subr.bf16.mxu1 %v1135_v53  ;;  %v1138_v59 = vld [vmem:[#allocation2 + $0x50] sm:$0xff]  ;;  %v1141_v13 = vld [vmem:[#allocation2 + $0x68] sm:$0xff]  ;;  %v1143_v60 = vld [vmem:[#allocation2 + $0x78] sm:$0xff] }
 0x35b   :  { %v1140_v61 = vld [vmem:[#allocation2 + $0x60] sm:$0xff]  ;;  %v1142_v62 = vld [vmem:[#allocation2 + $0x70] sm:$0xff]  ;;  %v1145_v63 = vld [vmem:[#allocation2 + $0x88] sm:$0xff] }
 0x35c   :  { %v1147_v15 = vld [vmem:[#allocation2 + $0x98] sm:$0xff]  ;;  %v1144_v0 = vld [vmem:[#allocation2 + $0x80] sm:$0xff]  ;;  %v1146_v2 = vld [vmem:[#allocation2 + $0x90] sm:$0xff] }
 0x35d   :  { %1259 = vmatpush1.bf16.msra.mxu0 %v1132_v54  ;;  %1341 = vmatpush1.bf16.msra.mxu1 %v1134_v55  ;;  %v1149_v5 = vld [vmem:[#allocation2 + $0xa8] sm:$0xff]  ;;  %v1151_v16 = vld [vmem:[#allocation2 + $0xb8] sm:$0xff]  ;;  %v1148_v7 = vld [vmem:[#allocation2 + $0xa0] sm:$0xff] }
 0x35e   :  { %1260 = vmatprep.subr.bf16.mxu0 %v1137_v56  ;;  %1342 = vmatprep.subr.bf16.mxu1 %v1139_v57  ;;  %v1150_v9 = vld [vmem:[#allocation2 + $0xb0] sm:$0xff]  ;;  %v1153_v10 = vld [vmem:[#allocation2 + $0xc8] sm:$0xff]  ;;  %v1155_v3 = vld [vmem:[#allocation2 + $0xd8] sm:$0xff] }
 0x35f   :  { %v1152_v17 = vld [vmem:[#allocation2 + $0xc0] sm:$0xff]  ;;  %v1154_v14 = vld [vmem:[#allocation2 + $0xd0] sm:$0xff]  ;;  %v1157_v18 = vld [vmem:[#allocation2 + $0xe8] sm:$0xff] }
 0x360   :  { %v1159_v1 = vld [vmem:[#allocation2 + $0xf8] sm:$0xff]  ;;  %v1156_v21 = vld [vmem:[#allocation2 + $0xe0] sm:$0xff]  ;;  %v1158_v22 = vld [vmem:[#allocation2 + $0xf0] sm:$0xff] }
 0x361   :  { %1261 = vmatpush1.bf16.msra.mxu0 %v1136_v58  ;;  %1343 = vmatpush1.bf16.msra.mxu1 %v1138_v59  ;;  %v1161_v4 = vld [vmem:[#allocation2 + $0x108] sm:$0xff]  ;;  %v1163_v23 = vld [vmem:[#allocation2 + $0x118] sm:$0xff]  ;;  %v1160_v24 = vld [vmem:[#allocation2 + $0x100] sm:$0xff] }
 0x362   :  { %1262 = vmatprep.subr.bf16.mxu0 %v1141_v13  ;;  %1344 = vmatprep.subr.bf16.mxu1 %v1143_v60  ;;  %v1162_v25 = vld [vmem:[#allocation2 + $0x110] sm:$0xff]  ;;  %v1165_v26 = vld [vmem:[#allocation2 + $0x128] sm:$0xff]  ;;  %v1167_v27 = vld [vmem:[#allocation2 + $0x138] sm:$0xff]  ;;  %v1124_v60 = vpack.c.bf16 %v1083_v45, %v1083_v45 }
 0x363   :  { %v1164_v37 = vld [vmem:[#allocation2 + $0x120] sm:$0xff]  ;;  %v1166_v28 = vld [vmem:[#allocation2 + $0x130] sm:$0xff]  ;;  %v1169_v29 = vld [vmem:[#allocation2 + $0x148] sm:$0xff] }
 0x364   :  { %v1171_v30 = vld [vmem:[#allocation2 + $0x158] sm:$0xff]  ;;  %v1168_v31 = vld [vmem:[#allocation2 + $0x140] sm:$0xff]  ;;  %v1170_v39 = vld [vmem:[#allocation2 + $0x150] sm:$0xff] }
 0x365   :  { %1263 = vmatpush1.bf16.msra.mxu0 %v1140_v61  ;;  %1345 = vmatpush1.bf16.msra.mxu1 %v1142_v62  ;;  %v1173_v32 = vld [vmem:[#allocation2 + $0x168] sm:$0xff]  ;;  %v1175_v33 = vld [vmem:[#allocation2 + $0x178] sm:$0xff]  ;;  %v1172_v34 = vld [vmem:[#allocation2 + $0x160] sm:$0xff] }
 0x366   :  { %1264 = vmatprep.subr.bf16.mxu0 %v1145_v63  ;;  %1346 = vmatprep.subr.bf16.mxu1 %v1147_v15  ;;  %v1174_v8 = vld [vmem:[#allocation2 + $0x170] sm:$0xff]  ;;  %v1177_v6 = vld [vmem:[#allocation2 + $0x188] sm:$0xff]  ;;  %v1179_v11 = vld [vmem:[#allocation2 + $0x198] sm:$0xff] }
 0x367   :  { %v1176_v12 = vld [vmem:[#allocation2 + $0x180] sm:$0xff]  ;;  %v1178_v47 = vld [vmem:[#allocation2 + $0x190] sm:$0xff]  ;;  %v1181_v48 = vld [vmem:[#allocation2 + $0x1a8] sm:$0xff] }
 0x368   :  { %v1183_v38 = vld [vmem:[#allocation2 + $0x1b8] sm:$0xff]  ;;  %v1180_v49 = vld [vmem:[#allocation2 + $0x1a0] sm:$0xff]  ;;  %v1182_v50 = vld [vmem:[#allocation2 + $0x1b0] sm:$0xff] }
 0x369   :  { %1265 = vmatpush1.bf16.msra.mxu0 %v1144_v0  ;;  %1347 = vmatpush1.bf16.msra.mxu1 %v1146_v2  ;;  %v1185_v51 = vld [vmem:[#allocation2 + $0x1c8] sm:$0xff]  ;;  %v1187_v52 = vld [vmem:[#allocation2 + $0x1d8] sm:$0xff]  ;;  %v1184_v53 = vld [vmem:[#allocation2 + $0x1c0] sm:$0xff]  ;;  %v1127_v0 = vpack.c.bf16 %v1086_v46, %v1086_v46 }
 0x36a   :  { %1266 = vmatprep.subr.bf16.mxu0 %v1149_v5  ;;  %1348 = vmatprep.subr.bf16.mxu1 %v1151_v16  ;;  %v1186_v54 = vld [vmem:[#allocation2 + $0x1d0] sm:$0xff]  ;;  %v1189_v55 = vld [vmem:[#allocation2 + $0x1e8] sm:$0xff]  ;;  %v1191_v56 = vld [vmem:[#allocation2 + $0x1f8] sm:$0xff] }
 0x36b   :  { %v1188_v57 = vld [vmem:[#allocation2 + $0x1e0] sm:$0xff]  ;;  %v1190_v58 = vld [vmem:[#allocation2 + $0x1f0] sm:$0xff]  ;;  %v1193_v59 = vld [vmem:[#allocation2 + $0x208] sm:$0xff] }
 0x36c   :  { %v1195_v13 = vld [vmem:[#allocation2 + $0x218] sm:$0xff]  ;;  %v1192_v61 = vld [vmem:[#allocation2 + $0x200] sm:$0xff]  ;;  %v1194_v62 = vld [vmem:[#allocation2 + $0x210] sm:$0xff] }
 0x36d   :  { %1267 = vmatpush1.bf16.msra.mxu0 %v1148_v7  ;;  %1349 = vmatpush1.bf16.msra.mxu1 %v1150_v9  ;;  %v1197_v63 = vld [vmem:[#allocation2 + $0x228] sm:$0xff]  ;;  %v1199_v15 = vld [vmem:[#allocation2 + $0x238] sm:$0xff]  ;;  %v1196_v35 = vld [vmem:[#allocation2 + $0x220] sm:$0xff] }
 0x36e   :  { %1268 = vmatprep.subr.bf16.mxu0 %v1153_v10  ;;  %1350 = vmatprep.subr.bf16.mxu1 %v1155_v3  ;;  %v1198_v45 = vld [vmem:[#allocation2 + $0x230] sm:$0xff]  ;;  %v1201_v2 = vld [vmem:[#allocation2 + $0x248] sm:$0xff]  ;;  %v1203_v5 = vld [vmem:[#allocation2 + $0x258] sm:$0xff] }
 0x36f   :  { %v1200_v16 = vld [vmem:[#allocation2 + $0x240] sm:$0xff]  ;;  %v1202_v20 = vld [vmem:[#allocation2 + $0x250] sm:$0xff]  ;;  %v1205_v7 = vld [vmem:[#allocation2 + $0x268] sm:$0xff] }
 0x370   :  { %v1207_v46 = vld [vmem:[#allocation2 + $0x278] sm:$0xff]  ;;  %v1204_v9 = vld [vmem:[#allocation2 + $0x260] sm:$0xff]  ;;  %v1206_v10 = vld [vmem:[#allocation2 + $0x270] sm:$0xff] }
 0x371   :  { %1269 = vmatpush1.bf16.msra.mxu0 %v1152_v17  ;;  %1351 = vmatpush1.bf16.msra.mxu1 %v1154_v14  ;;  %v1209_v3 = vld [vmem:[#allocation2 + $0x288] sm:$0xff]  ;;  %v1211_v17 = vld [vmem:[#allocation2 + $0x298] sm:$0xff]  ;;  %v1208_v14 = vld [vmem:[#allocation2 + $0x280] sm:$0xff] }
 0x372   :  { %1270 = vmatprep.subr.bf16.mxu0 %v1157_v18  ;;  %1352 = vmatprep.subr.bf16.mxu1 %v1159_v1  ;;  %v1210_v18 = vld [vmem:[#allocation2 + $0x290] sm:$0xff]  ;;  %v1213_v1 = vld [vmem:[#allocation2 + $0x2a8] sm:$0xff] }
 0x375   :  { %1271 = vmatpush1.bf16.msra.mxu0 %v1156_v21  ;;  %1353 = vmatpush1.bf16.msra.mxu1 %v1158_v22  ;;  %v1215_v21 = vld [vmem:[#allocation2 + $0x2b8] sm:$0xff]  ;;  %v1212_v22 = vld [vmem:[#allocation2 + $0x2a0] sm:$0xff] }
 0x376   :  { %1272 = vmatprep.subr.bf16.mxu0 %v1161_v4  ;;  %1354 = vmatprep.subr.bf16.mxu1 %v1163_v23  ;;  %v1214_v4 = vld [vmem:[#allocation2 + $0x2b0] sm:$0xff]  ;;  %v1217_v23 = vld [vmem:[#allocation2 + $0x2c8] sm:$0xff] }
 0x379   :  { %1273 = vmatpush1.bf16.msra.mxu0 %v1160_v24  ;;  %1355 = vmatpush1.bf16.msra.mxu1 %v1162_v25  ;;  %v1219_v24 = vld [vmem:[#allocation2 + $0x2d8] sm:$0xff]  ;;  %v1216_v25 = vld [vmem:[#allocation2 + $0x2c0] sm:$0xff] }
 0x37a   :  { %1274 = vmatprep.subr.bf16.mxu0 %v1165_v26  ;;  %1356 = vmatprep.subr.bf16.mxu1 %v1167_v27  ;;  %v1218_v26 = vld [vmem:[#allocation2 + $0x2d0] sm:$0xff]  ;;  %v1221_v27 = vld [vmem:[#allocation2 + $0x2e8] sm:$0xff] }
 0x37d   :  { %1275 = vmatpush1.bf16.msra.mxu0 %v1164_v37  ;;  %1357 = vmatpush1.bf16.msra.mxu1 %v1166_v28  ;;  %v1223_v37 = vld [vmem:[#allocation2 + $0x2f8] sm:$0xff]  ;;  %v1220_v28 = vld [vmem:[#allocation2 + $0x2e0] sm:$0xff] }
 0x37e   :  { %1276 = vmatprep.subr.bf16.mxu0 %v1169_v29  ;;  %1358 = vmatprep.subr.bf16.mxu1 %v1171_v30  ;;  %v1222_v29 = vld [vmem:[#allocation2 + $0x2f0] sm:$0xff]  ;;  %v1225_v30 = vld [vmem:[#allocation2 + $0x308] sm:$0xff] }
 0x381   :  { %1277 = vmatpush1.bf16.msra.mxu0 %v1168_v31  ;;  %1359 = vmatpush1.bf16.msra.mxu1 %v1170_v39  ;;  %v1227_v31 = vld [vmem:[#allocation2 + $0x318] sm:$0xff]  ;;  %v1224_v39 = vld [vmem:[#allocation2 + $0x300] sm:$0xff] }
 0x382   :  { %1278 = vmatprep.subr.bf16.mxu0 %v1173_v32  ;;  %1360 = vmatprep.subr.bf16.mxu1 %v1175_v33  ;;  %v1226_v32 = vld [vmem:[#allocation2 + $0x310] sm:$0xff]  ;;  %v1229_v33 = vld [vmem:[#allocation2 + $0x328] sm:$0xff] }
 0x385   :  { %1279 = vmatpush1.bf16.msra.mxu0 %v1172_v34  ;;  %1361 = vmatpush1.bf16.msra.mxu1 %v1174_v8  ;;  %v1231_v34 = vld [vmem:[#allocation2 + $0x338] sm:$0xff]  ;;  %v1228_v8 = vld [vmem:[#allocation2 + $0x320] sm:$0xff] }
 0x386   :  { %1280 = vmatprep.subr.bf16.mxu0 %v1177_v6  ;;  %1362 = vmatprep.subr.bf16.mxu1 %v1179_v11  ;;  %v1230_v6 = vld [vmem:[#allocation2 + $0x330] sm:$0xff]  ;;  %v1233_v11 = vld [vmem:[#allocation2 + $0x348] sm:$0xff] }
 0x389   :  { %1281 = vmatpush1.bf16.msra.mxu0 %v1176_v12  ;;  %1363 = vmatpush1.bf16.msra.mxu1 %v1178_v47  ;;  %v1235_v12 = vld [vmem:[#allocation2 + $0x358] sm:$0xff]  ;;  %v1232_v47 = vld [vmem:[#allocation2 + $0x340] sm:$0xff] }
 0x38a   :  { %1282 = vmatprep.subr.bf16.mxu0 %v1181_v48  ;;  %1364 = vmatprep.subr.bf16.mxu1 %v1183_v38  ;;  %v1234_v48 = vld [vmem:[#allocation2 + $0x350] sm:$0xff]  ;;  %v1237_v38 = vld [vmem:[#allocation2 + $0x368] sm:$0xff] }
 0x38d   :  { %1283 = vmatpush1.bf16.msra.mxu0 %v1180_v49  ;;  %1365 = vmatpush1.bf16.msra.mxu1 %v1182_v50  ;;  %v1239_v49 = vld [vmem:[#allocation2 + $0x378] sm:$0xff]  ;;  %v1236_v50 = vld [vmem:[#allocation2 + $0x360] sm:$0xff] }
 0x38e   :  { %1284 = vmatprep.subr.bf16.mxu0 %v1185_v51  ;;  %1366 = vmatprep.subr.bf16.mxu1 %v1187_v52  ;;  %v1238_v51 = vld [vmem:[#allocation2 + $0x370] sm:$0xff]  ;;  %v1241_v52 = vld [vmem:[#allocation2 + $0x388] sm:$0xff] }
 0x391   :  { %1285 = vmatpush1.bf16.msra.mxu0 %v1184_v53  ;;  %1367 = vmatpush1.bf16.msra.mxu1 %v1186_v54  ;;  %v1243_v53 = vld [vmem:[#allocation2 + $0x398] sm:$0xff]  ;;  %v1240_v54 = vld [vmem:[#allocation2 + $0x380] sm:$0xff] }
 0x392   :  { %1286 = vmatprep.subr.bf16.mxu0 %v1189_v55  ;;  %1368 = vmatprep.subr.bf16.mxu1 %v1191_v56  ;;  %v1242_v55 = vld [vmem:[#allocation2 + $0x390] sm:$0xff]  ;;  %v1245_v56 = vld [vmem:[#allocation2 + $0x3a8] sm:$0xff] }
 0x395   :  { %1287 = vmatpush1.bf16.msra.mxu0 %v1188_v57  ;;  %1369 = vmatpush1.bf16.msra.mxu1 %v1190_v58  ;;  %v1247_v57 = vld [vmem:[#allocation2 + $0x3b8] sm:$0xff]  ;;  %v1244_v58 = vld [vmem:[#allocation2 + $0x3a0] sm:$0xff] }
 0x396   :  { %1297 = vmatprep.subr.bf16.mxu0 %v1193_v59  ;;  %1379 = vmatprep.subr.bf16.mxu1 %v1195_v13  ;;  %v1246_v59 = vld [vmem:[#allocation2 + $0x3b0] sm:$0xff]  ;;  %v1249_v13 = vld [vmem:[#allocation2 + $0x3c8] sm:$0xff] }
 0x398   :  { %1289 = vmatmul.mubr.bf16.vlgmr.msra.gmra.mrb[8].mxu0 %v1124_v60  ;;  %1371 = vmatmul.mubr.bf16.vlgmr.msra.gmra.mrb[8].mxu1 %v1124_v60  ;;  %v1251_v60 = vld [vmem:[#allocation2 + $0x3d8] sm:$0xff] }
 0x399   :  { %1298 = vmatpush1.bf16.msra.mxu0 %v1192_v61  ;;  %1380 = vmatpush1.bf16.msra.mxu1 %v1194_v62  ;;  %v1248_v61 = vld [vmem:[#allocation2 + $0x3c0] sm:$0xff]  ;;  %v1250_v62 = vld [vmem:[#allocation2 + $0x3d0] sm:$0xff] }
 0x39a   :  { %1299 = vmatprep.subr.bf16.mxu0 %v1197_v63  ;;  %1381 = vmatprep.subr.bf16.mxu1 %v1199_v15  ;;  %v1253_v63 = vld [vmem:[#allocation2 + $0x3e8] sm:$0xff]  ;;  %v1255_v15 = vld [vmem:[#allocation2 + $0x3f8] sm:$0xff] }
 0x39b   :  { %1329 = vmatprep.mubr.bf16.mxu0 %v1127_v0  ;;  %1411 = vmatprep.mubr.bf16.mxu1 %v1127_v0  ;;  %v1252_v0 = vld [vmem:[#allocation2 + $0x3e0] sm:$0xff] }
 0x39d   :  { %1300 = vmatpush1.bf16.msra.mxu0 %v1196_v35  ;;  %1382 = vmatpush1.bf16.msra.mxu1 %v1198_v45  ;;  %v1254_v35 = vld [vmem:[#allocation2 + $0x3f0] sm:$0xff]  ;;  %v1126_v45 = vpack.c.bf16 %v1085_v44, %v1085_v44 }
 0x39e   :  { %1301 = vmatprep.subr.bf16.mxu0 %v1201_v2  ;;  %1383 = vmatprep.subr.bf16.mxu1 %v1203_v5 }
 0x3a1   :  { %1302 = vmatpush1.bf16.msra.mxu0 %v1200_v16  ;;  %1384 = vmatpush1.bf16.msra.mxu1 %v1202_v20 }
 0x3a2   :  { %1303 = vmatprep.subr.bf16.mxu0 %v1205_v7  ;;  %1385 = vmatprep.subr.bf16.mxu1 %v1207_v46 }
 0x3a5   :  { %1304 = vmatpush1.bf16.msra.mxu0 %v1204_v9  ;;  %1386 = vmatpush1.bf16.msra.mxu1 %v1206_v10 }
 0x3a6   :  { %1305 = vmatprep.subr.bf16.mxu0 %v1209_v3  ;;  %1387 = vmatprep.subr.bf16.mxu1 %v1211_v17 }
 0x3a9   :  { %1306 = vmatpush1.bf16.msra.mxu0 %v1208_v14  ;;  %1388 = vmatpush1.bf16.msra.mxu1 %v1210_v18 }
 0x3aa   :  { %1307 = vmatprep.subr.bf16.mxu0 %v1213_v1  ;;  %1389 = vmatprep.subr.bf16.mxu1 %v1215_v21 }
 0x3ad   :  { %1308 = vmatpush1.bf16.msra.mxu0 %v1212_v22  ;;  %1390 = vmatpush1.bf16.msra.mxu1 %v1214_v4 }
 0x3ae   :  { %1309 = vmatprep.subr.bf16.mxu0 %v1217_v23  ;;  %1391 = vmatprep.subr.bf16.mxu1 %v1219_v24 }
 0x3b1   :  { %1310 = vmatpush1.bf16.msra.mxu0 %v1216_v25  ;;  %1392 = vmatpush1.bf16.msra.mxu1 %v1218_v26 }
 0x3b2   :  { %1311 = vmatprep.subr.bf16.mxu0 %v1221_v27  ;;  %1393 = vmatprep.subr.bf16.mxu1 %v1223_v37 }
 0x3b5   :  { %1312 = vmatpush1.bf16.msra.mxu0 %v1220_v28  ;;  %1394 = vmatpush1.bf16.msra.mxu1 %v1222_v29 }
 0x3b6   :  { %1313 = vmatprep.subr.bf16.mxu0 %v1225_v30  ;;  %1395 = vmatprep.subr.bf16.mxu1 %v1227_v31 }
 0x3b9   :  { %1314 = vmatpush1.bf16.msra.mxu0 %v1224_v39  ;;  %1396 = vmatpush1.bf16.msra.mxu1 %v1226_v32 }
 0x3ba   :  { %1315 = vmatprep.subr.bf16.mxu0 %v1229_v33  ;;  %1397 = vmatprep.subr.bf16.mxu1 %v1231_v34 }
 0x3bd   :  { %1316 = vmatpush1.bf16.msra.mxu0 %v1228_v8  ;;  %1398 = vmatpush1.bf16.msra.mxu1 %v1230_v6 }
 0x3be   :  { %1317 = vmatprep.subr.bf16.mxu0 %v1233_v11  ;;  %1399 = vmatprep.subr.bf16.mxu1 %v1235_v12 }
 0x3c1   :  { %1318 = vmatpush1.bf16.msra.mxu0 %v1232_v47  ;;  %1400 = vmatpush1.bf16.msra.mxu1 %v1234_v48 }
 0x3c2   :  { %1319 = vmatprep.subr.bf16.mxu0 %v1237_v38  ;;  %1401 = vmatprep.subr.bf16.mxu1 %v1239_v49 }
 0x3c5   :  { %1320 = vmatpush1.bf16.msra.mxu0 %v1236_v50  ;;  %1402 = vmatpush1.bf16.msra.mxu1 %v1238_v51 }
 0x3c6   :  { %1321 = vmatprep.subr.bf16.mxu0 %v1241_v52  ;;  %1403 = vmatprep.subr.bf16.mxu1 %v1243_v53 }
 0x3c9   :  { %1322 = vmatpush1.bf16.msra.mxu0 %v1240_v54  ;;  %1404 = vmatpush1.bf16.msra.mxu1 %v1242_v55 }
 0x3ca   :  { %1323 = vmatprep.subr.bf16.mxu0 %v1245_v56  ;;  %1405 = vmatprep.subr.bf16.mxu1 %v1247_v57 }
 0x3cd   :  { %1324 = vmatpush1.bf16.msra.mxu0 %v1244_v58  ;;  %1406 = vmatpush1.bf16.msra.mxu1 %v1246_v59 }
 0x3ce   :  { %1325 = vmatprep.subr.bf16.mxu0 %v1249_v13  ;;  %1407 = vmatprep.subr.bf16.mxu1 %v1251_v60 }
 0x3d1   :  { %1326 = vmatpush1.bf16.msra.mxu0 %v1248_v61  ;;  %1408 = vmatpush1.bf16.msra.mxu1 %v1250_v62 }
 0x3d2   :  { %1327 = vmatprep.subr.bf16.mxu0 %v1253_v63  ;;  %1409 = vmatprep.subr.bf16.mxu1 %v1255_v15 }
 0x3d5   :  { %1328 = vmatpush1.bf16.msra.mxu0 %v1252_v0  ;;  %1410 = vmatpush1.bf16.msra.mxu1 %v1254_v35 }
 0x3d8   :  { %1330 = vmatmul.mubr.bf16.vlgmr.msra.gmra.mrb[8].mxu0 %v1126_v45  ;;  %1412 = vmatmul.mubr.bf16.vlgmr.msra.gmra.mrb[8].mxu1 %v1126_v45 }
 0x4ab   :  { %v2613_v2 = vpop.f32.mrb[8].mxu0  ;;  %v2615_v5 = vpop.f32.mrb[8].mxu1 }
 0x4ac   :  { %v1420_v16 = vrot.slane %v2613_v2, 4  ;;  %v1444_v20 = vmul.f32 %v2613_v2, %v2613_v2  ;;  %v1432_v7 = vrot.slane %v2615_v5, 4  ;;  %v1446_v19 = vmul.f32 %v2615_v5, %v2615_v5  ;;  %v2623_v46 = vpop.f32.mrb[9].mxu0  ;;  %v2625_v44 = vpop.f32.mrb[9].mxu1 }
 0x4ad   :  { %v1426_v9 = vrot.slane %v2623_v46, 4  ;;  %v1445_v10 = vmul.f32 %v2623_v46, %v2623_v46  ;;  %v1438_v3 = vrot.slane %v2625_v44, 4  ;;  %v1447_v17 = vmul.f32 %v2625_v44, %v2625_v44  ;;  %v1335_v14 = vpop.f32.mrb[10].mxu0  ;;  %v1417_v18 = vpop.f32.mrb[10].mxu1 }
 0x4ae   :  { %v1421_v1 = vadd.f32 %v1420_v16, %v2613_v2  ;;  %v1448_v21 = vrot.slane %v1444_v20, 4  ;;  %v1433_v22 = vadd.f32 %v1432_v7, %v2615_v5  ;;  %v1460_v4 = vrot.slane %v1446_v19, 4  ;;  %v1336_v23 = vpop.f32.mrb[11].mxu0  ;;  %v1418_v24 = vpop.f32.mrb[11].mxu1 }
 0x4af   :  { %v1427_v25 = vadd.f32 %v1426_v9, %v2623_v46  ;;  %v1454_v26 = vrot.slane %v1445_v10, 4  ;;  %v1439_v27 = vadd.f32 %v1438_v3, %v2625_v44  ;;  %v1466_v37 = vrot.slane %v1447_v17, 4 }
 0x4b0   :  { %v1422_v28 = vrot.slane %v1421_v1, 2  ;;  %v1449_v29 = vadd.f32 %v1448_v21, %v1444_v20  ;;  %v1434_v30 = vrot.slane %v1433_v22, 2  ;;  %v1461_v31 = vadd.f32 %v1460_v4, %v1446_v19 }
 0x4b1   :  { %v1428_v39 = vrot.slane %v1427_v25, 2  ;;  %v1455_v32 = vadd.f32 %v1454_v26, %v1445_v10  ;;  %v1440_v33 = vrot.slane %v1439_v27, 2  ;;  %v1467_v34 = vadd.f32 %v1466_v37, %v1447_v17 }
 0x4b2   :  { %v1423_v8 = vadd.f32 %v1422_v28, %v1421_v1  ;;  %v1450_v6 = vrot.slane %v1449_v29, 2  ;;  %v1435_v11 = vadd.f32 %v1434_v30, %v1433_v22  ;;  %v1462_v12 = vrot.slane %v1461_v31, 2 }
 0x4b3   :  { %v1429_v47 = vadd.f32 %v1428_v39, %v1427_v25  ;;  %v1456_v48 = vrot.slane %v1455_v32, 2  ;;  %v1441_v38 = vadd.f32 %v1440_v33, %v1439_v27  ;;  %v1468_v49 = vrot.slane %v1467_v34, 2 }
 0x4b4   :  { %v1424_v50 = vrot.slane %v1423_v8, 1  ;;  %v1451_v51 = vadd.f32 %v1450_v6, %v1449_v29  ;;  %v1436_v52 = vrot.slane %v1435_v11, 1  ;;  %v1463_v53 = vadd.f32 %v1462_v12, %v1461_v31 }
 0x4b5   :  { %v1430_v54 = vrot.slane %v1429_v47, 1  ;;  %v1457_v55 = vadd.f32 %v1456_v48, %v1455_v32  ;;  %v1442_v56 = vrot.slane %v1441_v38, 1  ;;  %v1469_v57 = vadd.f32 %v1468_v49, %v1467_v34  ;;  %v1501_v32 = vld [vmem:[#allocation7 + $0x2] ss:$8 sm:$0xf] }
 0x4b6   :  { %v1425_v58 = vadd.f32 %v1424_v50, %v1423_v8  ;;  %v1452_v59 = vrot.slane %v1451_v51, 1  ;;  %v1437_v13 = vadd.f32 %v1436_v52, %v1435_v11  ;;  %v1464_v60 = vrot.slane %v1463_v53, 1  ;;  %v1552_v11 = vld [vmem:[#allocation7 + $0x6] ss:$8 sm:$0xf] }
 0x4b7   :  { %v1431_v61 = vadd.f32 %v1430_v54, %v1429_v47  ;;  %v1458_v62 = vrot.slane %v1457_v55, 1  ;;  %v1443_v63 = vadd.f32 %v1442_v56, %v1441_v38  ;;  %v1470_v15 = vrot.slane %v1469_v57, 1 }
 0x4b8   :  { %v1453_v0 = vadd.f32 %v1452_v59, %v1451_v51  ;;  %v1472_v35 = vmul.f32 0.125, %v1425_v58  ;;  %v1465_v45 = vadd.f32 %v1464_v60, %v1463_v53  ;;  %v1474_v16 = vmul.f32 0.125, %v1437_v13 }
 0x4b9   :  { %v1459_v20 = vadd.f32 %v1458_v62, %v1457_v55  ;;  %v1473_v7 = vmul.f32 0.125, %v1431_v61  ;;  %v1471_v19 = vadd.f32 %v1470_v15, %v1469_v57  ;;  %v1475_v9 = vmul.f32 0.125, %v1443_v63 }
 0x4ba   :  { %v1476_v10 = vmul.f32 0.125, %v1453_v0  ;;  %v1480_v3 = vmul.f32 %v1472_v35, %v1472_v35  ;;  %v1478_v17 = vmul.f32 0.125, %v1465_v45  ;;  %v1482_v14 = vmul.f32 %v1474_v16, %v1474_v16 }
 0x4bb   :  { %v1477_v18 = vmul.f32 0.125, %v1459_v20  ;;  %v1481_v1 = vmul.f32 %v1473_v7, %v1473_v7  ;;  %v1479_v22 = vmul.f32 0.125, %v1471_v19  ;;  %v1483_v4 = vmul.f32 %v1475_v9, %v1475_v9 }
 0x4bc   :  { %v1484_v21 = vsub.f32 %v1476_v10, %v1480_v3  ;;  %v1486_v23 = vsub.f32 %v1478_v17, %v1482_v14  ;;  %v1506_v33 = vrot.slane %v1501_v32, %v2474_v40  ;;  %v1514_v34 = vrot.slane %v1501_v32, %v2477_v41 }
 0x4bd   :  { %v1485_v24 = vsub.f32 %v1477_v18, %v1481_v1  ;;  %v1487_v26 = vsub.f32 %v1479_v22, %v1483_v4  ;;  %v1510_v8 = vrot.slane %v1501_v32, %v2480_v42  ;;  %v1518_v12 = vrot.slane %v1501_v32, %v2483_v43 }
 0x4be   :  { %v1488_v25 = vmax.f32 %v1484_v21, 0.0  ;;  %v1490_v27 = vmax.f32 %v1486_v23, 0.0  ;;  %v1527_v51 = vsub.f32 %v2613_v2, %v1472_v35  ;;  %v1557_v53 = vrot.slane %v1552_v11, %v2474_v40 }
 0x4bf   :  { %v1489_v37 = vmax.f32 %v1485_v24, 0.0  ;;  %v1491_v29 = vmax.f32 %v1487_v26, 0.0  ;;  %v1529_v55 = vsub.f32 %v2615_v5, %v1474_v16  ;;  %v1565_v57 = vrot.slane %v1552_v11, %v2477_v41 }
 0x4c0   :  { %v1492_v28 = vadd.f32 1e-05, %v1488_v25  ;;  %v1494_v30 = vadd.f32 1e-05, %v1490_v27  ;;  %v1528_v13 = vsub.f32 %v2623_v46, %v1473_v7  ;;  %v1561_v61 = vrot.slane %v1552_v11, %v2480_v42 }
 0x4c1   :  { %v1493_v31 = vadd.f32 1e-05, %v1489_v37  ;;  %v1495_v39 = vadd.f32 1e-05, %v1491_v29  ;;  %v1530_v62 = vsub.f32 %v2625_v44, %v1475_v9  ;;  %v1569_v15 = vrot.slane %v1552_v11, %v2483_v43 }
 0x4c2   :  { %2195 = vrsqrt.f32 %v1492_v28 }
 0x4c3   :  { %2197 = vrsqrt.f32 %v1494_v30 }
 0x4c4   :  { %2199 = vrsqrt.f32 %v1493_v31 }
 0x4c5   :  { %2201 = vrsqrt.f32 %v1495_v39 }
 0x4cc   :  { %v2196_v6 = vpop.eup %2195 }
 0x4cd   :  { %v2198_v47 = vpop.eup %2197  ;;  %v1523_v48 = vmul.f32 %v2196_v6, %v1506_v33 }
 0x4ce   :  { %v2200_v38 = vpop.eup %2199  ;;  %v1525_v49 = vmul.f32 %v2198_v47, %v1514_v34 }
 0x4cf   :  { %v2202_v50 = vpop.eup %2201  ;;  %v1534_v52 = vrot.slane %v1523_v48, %v2474_v40  ;;  %v1524_v54 = vmul.f32 %v2200_v38, %v1510_v8 }
 0x4d0   :  { %v1542_v56 = vrot.slane %v1525_v49, %v2474_v40  ;;  %v1526_v58 = vmul.f32 %v2202_v50, %v1518_v12 }
 0x4d1   :  { %v1547_v59 = vmul.f32 %v1534_v52, %v1527_v51  ;;  %v1538_v60 = vrot.slane %v1524_v54, %v2474_v40 }
 0x4d2   :  { %v1549_v2 = vmul.f32 %v1542_v56, %v1529_v55  ;;  %v1546_v63 = vrot.slane %v1526_v58, %v2474_v40 }
 0x4d3   :  { %v2653_v5 = vadd.f32 %v1557_v53, %v1547_v59  ;;  %v1548_v0 = vmul.f32 %v1538_v60, %v1528_v13 }
 0x4d4   :  { %v2655_v35 = vadd.f32 %v1565_v57, %v1549_v2  ;;  %v1550_v45 = vmul.f32 %v1546_v63, %v1530_v62 }
 0x4d5   :  { %v1578_v16 = vmax.f32 %v2653_v5, 0.0  ;;  %v1575_v46 = vadd.f32 %v1561_v61, %v1548_v0 }
 0x4d6   :  { %v1580_v20 = vmax.f32 %v2655_v35, 0.0  ;;  %v2659_v7 = vadd.f32 %v1569_v15, %v1550_v45 }
 0x4d7   :  { %v1579_v19 = vmax.f32 %v1575_v46, 0.0 }
 0x4d8   :  { %v1581_v44 = vmax.f32 %v2659_v7, 0.0 }
 0x4d9   :  { %2287 = dma.done.wait [#allocation3 + $0x1], 16384 }
 0x4da   :  { %2288 = vsyncadd [#allocation3 + $0x1], 4294950912  ;;  %v1585_v9 = vpack.c.bf16 %v1579_v19, %v1579_v19  ;;  %v1589_v10 = vld [vmem:[#allocation2 + $0x408] sm:$0xff]  ;;  %v1591_v3 = vld [vmem:[#allocation2 + $0x418] sm:$0xff]  ;;  %vm2098_vm0 = vcmask 7168  }
 0x4db   :  { %v1588_v17 = vld [vmem:[#allocation2 + $0x400] sm:$0xff]  ;;  %1716 = vmatprep.subr.bf16.mxu0 %v1589_v10  ;;  %1798 = vmatprep.subr.bf16.mxu1 %v1591_v3  ;;  %v1590_v14 = vld [vmem:[#allocation2 + $0x410] sm:$0xff]  ;;  %v1593_v18 = vld [vmem:[#allocation2 + $0x428] sm:$0xff] }
 0x4dc   :  { %1748 = vmatprep.mubr.bf16.mxu0 %v1585_v9  ;;  %1830 = vmatprep.mubr.bf16.mxu1 %v1585_v9  ;;  %v1595_v1 = vld [vmem:[#allocation2 + $0x438] sm:$0xff]  ;;  %v1592_v21 = vld [vmem:[#allocation2 + $0x420] sm:$0xff]  ;;  %v1594_v22 = vld [vmem:[#allocation2 + $0x430] sm:$0xff] }
 0x4dd   :  { %1717 = vmatpush1.bf16.msra.mxu0 %v1588_v17  ;;  %1799 = vmatpush1.bf16.msra.mxu1 %v1590_v14  ;;  %v1597_v4 = vld [vmem:[#allocation2 + $0x448] sm:$0xff]  ;;  %v1599_v23 = vld [vmem:[#allocation2 + $0x458] sm:$0xff]  ;;  %v1596_v24 = vld [vmem:[#allocation2 + $0x440] sm:$0xff] }
 0x4de   :  { %1718 = vmatprep.subr.bf16.mxu0 %v1593_v18  ;;  %1800 = vmatprep.subr.bf16.mxu1 %v1595_v1  ;;  %v1598_v25 = vld [vmem:[#allocation2 + $0x450] sm:$0xff]  ;;  %v1601_v26 = vld [vmem:[#allocation2 + $0x468] sm:$0xff]  ;;  %v1603_v27 = vld [vmem:[#allocation2 + $0x478] sm:$0xff] }
 0x4df   :  { %v1600_v37 = vld [vmem:[#allocation2 + $0x460] sm:$0xff]  ;;  %v1602_v28 = vld [vmem:[#allocation2 + $0x470] sm:$0xff]  ;;  %v1605_v29 = vld [vmem:[#allocation2 + $0x488] sm:$0xff] }
 0x4e0   :  { %v1607_v30 = vld [vmem:[#allocation2 + $0x498] sm:$0xff]  ;;  %v1604_v31 = vld [vmem:[#allocation2 + $0x480] sm:$0xff]  ;;  %v1606_v39 = vld [vmem:[#allocation2 + $0x490] sm:$0xff] }
 0x4e1   :  { %1719 = vmatpush1.bf16.msra.mxu0 %v1592_v21  ;;  %1801 = vmatpush1.bf16.msra.mxu1 %v1594_v22  ;;  %v1609_v32 = vld [vmem:[#allocation2 + $0x4a8] sm:$0xff]  ;;  %v1611_v33 = vld [vmem:[#allocation2 + $0x4b8] sm:$0xff]  ;;  %v1608_v34 = vld [vmem:[#allocation2 + $0x4a0] sm:$0xff] }
 0x4e2   :  { %1720 = vmatprep.subr.bf16.mxu0 %v1597_v4  ;;  %1802 = vmatprep.subr.bf16.mxu1 %v1599_v23  ;;  %v1610_v8 = vld [vmem:[#allocation2 + $0x4b0] sm:$0xff]  ;;  %v1613_v6 = vld [vmem:[#allocation2 + $0x4c8] sm:$0xff]  ;;  %v1615_v11 = vld [vmem:[#allocation2 + $0x4d8] sm:$0xff] }
 0x4e3   :  { %v1612_v12 = vld [vmem:[#allocation2 + $0x4c0] sm:$0xff]  ;;  %v1614_v47 = vld [vmem:[#allocation2 + $0x4d0] sm:$0xff]  ;;  %v1617_v48 = vld [vmem:[#allocation2 + $0x4e8] sm:$0xff] }
 0x4e4   :  { %v1619_v38 = vld [vmem:[#allocation2 + $0x4f8] sm:$0xff]  ;;  %v1616_v49 = vld [vmem:[#allocation2 + $0x4e0] sm:$0xff]  ;;  %v1618_v50 = vld [vmem:[#allocation2 + $0x4f0] sm:$0xff] }
 0x4e5   :  { %1721 = vmatpush1.bf16.msra.mxu0 %v1596_v24  ;;  %1803 = vmatpush1.bf16.msra.mxu1 %v1598_v25  ;;  %v1621_v51 = vld [vmem:[#allocation2 + $0x508] sm:$0xff]  ;;  %v1623_v52 = vld [vmem:[#allocation2 + $0x518] sm:$0xff]  ;;  %v1620_v53 = vld [vmem:[#allocation2 + $0x500] sm:$0xff] }
 0x4e6   :  { %1722 = vmatprep.subr.bf16.mxu0 %v1601_v26  ;;  %1804 = vmatprep.subr.bf16.mxu1 %v1603_v27  ;;  %v1622_v54 = vld [vmem:[#allocation2 + $0x510] sm:$0xff]  ;;  %v1625_v55 = vld [vmem:[#allocation2 + $0x528] sm:$0xff]  ;;  %v1627_v56 = vld [vmem:[#allocation2 + $0x538] sm:$0xff]  ;;  %v1584_v27 = vpack.c.bf16 %v1578_v16, %v1578_v16 }
 0x4e7   :  { %v1624_v57 = vld [vmem:[#allocation2 + $0x520] sm:$0xff]  ;;  %v1626_v58 = vld [vmem:[#allocation2 + $0x530] sm:$0xff]  ;;  %v1629_v59 = vld [vmem:[#allocation2 + $0x548] sm:$0xff] }
 0x4e8   :  { %v1631_v13 = vld [vmem:[#allocation2 + $0x558] sm:$0xff]  ;;  %v1628_v60 = vld [vmem:[#allocation2 + $0x540] sm:$0xff]  ;;  %v1630_v61 = vld [vmem:[#allocation2 + $0x550] sm:$0xff] }
 0x4e9   :  { %1723 = vmatpush1.bf16.msra.mxu0 %v1600_v37  ;;  %1805 = vmatpush1.bf16.msra.mxu1 %v1602_v28  ;;  %v1633_v2 = vld [vmem:[#allocation2 + $0x568] sm:$0xff]  ;;  %v1635_v62 = vld [vmem:[#allocation2 + $0x578] sm:$0xff]  ;;  %v1632_v63 = vld [vmem:[#allocation2 + $0x560] sm:$0xff] }
 0x4ea   :  { %1724 = vmatprep.subr.bf16.mxu0 %v1605_v29  ;;  %1806 = vmatprep.subr.bf16.mxu1 %v1607_v30  ;;  %v1634_v15 = vld [vmem:[#allocation2 + $0x570] sm:$0xff]  ;;  %v1637_v0 = vld [vmem:[#allocation2 + $0x588] sm:$0xff]  ;;  %v1639_v45 = vld [vmem:[#allocation2 + $0x598] sm:$0xff] }
 0x4eb   :  { %v1636_v46 = vld [vmem:[#allocation2 + $0x580] sm:$0xff]  ;;  %v1638_v19 = vld [vmem:[#allocation2 + $0x590] sm:$0xff]  ;;  %v1641_v9 = vld [vmem:[#allocation2 + $0x5a8] sm:$0xff] }
 0x4ec   :  { %v1643_v10 = vld [vmem:[#allocation2 + $0x5b8] sm:$0xff]  ;;  %v1640_v3 = vld [vmem:[#allocation2 + $0x5a0] sm:$0xff]  ;;  %v1642_v17 = vld [vmem:[#allocation2 + $0x5b0] sm:$0xff] }
 0x4ed   :  { %1725 = vmatpush1.bf16.msra.mxu0 %v1604_v31  ;;  %1807 = vmatpush1.bf16.msra.mxu1 %v1606_v39  ;;  %v1645_v14 = vld [vmem:[#allocation2 + $0x5c8] sm:$0xff]  ;;  %v1647_v18 = vld [vmem:[#allocation2 + $0x5d8] sm:$0xff]  ;;  %v1644_v1 = vld [vmem:[#allocation2 + $0x5c0] sm:$0xff]  ;;  %v1587_v31 = vpack.c.bf16 %v1581_v44, %v1581_v44 }
 0x4ee   :  { %1726 = vmatprep.subr.bf16.mxu0 %v1609_v32  ;;  %1808 = vmatprep.subr.bf16.mxu1 %v1611_v33  ;;  %v1646_v21 = vld [vmem:[#allocation2 + $0x5d0] sm:$0xff]  ;;  %v1649_v22 = vld [vmem:[#allocation2 + $0x5e8] sm:$0xff]  ;;  %v1651_v4 = vld [vmem:[#allocation2 + $0x5f8] sm:$0xff] }
 0x4ef   :  { %v1648_v23 = vld [vmem:[#allocation2 + $0x5e0] sm:$0xff]  ;;  %v1650_v24 = vld [vmem:[#allocation2 + $0x5f0] sm:$0xff]  ;;  %v1653_v25 = vld [vmem:[#allocation2 + $0x608] sm:$0xff] }
 0x4f0   :  { %v1655_v26 = vld [vmem:[#allocation2 + $0x618] sm:$0xff]  ;;  %v1652_v37 = vld [vmem:[#allocation2 + $0x600] sm:$0xff]  ;;  %v1654_v28 = vld [vmem:[#allocation2 + $0x610] sm:$0xff] }
 0x4f1   :  { %1727 = vmatpush1.bf16.msra.mxu0 %v1608_v34  ;;  %1809 = vmatpush1.bf16.msra.mxu1 %v1610_v8  ;;  %v1657_v29 = vld [vmem:[#allocation2 + $0x628] sm:$0xff]  ;;  %v1659_v30 = vld [vmem:[#allocation2 + $0x638] sm:$0xff]  ;;  %v1656_v5 = vld [vmem:[#allocation2 + $0x620] sm:$0xff] }
 0x4f2   :  { %1728 = vmatprep.subr.bf16.mxu0 %v1613_v6  ;;  %1810 = vmatprep.subr.bf16.mxu1 %v1615_v11  ;;  %v1658_v16 = vld [vmem:[#allocation2 + $0x630] sm:$0xff]  ;;  %v1661_v39 = vld [vmem:[#allocation2 + $0x648] sm:$0xff]  ;;  %v1663_v32 = vld [vmem:[#allocation2 + $0x658] sm:$0xff] }
 0x4f3   :  { %v1660_v33 = vld [vmem:[#allocation2 + $0x640] sm:$0xff]  ;;  %v1662_v7 = vld [vmem:[#allocation2 + $0x650] sm:$0xff]  ;;  %v1665_v34 = vld [vmem:[#allocation2 + $0x668] sm:$0xff] }
 0x4f4   :  { %v1667_v44 = vld [vmem:[#allocation2 + $0x678] sm:$0xff]  ;;  %v1664_v8 = vld [vmem:[#allocation2 + $0x660] sm:$0xff]  ;;  %v1666_v6 = vld [vmem:[#allocation2 + $0x670] sm:$0xff] }
 0x4f5   :  { %1729 = vmatpush1.bf16.msra.mxu0 %v1612_v12  ;;  %1811 = vmatpush1.bf16.msra.mxu1 %v1614_v47  ;;  %v1669_v11 = vld [vmem:[#allocation2 + $0x688] sm:$0xff]  ;;  %v1671_v12 = vld [vmem:[#allocation2 + $0x698] sm:$0xff]  ;;  %v1668_v47 = vld [vmem:[#allocation2 + $0x680] sm:$0xff] }
 0x4f6   :  { %1730 = vmatprep.subr.bf16.mxu0 %v1617_v48  ;;  %1812 = vmatprep.subr.bf16.mxu1 %v1619_v38  ;;  %v1670_v48 = vld [vmem:[#allocation2 + $0x690] sm:$0xff]  ;;  %v1673_v38 = vld [vmem:[#allocation2 + $0x6a8] sm:$0xff] }
 0x4f9   :  { %1731 = vmatpush1.bf16.msra.mxu0 %v1616_v49  ;;  %1813 = vmatpush1.bf16.msra.mxu1 %v1618_v50  ;;  %v1675_v49 = vld [vmem:[#allocation2 + $0x6b8] sm:$0xff]  ;;  %v1672_v50 = vld [vmem:[#allocation2 + $0x6a0] sm:$0xff] }
 0x4fa   :  { %1732 = vmatprep.subr.bf16.mxu0 %v1621_v51  ;;  %1814 = vmatprep.subr.bf16.mxu1 %v1623_v52  ;;  %v1674_v51 = vld [vmem:[#allocation2 + $0x6b0] sm:$0xff]  ;;  %v1677_v52 = vld [vmem:[#allocation2 + $0x6c8] sm:$0xff] }
 0x4fd   :  { %1733 = vmatpush1.bf16.msra.mxu0 %v1620_v53  ;;  %1815 = vmatpush1.bf16.msra.mxu1 %v1622_v54  ;;  %v1679_v53 = vld [vmem:[#allocation2 + $0x6d8] sm:$0xff]  ;;  %v1676_v54 = vld [vmem:[#allocation2 + $0x6c0] sm:$0xff] }
 0x4fe   :  { %1734 = vmatprep.subr.bf16.mxu0 %v1625_v55  ;;  %1816 = vmatprep.subr.bf16.mxu1 %v1627_v56  ;;  %v1678_v55 = vld [vmem:[#allocation2 + $0x6d0] sm:$0xff]  ;;  %v1681_v56 = vld [vmem:[#allocation2 + $0x6e8] sm:$0xff] }
 0x501   :  { %1735 = vmatpush1.bf16.msra.mxu0 %v1624_v57  ;;  %1817 = vmatpush1.bf16.msra.mxu1 %v1626_v58  ;;  %v1683_v57 = vld [vmem:[#allocation2 + $0x6f8] sm:$0xff]  ;;  %v1680_v58 = vld [vmem:[#allocation2 + $0x6e0] sm:$0xff] }
 0x502   :  { %1736 = vmatprep.subr.bf16.mxu0 %v1629_v59  ;;  %1818 = vmatprep.subr.bf16.mxu1 %v1631_v13  ;;  %v1682_v59 = vld [vmem:[#allocation2 + $0x6f0] sm:$0xff]  ;;  %v1685_v13 = vld [vmem:[#allocation2 + $0x708] sm:$0xff] }
 0x505   :  { %1737 = vmatpush1.bf16.msra.mxu0 %v1628_v60  ;;  %1819 = vmatpush1.bf16.msra.mxu1 %v1630_v61  ;;  %v1687_v60 = vld [vmem:[#allocation2 + $0x718] sm:$0xff]  ;;  %v1684_v61 = vld [vmem:[#allocation2 + $0x700] sm:$0xff] }
 0x506   :  { %1738 = vmatprep.subr.bf16.mxu0 %v1633_v2  ;;  %1820 = vmatprep.subr.bf16.mxu1 %v1635_v62  ;;  %v1686_v2 = vld [vmem:[#allocation2 + $0x710] sm:$0xff]  ;;  %v1689_v62 = vld [vmem:[#allocation2 + $0x728] sm:$0xff] }
 0x509   :  { %1739 = vmatpush1.bf16.msra.mxu0 %v1632_v63  ;;  %1821 = vmatpush1.bf16.msra.mxu1 %v1634_v15  ;;  %v1691_v63 = vld [vmem:[#allocation2 + $0x738] sm:$0xff]  ;;  %v1688_v15 = vld [vmem:[#allocation2 + $0x720] sm:$0xff] }
 0x50a   :  { %1740 = vmatprep.subr.bf16.mxu0 %v1637_v0  ;;  %1822 = vmatprep.subr.bf16.mxu1 %v1639_v45  ;;  %v1690_v0 = vld [vmem:[#allocation2 + $0x730] sm:$0xff]  ;;  %v1693_v45 = vld [vmem:[#allocation2 + $0x748] sm:$0xff] }
 0x50d   :  { %1741 = vmatpush1.bf16.msra.mxu0 %v1636_v46  ;;  %1823 = vmatpush1.bf16.msra.mxu1 %v1638_v19  ;;  %v1695_v46 = vld [vmem:[#allocation2 + $0x758] sm:$0xff]  ;;  %v1692_v19 = vld [vmem:[#allocation2 + $0x740] sm:$0xff] }
 0x50e   :  { %1742 = vmatprep.subr.bf16.mxu0 %v1641_v9  ;;  %1824 = vmatprep.subr.bf16.mxu1 %v1643_v10  ;;  %v1694_v9 = vld [vmem:[#allocation2 + $0x750] sm:$0xff]  ;;  %v1697_v10 = vld [vmem:[#allocation2 + $0x768] sm:$0xff] }
 0x511   :  { %1743 = vmatpush1.bf16.msra.mxu0 %v1640_v3  ;;  %1825 = vmatpush1.bf16.msra.mxu1 %v1642_v17  ;;  %v1699_v3 = vld [vmem:[#allocation2 + $0x778] sm:$0xff]  ;;  %v1696_v17 = vld [vmem:[#allocation2 + $0x760] sm:$0xff] }
 0x512   :  { %1744 = vmatprep.subr.bf16.mxu0 %v1645_v14  ;;  %1826 = vmatprep.subr.bf16.mxu1 %v1647_v18  ;;  %v1698_v14 = vld [vmem:[#allocation2 + $0x770] sm:$0xff]  ;;  %v1701_v18 = vld [vmem:[#allocation2 + $0x788] sm:$0xff] }
 0x515   :  { %1745 = vmatpush1.bf16.msra.mxu0 %v1644_v1  ;;  %1827 = vmatpush1.bf16.msra.mxu1 %v1646_v21  ;;  %v1703_v1 = vld [vmem:[#allocation2 + $0x798] sm:$0xff]  ;;  %v1700_v21 = vld [vmem:[#allocation2 + $0x780] sm:$0xff] }
 0x516   :  { %1746 = vmatprep.subr.bf16.mxu0 %v1649_v22  ;;  %1828 = vmatprep.subr.bf16.mxu1 %v1651_v4  ;;  %v1702_v22 = vld [vmem:[#allocation2 + $0x790] sm:$0xff]  ;;  %v1705_v4 = vld [vmem:[#allocation2 + $0x7a8] sm:$0xff] }
 0x519   :  { %1747 = vmatpush1.bf16.msra.mxu0 %v1648_v23  ;;  %1829 = vmatpush1.bf16.msra.mxu1 %v1650_v24  ;;  %v1707_v23 = vld [vmem:[#allocation2 + $0x7b8] sm:$0xff]  ;;  %v1704_v24 = vld [vmem:[#allocation2 + $0x7a0] sm:$0xff] }
 0x51a   :  { %1757 = vmatprep.subr.bf16.mxu0 %v1653_v25  ;;  %1839 = vmatprep.subr.bf16.mxu1 %v1655_v26  ;;  %v1706_v25 = vld [vmem:[#allocation2 + $0x7b0] sm:$0xff]  ;;  %v1709_v26 = vld [vmem:[#allocation2 + $0x7c8] sm:$0xff] }
 0x51c   :  { %1749 = vmatmul.mubr.bf16.vlgmr.msra.gmra.mrb[12].mxu0 %v1584_v27  ;;  %1831 = vmatmul.mubr.bf16.vlgmr.msra.gmra.mrb[12].mxu1 %v1584_v27  ;;  %v1711_v27 = vld [vmem:[#allocation2 + $0x7d8] sm:$0xff] }
 0x51d   :  { %1758 = vmatpush1.bf16.msra.mxu0 %v1652_v37  ;;  %1840 = vmatpush1.bf16.msra.mxu1 %v1654_v28  ;;  %v1708_v37 = vld [vmem:[#allocation2 + $0x7c0] sm:$0xff]  ;;  %v1710_v28 = vld [vmem:[#allocation2 + $0x7d0] sm:$0xff] }
 0x51e   :  { %1759 = vmatprep.subr.bf16.mxu0 %v1657_v29  ;;  %1841 = vmatprep.subr.bf16.mxu1 %v1659_v30  ;;  %v1713_v29 = vld [vmem:[#allocation2 + $0x7e8] sm:$0xff]  ;;  %v1715_v30 = vld [vmem:[#allocation2 + $0x7f8] sm:$0xff] }
 0x51f   :  { %1789 = vmatprep.mubr.bf16.mxu0 %v1587_v31  ;;  %1871 = vmatprep.mubr.bf16.mxu1 %v1587_v31  ;;  %v1712_v31 = vld [vmem:[#allocation2 + $0x7e0] sm:$0xff] }
 0x521   :  { %1760 = vmatpush1.bf16.msra.mxu0 %v1656_v5  ;;  %1842 = vmatpush1.bf16.msra.mxu1 %v1658_v16  ;;  %v1714_v5 = vld [vmem:[#allocation2 + $0x7f0] sm:$0xff]  ;;  %v1586_v16 = vpack.c.bf16 %v1580_v20, %v1580_v20 }
 0x522   :  { %1761 = vmatprep.subr.bf16.mxu0 %v1661_v39  ;;  %1843 = vmatprep.subr.bf16.mxu1 %v1663_v32 }
 0x525   :  { %1762 = vmatpush1.bf16.msra.mxu0 %v1660_v33  ;;  %1844 = vmatpush1.bf16.msra.mxu1 %v1662_v7 }
 0x526   :  { %1763 = vmatprep.subr.bf16.mxu0 %v1665_v34  ;;  %1845 = vmatprep.subr.bf16.mxu1 %v1667_v44 }
 0x529   :  { %1764 = vmatpush1.bf16.msra.mxu0 %v1664_v8  ;;  %1846 = vmatpush1.bf16.msra.mxu1 %v1666_v6 }
 0x52a   :  { %1765 = vmatprep.subr.bf16.mxu0 %v1669_v11  ;;  %1847 = vmatprep.subr.bf16.mxu1 %v1671_v12 }
 0x52d   :  { %1766 = vmatpush1.bf16.msra.mxu0 %v1668_v47  ;;  %1848 = vmatpush1.bf16.msra.mxu1 %v1670_v48 }
 0x52e   :  { %1767 = vmatprep.subr.bf16.mxu0 %v1673_v38  ;;  %1849 = vmatprep.subr.bf16.mxu1 %v1675_v49 }
 0x531   :  { %1768 = vmatpush1.bf16.msra.mxu0 %v1672_v50  ;;  %1850 = vmatpush1.bf16.msra.mxu1 %v1674_v51 }
 0x532   :  { %1769 = vmatprep.subr.bf16.mxu0 %v1677_v52  ;;  %1851 = vmatprep.subr.bf16.mxu1 %v1679_v53 }
 0x535   :  { %1770 = vmatpush1.bf16.msra.mxu0 %v1676_v54  ;;  %1852 = vmatpush1.bf16.msra.mxu1 %v1678_v55 }
 0x536   :  { %1771 = vmatprep.subr.bf16.mxu0 %v1681_v56  ;;  %1853 = vmatprep.subr.bf16.mxu1 %v1683_v57 }
 0x539   :  { %1772 = vmatpush1.bf16.msra.mxu0 %v1680_v58  ;;  %1854 = vmatpush1.bf16.msra.mxu1 %v1682_v59 }
 0x53a   :  { %1773 = vmatprep.subr.bf16.mxu0 %v1685_v13  ;;  %1855 = vmatprep.subr.bf16.mxu1 %v1687_v60 }
 0x53d   :  { %1774 = vmatpush1.bf16.msra.mxu0 %v1684_v61  ;;  %1856 = vmatpush1.bf16.msra.mxu1 %v1686_v2 }
 0x53e   :  { %1775 = vmatprep.subr.bf16.mxu0 %v1689_v62  ;;  %1857 = vmatprep.subr.bf16.mxu1 %v1691_v63 }
 0x541   :  { %1776 = vmatpush1.bf16.msra.mxu0 %v1688_v15  ;;  %1858 = vmatpush1.bf16.msra.mxu1 %v1690_v0 }
 0x542   :  { %1777 = vmatprep.subr.bf16.mxu0 %v1693_v45  ;;  %1859 = vmatprep.subr.bf16.mxu1 %v1695_v46 }
 0x545   :  { %1778 = vmatpush1.bf16.msra.mxu0 %v1692_v19  ;;  %1860 = vmatpush1.bf16.msra.mxu1 %v1694_v9 }
 0x546   :  { %1779 = vmatprep.subr.bf16.mxu0 %v1697_v10  ;;  %1861 = vmatprep.subr.bf16.mxu1 %v1699_v3 }
 0x549   :  { %1780 = vmatpush1.bf16.msra.mxu0 %v1696_v17  ;;  %1862 = vmatpush1.bf16.msra.mxu1 %v1698_v14 }
 0x54a   :  { %1781 = vmatprep.subr.bf16.mxu0 %v1701_v18  ;;  %1863 = vmatprep.subr.bf16.mxu1 %v1703_v1 }
 0x54d   :  { %1782 = vmatpush1.bf16.msra.mxu0 %v1700_v21  ;;  %1864 = vmatpush1.bf16.msra.mxu1 %v1702_v22 }
 0x54e   :  { %1783 = vmatprep.subr.bf16.mxu0 %v1705_v4  ;;  %1865 = vmatprep.subr.bf16.mxu1 %v1707_v23 }
 0x551   :  { %1784 = vmatpush1.bf16.msra.mxu0 %v1704_v24  ;;  %1866 = vmatpush1.bf16.msra.mxu1 %v1706_v25 }
 0x552   :  { %1785 = vmatprep.subr.bf16.mxu0 %v1709_v26  ;;  %1867 = vmatprep.subr.bf16.mxu1 %v1711_v27 }
 0x555   :  { %1786 = vmatpush1.bf16.msra.mxu0 %v1708_v37  ;;  %1868 = vmatpush1.bf16.msra.mxu1 %v1710_v28 }
 0x556   :  { %1787 = vmatprep.subr.bf16.mxu0 %v1713_v29  ;;  %1869 = vmatprep.subr.bf16.mxu1 %v1715_v30 }
 0x559   :  { %1788 = vmatpush1.bf16.msra.mxu0 %v1712_v31  ;;  %1870 = vmatpush1.bf16.msra.mxu1 %v1714_v5 }
 0x55c   :  { %1790 = vmatmul.mubr.bf16.vlgmr.msra.gmra.mrb[12].mxu0 %v1586_v16  ;;  %1872 = vmatmul.mubr.bf16.vlgmr.msra.gmra.mrb[12].mxu1 %v1586_v16 }
 0x62f   :  { %v2671_v39 = vpop.f32.mrb[12].mxu0  ;;  %v2673_v32 = vpop.f32.mrb[12].mxu1 }
 0x630   :  { %v1880_v33 = vrot.slane %v2671_v39, 4  ;;  %v1904_v7 = vmul.f32 %v2671_v39, %v2671_v39  ;;  %v1892_v34 = vrot.slane %v2673_v32, 4  ;;  %v1906_v35 = vmul.f32 %v2673_v32, %v2673_v32  ;;  %v2681_v44 = vpop.f32.mrb[13].mxu0  ;;  %v2683_v20 = vpop.f32.mrb[13].mxu1 }
 0x631   :  { %v1886_v8 = vrot.slane %v2681_v44, 4  ;;  %v1905_v6 = vmul.f32 %v2681_v44, %v2681_v44  ;;  %v1898_v11 = vrot.slane %v2683_v20, 4  ;;  %v1907_v12 = vmul.f32 %v2683_v20, %v2683_v20  ;;  %v1795_v47 = vpop.f32.mrb[14].mxu0  ;;  %v1877_v48 = vpop.f32.mrb[14].mxu1 }
 0x632   :  { %v1881_v38 = vadd.f32 %v1880_v33, %v2671_v39  ;;  %v1908_v49 = vrot.slane %v1904_v7, 4  ;;  %v1893_v50 = vadd.f32 %v1892_v34, %v2673_v32  ;;  %v1920_v51 = vrot.slane %v1906_v35, 4  ;;  %v1796_v52 = vpop.f32.mrb[15].mxu0  ;;  %v1878_v53 = vpop.f32.mrb[15].mxu1 }
 0x633   :  { %v1887_v54 = vadd.f32 %v1886_v8, %v2681_v44  ;;  %v1914_v55 = vrot.slane %v1905_v6, 4  ;;  %v1899_v56 = vadd.f32 %v1898_v11, %v2683_v20  ;;  %v1926_v57 = vrot.slane %v1907_v12, 4 }
 0x634   :  { %v1882_v58 = vrot.slane %v1881_v38, 2  ;;  %v1909_v59 = vadd.f32 %v1908_v49, %v1904_v7  ;;  %v1894_v13 = vrot.slane %v1893_v50, 2  ;;  %v1921_v60 = vadd.f32 %v1920_v51, %v1906_v35 }
 0x635   :  { %v1888_v61 = vrot.slane %v1887_v54, 2  ;;  %v1915_v2 = vadd.f32 %v1914_v55, %v1905_v6  ;;  %v1900_v62 = vrot.slane %v1899_v56, 2  ;;  %v1927_v63 = vadd.f32 %v1926_v57, %v1907_v12 }
 0x636   :  { %v1883_v15 = vadd.f32 %v1882_v58, %v1881_v38  ;;  %v1910_v0 = vrot.slane %v1909_v59, 2  ;;  %v1895_v45 = vadd.f32 %v1894_v13, %v1893_v50  ;;  %v1922_v46 = vrot.slane %v1921_v60, 2 }
 0x637   :  { %v1889_v19 = vadd.f32 %v1888_v61, %v1887_v54  ;;  %v1916_v9 = vrot.slane %v1915_v2, 2  ;;  %v1901_v10 = vadd.f32 %v1900_v62, %v1899_v56  ;;  %v1928_v3 = vrot.slane %v1927_v63, 2  ;;  %v2042_v62 = vld [vmem:[#allocation9] sm:$0xf] }
 0x638   :  { %v1884_v17 = vrot.slane %v1883_v15, 1  ;;  %v1911_v14 = vadd.f32 %v1910_v0, %v1909_v59  ;;  %v1896_v18 = vrot.slane %v1895_v45, 1  ;;  %v1923_v1 = vadd.f32 %v1922_v46, %v1921_v60  ;;  %v2012_v0 = vld [vmem:[#allocation7 + $0x7] ss:$8 sm:$0xf] }
 0x639   :  { %v1890_v21 = vrot.slane %v1889_v19, 1  ;;  %v1917_v22 = vadd.f32 %v1916_v9, %v1915_v2  ;;  %v1902_v4 = vrot.slane %v1901_v10, 1  ;;  %v1929_v23 = vadd.f32 %v1928_v3, %v1927_v63  ;;  %v1961_v2 = vld [vmem:[#allocation7 + $0x3] ss:$8 sm:$0xf] }
 0x63a   :  { %v1885_v24 = vadd.f32 %v1884_v17, %v1883_v15  ;;  %v1912_v25 = vrot.slane %v1911_v14, 1  ;;  %v1897_v26 = vadd.f32 %v1896_v18, %v1895_v45  ;;  %v1924_v27 = vrot.slane %v1923_v1, 1 }
 0x63b   :  { %v1891_v37 = vadd.f32 %v1890_v21, %v1889_v19  ;;  %v1918_v28 = vrot.slane %v1917_v22, 1  ;;  %v1903_v29 = vadd.f32 %v1902_v4, %v1901_v10  ;;  %v1930_v30 = vrot.slane %v1929_v23, 1 }
 0x63c   :  { %v1913_v31 = vadd.f32 %v1912_v25, %v1911_v14  ;;  %v1932_v5 = vmul.f32 0.125, %v1885_v24  ;;  %v1925_v16 = vadd.f32 %v1924_v27, %v1923_v1  ;;  %v1934_v33 = vmul.f32 0.125, %v1897_v26 }
 0x63d   :  { %v1919_v7 = vadd.f32 %v1918_v28, %v1917_v22  ;;  %v1933_v34 = vmul.f32 0.125, %v1891_v37  ;;  %v1931_v35 = vadd.f32 %v1930_v30, %v1929_v23  ;;  %v2695_v8 = vmul.f32 0.125, %v1903_v29 }
 0x63e   :  { %v1936_v6 = vmul.f32 0.125, %v1913_v31  ;;  %v1940_v11 = vmul.f32 %v1932_v5, %v1932_v5  ;;  %v1938_v12 = vmul.f32 0.125, %v1925_v16  ;;  %v1942_v47 = vmul.f32 %v1934_v33, %v1934_v33 }
 0x63f   :  { %v1937_v48 = vmul.f32 0.125, %v1919_v7  ;;  %v1941_v38 = vmul.f32 %v1933_v34, %v1933_v34  ;;  %v1939_v50 = vmul.f32 0.125, %v1931_v35  ;;  %v1943_v51 = vmul.f32 %v2695_v8, %v2695_v8 }
 0x640   :  { %v1944_v49 = vsub.f32 %v1936_v6, %v1940_v11  ;;  %v1946_v52 = vsub.f32 %v1938_v12, %v1942_v47  ;;  %v1966_v63 = vrot.slane %v1961_v2, %v2474_v40  ;;  %v1974_v15 = vrot.slane %v1961_v2, %v2477_v41 }
 0x641   :  { %v1945_v53 = vsub.f32 %v1937_v48, %v1941_v38  ;;  %v1947_v55 = vsub.f32 %v1939_v50, %v1943_v51  ;;  %v1970_v45 = vrot.slane %v1961_v2, %v2480_v42  ;;  %v2043_v46 = vunpack.c.l.bf16 %v2042_v62 }
 0x642   :  { %v1948_v54 = vmax.f32 %v1944_v49, 0.0  ;;  %v1950_v56 = vmax.f32 %v1946_v52, 0.0  ;;  %v1978_v9 = vrot.slane %v1961_v2, %v2483_v43  ;;  %v2017_v17 = vrot.slane %v2012_v0, %v2474_v40 }
 0x643   :  { %v1949_v57 = vmax.f32 %v1945_v53, 0.0  ;;  %v1951_v59 = vmax.f32 %v1947_v55, 0.0  ;;  %v2021_v1 = vrot.slane %v2012_v0, %v2480_v42  ;;  %v2025_v21 = vrot.slane %v2012_v0, %v2477_v41 }
 0x644   :  { %v1952_v58 = vadd.f32 1e-05, %v1948_v54  ;;  %v1954_v13 = vadd.f32 1e-05, %v1950_v56  ;;  %v2055_v22 = vsub.s32 4, %v2471_v36  ;;  %v1987_v23 = vsub.f32 %v2671_v39, %v1932_v5 }
 0x645   :  { %v1953_v60 = vadd.f32 1e-05, %v1949_v57  ;;  %v1955_v61 = vadd.f32 1e-05, %v1951_v59  ;;  %v2048_v26 = vrot.slane %v2043_v46, %v2474_v40  ;;  %v1989_v27 = vsub.f32 %v2673_v32, %v1934_v33  ;;  %v2127_v57 = vld [vmem:[#allocation4] ss:$0 sm:$0xff] }
 0x646   :  { %2203 = vrsqrt.f32 %v1952_v58  ;;  %v2059_v29 = vsub.s32 6, %v2471_v36  ;;  %v1988_v30 = vsub.f32 %v2681_v44, %v1933_v34  ;;  %v2052_v16 = vrot.slane %v2043_v46, %v2477_v41 }
 0x647   :  { %2205 = vrsqrt.f32 %v1954_v13  ;;  %v1990_v5 = vsub.f32 %v2683_v20, %v2695_v8  ;;  %v2029_v32 = vrot.slane %v2012_v0, %v2483_v43  ;;  %v2056_v6 = vrot.slane %v2043_v46, %v2055_v22 }
 0x648   :  { %2207 = vrsqrt.f32 %v1953_v60  ;;  %v2068_v36 = vrot.slane %v2048_v26, %v2474_v40  ;;  %v2060_v47 = vrot.slane %v2043_v46, %v2059_v29  ;;  %v2072_v41 = vrot.slane %v2052_v16, %v2474_v40 }
 0x649   :  { %2209 = vrsqrt.f32 %v1955_v61  ;;  %v2076_v20 = vrot.slane %v2056_v6, %v2474_v40 }
 0x64a   :  { %v2080_v43 = vrot.slane %v2060_v47, %v2474_v40 }
 0x650   :  { %v2204_v19 = vpop.eup %2203 }
 0x651   :  { %v2206_v10 = vpop.eup %2205  ;;  %v1983_v3 = vmul.f32 %v2204_v19, %v1966_v63 }
 0x652   :  { %v2208_v14 = vpop.eup %2207  ;;  %v1985_v18 = vmul.f32 %v2206_v10, %v1974_v15 }
 0x653   :  { %v2210_v4 = vpop.eup %2209  ;;  %v1994_v24 = vrot.slane %v1983_v3, %v2474_v40  ;;  %v1984_v25 = vmul.f32 %v2208_v14, %v1970_v45 }
 0x654   :  { %v2002_v37 = vrot.slane %v1985_v18, %v2474_v40  ;;  %v1986_v28 = vmul.f32 %v2210_v4, %v1978_v9 }
 0x655   :  { %v2007_v42 = vmul.f32 %v1994_v24, %v1987_v23  ;;  %v1998_v31 = vrot.slane %v1984_v25, %v2474_v40 }
 0x656   :  { %v2009_v39 = vmul.f32 %v2002_v37, %v1989_v27  ;;  %v2006_v7 = vrot.slane %v1986_v28, %v2474_v40 }
 0x657   :  { %v2008_v33 = vmul.f32 %v1998_v31, %v1988_v30  ;;  %v2034_v35 = vadd.f32 %v2017_v17, %v2007_v42 }
 0x658   :  { %v2010_v11 = vmul.f32 %v2006_v7, %v1990_v5  ;;  %v2036_v12 = vadd.f32 %v2025_v21, %v2009_v39 }
 0x659   :  { %v2035_v44 = vadd.f32 %v2021_v1, %v2008_v33  ;;  %v2038_v34 = vmax.f32 %v2034_v35, 0.0 }
 0x65a   :  { %v2037_v48 = vadd.f32 %v2029_v32, %v2010_v11  ;;  %v2040_v49 = vmax.f32 %v2036_v12, 0.0 }
 0x65b   :  { %v2039_v38 = vmax.f32 %v2035_v44, 0.0  ;;  %v2081_v8 = vmul.f32 %v2068_v36, %v2038_v34 }
 0x65c   :  { %v2041_v50 = vmax.f32 %v2037_v48, 0.0  ;;  %v2083_v52 = vmul.f32 %v2076_v20, %v2040_v49 }
 0x65d   :  { %v2082_v51 = vmul.f32 %v2072_v41, %v2039_v38 }
 0x65e   :  { %v2084_v54 = vmul.f32 %v2080_v43, %v2041_v50 }
 0x65f   :  { %v2085_v53 = vadd.f32 %v2082_v51, %v2081_v8 }
 0x661   :  { %v2086_v55 = vadd.f32 %v2085_v53, %v2083_v52 }
 0x663   :  { %v2087_v56 = vadd.f32 %v2086_v55, %v2084_v54 }
 0x665   :  { %2088 = vadd.xlane.f32.xlu0 %v2087_v56 }
 0x6f2   :  { %v2089_v58 = vpop.xlane.xlu0 %2088 }
 0x6f3   :  { %v2097_v59 = vadd.f32 %v2127_v57, %v2089_v58 }
 0x6f5   :  { %2099 = vst.msk [vmem:[%s2732_s5] sm:$0xff] %vm2098_vm0, %v2097_v59 }
 0x6f6   :  { %2104 = vsyncpa [#allocation6], 1 }
 0x6f7   :  { %2105 = vsyncpa [#allocation8], 1 }
 0x6f8   :  { %2106 = vsyncmov [#allocation3] }
 0x6fb   :  { %s2107_s30 = vpop.sfrf %2106 }
 0x6fc   :  { %p2128_p10 = scmp.ne.s32.totalorder %s2107_s30, 0 }
 0x6fe   :  { %2111 = shalt.err (%p2128_p10)  }
 0x6ff   :  { %2113 = vsyncmov [#allocation3 + $0x1] }
 0x702   :  { %s2114_s4 = vpop.sfrf %2113 }
 0x703   :  { %p2129_p11 = scmp.ne.s32.totalorder %s2114_s4, 0 }
 0x705   :  { %2118 = shalt.err (%p2129_p11)  }

</bundles_post_ra>
